<compile_context>
chip_gen: v7x
topology: tpu7x:2x2x1
jax: 0.10.0
libtpu: 0.0.40
codegen_flags: <defaults>
</compile_context>

<pallas_src>
import math
import jax
import jax.numpy as jnp
from jax.experimental import pallas as pl
from jax.experimental.pallas import tpu as pltpu

# ---------------- small synthetic BERT config ----------------
B, S = 2, 8            # batch, sequence length
BS = B * S
H = 128                # hidden_size
NH, DH = 4, 32         # attention heads, head dim
I = 256                # intermediate (FFN) size
NLAYERS = 2            # synthetic encoder depth
VOCAB = 100
MAX_POS = 32
NUM_CLASSES = 4
CLS_PAD = 128          # lane-dense padded width for the final logits store
LN_EPS = 1e-12
NEG = -1e9             # additive attention-mask bias
PARAMS_PER_LAYER = 12


def _gelu(x):
    # TODO(synk): HF BERT default is exact erf-GELU; tanh approximation used here.
    c = math.sqrt(2.0 / math.pi)
    return 0.5 * x * (1.0 + jnp.tanh(c * (x + 0.044715 * x * x * x)))


def _layernorm(x, g, b):
    mu = jnp.mean(x, axis=-1, keepdims=True)
    var = jnp.mean((x - mu) ** 2, axis=-1, keepdims=True)
    return (x - mu) * jax.lax.rsqrt(var + LN_EPS) * g + b


def _mxu(a, b):
    # bf16 MXU matmul with f32 accumulation.
    return jnp.dot(a.astype(jnp.bfloat16), b.astype(jnp.bfloat16),
                   preferred_element_type=jnp.float32)


def _mxu_nt(a, b):
    # a [M,K] x b [N,K] -> [M,N]  (contract last dims; no materialized transpose)
    return jax.lax.dot_general(a.astype(jnp.bfloat16), b.astype(jnp.bfloat16),
                               (((1,), (1,)), ((), ())),
                               preferred_element_type=jnp.float32)


# ---------------- single fused Pallas kernel: embeddings-LN -> encoder layers
# ---------------- -> pooler -> static classifier head ----------------
def fused_forward_kernel(*refs):
    (emb_ref, mask_ref, emb_g, emb_b, wp, bp, w1, b1, w2, b2) = refs[:10]
    out_ref = refs[-1]
    layer_refs = refs[10:-1]

    x = _layernorm(emb_ref[...], emb_g[...], emb_b[...])      # [BS, H]  f32
    mask = mask_ref[...]                                      # [BS, BS] block-diag + padding bias
    scale = 1.0 / math.sqrt(DH)

    for l in range(NLAYERS):                                  # static loop over layers
        (wqkv, bqkv, wo, bo, g1, be1,
         wi, bi, wff, bff, g2, be2) = layer_refs[PARAMS_PER_LAYER * l:PARAMS_PER_LAYER * (l + 1)]

        # Fused QKV projection: one [BS,H] @ [H,3H] matmul.
        qkv = _mxu(x, wqkv[...]) + bqkv[...]                  # [BS, 3H]
        q = qkv[:, 0:H]
        k = qkv[:, H:2 * H]
        v = qkv[:, 2 * H:3 * H]

        # Multi-head attention over the flattened batch; cross-batch pairs are
        # killed by the block-diagonal mask bias.
        ctx_parts = []
        for h in range(NH):                                   # static loop over heads
            sl = slice(h * DH, (h + 1) * DH)
            s = _mxu_nt(q[:, sl], k[:, sl]) * scale + mask    # [BS, BS]
            m = jnp.max(s, axis=-1, keepdims=True)
            e = jnp.exp(s - m)
            p = e * pl.reciprocal(jnp.sum(e, axis=-1, keepdims=True), approx=True)
            ctx_parts.append(_mxu(p, v[:, sl]))               # [BS, DH]
        ctx = jnp.concatenate(ctx_parts, axis=-1)             # [BS, H]

        attn = _mxu(ctx, wo[...]) + bo[...]                   # single output projection
        x = _layernorm(x + attn, g1[...], be1[...])

        hmid = _gelu(_mxu(x, wi[...]) + bi[...])              # [BS, I]
        ffn = _mxu(hmid, wff[...]) + bff[...]                 # [BS, H]
        x = _layernorm(x + ffn, g2[...], be2[...])

    # BERT pooler + static Classifier (eval mode: dropouts are identity).
    # Computed on all BS rows (trivial extra FLOPs); caller keeps the CLS rows only.
    pooled = jnp.tanh(_mxu(x, wp[...]) + bp[...])             # [BS, H]
    hid = jnp.maximum(_mxu(pooled, w1[...]) + b1[...], 0.0)   # [BS, 128]
    z = _mxu(hid, w2[...]) + b2[...]                          # [BS, CLS_PAD] (cols >=4 are zero weights)
    out_ref[...] = 1.0 / (1.0 + jnp.exp(-z))                  # exact sigmoid, lane-dense unmasked store


# ---------------- parameter init (deterministic, synthetic) ----------------
def _w(key, din, dout):
    # Weights stored in bf16 (native MXU path, half the DMA bytes); accumulate in f32.
    return (0.02 * jax.random.normal(key, (din, dout), jnp.float32)).astype(jnp.bfloat16)


def init_params(key):
    keys = iter(jax.random.split(key, 64))
    p = {}
    p["word_emb"] = 0.02 * jax.random.normal(next(keys), (VOCAB, H), jnp.float32)
    p["pos_emb"] = 0.02 * jax.random.normal(next(keys), (MAX_POS, H), jnp.float32)
    p["type_emb"] = 0.02 * jax.random.normal(next(keys), (2, H), jnp.float32)
    p["emb_g"] = jnp.ones((1, H), jnp.float32)
    p["emb_b"] = jnp.zeros((1, H), jnp.float32)

    layers = []
    for _ in range(NLAYERS):
        wqkv = _w(next(keys), H, 3 * H)                       # fused Q|K|V
        bqkv = jnp.zeros((1, 3 * H), jnp.float32)
        wo = _w(next(keys), H, H)
        bo = jnp.zeros((1, H), jnp.float32)
        g1, be1 = jnp.ones((1, H), jnp.float32), jnp.zeros((1, H), jnp.float32)
        wi = _w(next(keys), H, I)
        bi = jnp.zeros((1, I), jnp.float32)
        wff = _w(next(keys), I, H)
        bff = jnp.zeros((1, H), jnp.float32)
        g2, be2 = jnp.ones((1, H), jnp.float32), jnp.zeros((1, H), jnp.float32)
        layers.append((wqkv, bqkv, wo, bo, g1, be1, wi, bi, wff, bff, g2, be2))
    p["layers"] = layers

    p["wp"], p["bp"] = _w(next(keys), H, H), jnp.zeros((1, H), jnp.float32)          # pooler
    p["w1"], p["b1"] = _w(next(keys), H, 128), jnp.zeros((1, 128), jnp.float32)       # Classifier.dense_1
    # Classifier.dense_2: logical [128, 4], zero-padded to [128, CLS_PAD] so the kernel's
    # final matmul/store is full-width and unmasked; padded columns are sliced off outside.
    w2_real = _w(next(keys), 128, NUM_CLASSES)
    w2_pad = jnp.zeros((128, CLS_PAD), jnp.bfloat16).at[:, :NUM_CLASSES].set(w2_real)
    p["w2"] = w2_pad
    p["b2"] = jnp.zeros((1, CLS_PAD), jnp.float32)
    return p


# ---------------- full forward (embedding gather in plain JAX, everything else fused) ----------------
def vit_bert_classifier_forward(input_ids, attention_mask, params):
    # Embeddings (gather is glue; not the hot path), flattened to [B*S, H].
    emb = (params["word_emb"][input_ids]
           + params["pos_emb"][:S][None, :, :]
           + params["type_emb"][0][None, None, :])
    x_emb = emb.reshape(BS, H)

    # Block-diagonal (same-batch) * key-padding mask as one additive [BS, BS] bias.
    key_ok = attention_mask.astype(jnp.float32).reshape(BS)
    bid = jnp.repeat(jnp.arange(B), S)
    same_batch = (bid[:, None] == bid[None, :]).astype(jnp.float32)
    mask_bias = (1.0 - same_batch * key_ok[None, :]) * NEG     # [BS, BS]

    flat_args = [x_emb, mask_bias, params["emb_g"], params["emb_b"],
                 params["wp"], params["bp"], params["w1"], params["b1"],
                 params["w2"], params["b2"]]
    for lp in params["layers"]:
        flat_args.extend(lp)

    # Single pallas_call, no grid: all weights + activations resident in VMEM for the forward.
    out_all = pl.pallas_call(
        fused_forward_kernel,
        out_shape=jax.ShapeDtypeStruct((BS, CLS_PAD), jnp.float32),
        compiler_params=pltpu.CompilerParams(vmem_limit_bytes=32 * 1024 * 1024),
    )(*flat_args)

    # Keep only the CLS rows (row b*S of each batch element) and the 4 real classes.
    logits = out_all.reshape(B, S, CLS_PAD)[:, 0, :NUM_CLASSES]   # [B, 4]
    return logits


if __name__ == "__main__":
    key = jax.random.PRNGKey(0)
    k_param, k_ids = jax.random.split(key)
    params = init_params(k_param)

    input_ids = jax.random.randint(k_ids, (B, S), 0, VOCAB, dtype=jnp.int32)
    attention_mask = jnp.ones((B, S), jnp.int32).at[1, 6:].set(0)  # pad last 2 tokens of item 1

    logits = vit_bert_classifier_forward(input_ids, attention_mask, params)
    logits = jax.block_until_ready(logits)

    assert logits.shape == (B, NUM_CLASSES)
    assert bool(jnp.all(jnp.isfinite(logits)))
    assert bool(jnp.all((logits >= 0.0) & (logits <= 1.0)))  # sigmoid output
    print("KERNEL_OK")
</pallas_src>

<mosaic_0001>
module attributes {stable_mosaic.version = 11 : i64} {
  func.func @fused_forward_kernel(%arg0: memref<16x128xf32, #tpu.memory_space<vmem>>, %arg1: memref<16x16xf32, #tpu.memory_space<vmem>>, %arg2: memref<1x128xf32, #tpu.memory_space<vmem>>, %arg3: memref<1x128xf32, #tpu.memory_space<vmem>>, %arg4: memref<128x128xbf16, #tpu.memory_space<vmem>>, %arg5: memref<1x128xf32, #tpu.memory_space<vmem>>, %arg6: memref<128x128xbf16, #tpu.memory_space<vmem>>, %arg7: memref<1x128xf32, #tpu.memory_space<vmem>>, %arg8: memref<128x128xbf16, #tpu.memory_space<vmem>>, %arg9: memref<1x128xf32, #tpu.memory_space<vmem>>, %arg10: memref<128x384xbf16, #tpu.memory_space<vmem>>, %arg11: memref<1x384xf32, #tpu.memory_space<vmem>>, %arg12: memref<128x128xbf16, #tpu.memory_space<vmem>>, %arg13: memref<1x128xf32, #tpu.memory_space<vmem>>, %arg14: memref<1x128xf32, #tpu.memory_space<vmem>>, %arg15: memref<1x128xf32, #tpu.memory_space<vmem>>, %arg16: memref<128x256xbf16, #tpu.memory_space<vmem>>, %arg17: memref<1x256xf32, #tpu.memory_space<vmem>>, %arg18: memref<256x128xbf16, #tpu.memory_space<vmem>>, %arg19: memref<1x128xf32, #tpu.memory_space<vmem>>, %arg20: memref<1x128xf32, #tpu.memory_space<vmem>>, %arg21: memref<1x128xf32, #tpu.memory_space<vmem>>, %arg22: memref<128x384xbf16, #tpu.memory_space<vmem>>, %arg23: memref<1x384xf32, #tpu.memory_space<vmem>>, %arg24: memref<128x128xbf16, #tpu.memory_space<vmem>>, %arg25: memref<1x128xf32, #tpu.memory_space<vmem>>, %arg26: memref<1x128xf32, #tpu.memory_space<vmem>>, %arg27: memref<1x128xf32, #tpu.memory_space<vmem>>, %arg28: memref<128x256xbf16, #tpu.memory_space<vmem>>, %arg29: memref<1x256xf32, #tpu.memory_space<vmem>>, %arg30: memref<256x128xbf16, #tpu.memory_space<vmem>>, %arg31: memref<1x128xf32, #tpu.memory_space<vmem>>, %arg32: memref<1x128xf32, #tpu.memory_space<vmem>>, %arg33: memref<1x128xf32, #tpu.memory_space<vmem>>, %arg34: memref<16x128xf32, #tpu.memory_space<vmem>>) attributes {dimension_semantics = [], scalar_prefetch = 0 : i64, scratch_operands = 0 : i64, tpu.core_type = #tpu.core_type<tc>} {
    %c0 = arith.constant 0 : index
    %c0_0 = arith.constant 0 : index
    %0 = vector.load %arg0[%c0, %c0_0] : memref<16x128xf32, #tpu.memory_space<vmem>>, vector<16x128xf32>
    %c0_1 = arith.constant 0 : index
    %c0_2 = arith.constant 0 : index
    %1 = vector.load %arg2[%c0_1, %c0_2] : memref<1x128xf32, #tpu.memory_space<vmem>>, vector<1x128xf32>
    %c0_3 = arith.constant 0 : index
    %c0_4 = arith.constant 0 : index
    %2 = vector.load %arg3[%c0_3, %c0_4] : memref<1x128xf32, #tpu.memory_space<vmem>>, vector<1x128xf32>
    %cst = arith.constant dense<0.000000e+00> : vector<16xf32>
    %3 = vector.multi_reduction <add>, %0, %cst [1] : vector<16x128xf32> to vector<16xf32>
    %4 = vector.shape_cast %3 : vector<16xf32> to vector<16x1xf32>
    %cst_5 = arith.constant 1.280000e+02 : f32
    %5 = vector.broadcast %cst_5 : f32 to vector<16x1xf32>
    %6 = arith.divf %4, %5 : vector<16x1xf32>
    %7 = vector.broadcast %6 : vector<16x1xf32> to vector<16x128xf32>
    %8 = arith.subf %0, %7 : vector<16x128xf32>
    %9 = arith.mulf %8, %8 : vector<16x128xf32>
    %cst_6 = arith.constant dense<0.000000e+00> : vector<16xf32>
    %10 = vector.multi_reduction <add>, %9, %cst_6 [1] : vector<16x128xf32> to vector<16xf32>
    %11 = vector.shape_cast %10 : vector<16xf32> to vector<16x1xf32>
    %cst_7 = arith.constant 1.280000e+02 : f32
    %12 = vector.broadcast %cst_7 : f32 to vector<16x1xf32>
    %13 = arith.divf %11, %12 : vector<16x1xf32>
    %14 = vector.broadcast %6 : vector<16x1xf32> to vector<16x128xf32>
    %15 = arith.subf %0, %14 : vector<16x128xf32>
    %cst_8 = arith.constant 9.99999996E-13 : f32
    %16 = vector.broadcast %cst_8 : f32 to vector<16x1xf32>
    %17 = arith.addf %13, %16 : vector<16x1xf32>
    %18 = math.rsqrt %17 : vector<16x1xf32>
    %19 = vector.broadcast %18 : vector<16x1xf32> to vector<16x128xf32>
    %20 = arith.mulf %15, %19 : vector<16x128xf32>
    %21 = vector.broadcast %1 : vector<1x128xf32> to vector<16x128xf32>
    %22 = arith.mulf %20, %21 : vector<16x128xf32>
    %23 = vector.broadcast %2 : vector<1x128xf32> to vector<16x128xf32>
    %24 = arith.addf %22, %23 : vector<16x128xf32>
    %c0_9 = arith.constant 0 : index
    %c0_10 = arith.constant 0 : index
    %25 = vector.load %arg1[%c0_9, %c0_10] : memref<16x16xf32, #tpu.memory_space<vmem>>, vector<16x16xf32>
    %c0_11 = arith.constant 0 : index
    %c0_12 = arith.constant 0 : index
    %26 = vector.load %arg10[%c0_11, %c0_12] : memref<128x384xbf16, #tpu.memory_space<vmem>>, vector<128x384xbf16>
    %27 = arith.truncf %24 : vector<16x128xf32> to vector<16x128xbf16>
    %cst_13 = arith.constant dense<0.000000e+00> : vector<16x384xf32>
    %28 = tpu.matmul %27, %26, %cst_13 {dimension_numbers = #tpu.dot_dimension_numbers<[1], [0], [0], [1], [0, 0, 1, 1], [], []>} : vector<16x128xbf16>, vector<128x384xbf16>, vector<16x384xf32> -> vector<16x384xf32>
    %c0_14 = arith.constant 0 : index
    %c0_15 = arith.constant 0 : index
    %29 = vector.load %arg11[%c0_14, %c0_15] : memref<1x384xf32, #tpu.memory_space<vmem>>, vector<1x384xf32>
    %30 = vector.broadcast %29 : vector<1x384xf32> to vector<16x384xf32>
    %31 = arith.addf %28, %30 : vector<16x384xf32>
    %32 = vector.extract_strided_slice %31 {offsets = [0, 0], sizes = [16, 128], strides = [1, 1]} : vector<16x384xf32> to vector<16x128xf32>
    %33 = vector.extract_strided_slice %31 {offsets = [0, 128], sizes = [16, 128], strides = [1, 1]} : vector<16x384xf32> to vector<16x128xf32>
    %34 = vector.extract_strided_slice %31 {offsets = [0, 256], sizes = [16, 128], strides = [1, 1]} : vector<16x384xf32> to vector<16x128xf32>
    %35 = vector.extract_strided_slice %32 {offsets = [0, 0], sizes = [16, 32], strides = [1, 1]} : vector<16x128xf32> to vector<16x32xf32>
    %36 = vector.extract_strided_slice %33 {offsets = [0, 0], sizes = [16, 32], strides = [1, 1]} : vector<16x128xf32> to vector<16x32xf32>
    %37 = arith.truncf %35 : vector<16x32xf32> to vector<16x32xbf16>
    %38 = arith.truncf %36 : vector<16x32xf32> to vector<16x32xbf16>
    %cst_16 = arith.constant dense<0.000000e+00> : vector<16x16xf32>
    %39 = tpu.matmul %37, %38, %cst_16 {dimension_numbers = #tpu.dot_dimension_numbers<[1], [1], [0], [0], [0, 0, 1, 0], [], []>} : vector<16x32xbf16>, vector<16x32xbf16>, vector<16x16xf32> -> vector<16x16xf32>
    %cst_17 = arith.constant 0.176776692 : f32
    %40 = vector.broadcast %cst_17 : f32 to vector<16x16xf32>
    %41 = arith.mulf %39, %40 : vector<16x16xf32>
    %42 = arith.addf %41, %25 : vector<16x16xf32>
    %cst_18 = arith.constant dense<0xFF800000> : vector<16xf32>
    %43 = vector.multi_reduction <maximumf>, %42, %cst_18 [1] : vector<16x16xf32> to vector<16xf32>
    %44 = vector.shape_cast %43 : vector<16xf32> to vector<16x1xf32>
    %45 = vector.broadcast %44 : vector<16x1xf32> to vector<16x16xf32>
    %46 = arith.subf %42, %45 : vector<16x16xf32>
    %47 = math.exp %46 : vector<16x16xf32>
    %cst_19 = arith.constant dense<0.000000e+00> : vector<16xf32>
    %48 = vector.multi_reduction <add>, %47, %cst_19 [1] : vector<16x16xf32> to vector<16xf32>
    %49 = vector.shape_cast %48 : vector<16xf32> to vector<16x1xf32>
    %50 = tpu.reciprocal %49 {approx = true} : vector<16x1xf32> -> vector<16x1xf32>
    %51 = vector.broadcast %50 : vector<16x1xf32> to vector<16x16xf32>
    %52 = arith.mulf %47, %51 : vector<16x16xf32>
    %53 = vector.extract_strided_slice %34 {offsets = [0, 0], sizes = [16, 32], strides = [1, 1]} : vector<16x128xf32> to vector<16x32xf32>
    %54 = arith.truncf %52 : vector<16x16xf32> to vector<16x16xbf16>
    %55 = arith.truncf %53 : vector<16x32xf32> to vector<16x32xbf16>
    %cst_20 = arith.constant dense<0.000000e+00> : vector<16x32xf32>
    %56 = tpu.matmul %54, %55, %cst_20 {dimension_numbers = #tpu.dot_dimension_numbers<[1], [0], [0], [1], [0, 0, 1, 1], [], []>} : vector<16x16xbf16>, vector<16x32xbf16>, vector<16x32xf32> -> vector<16x32xf32>
    %57 = vector.extract_strided_slice %32 {offsets = [0, 32], sizes = [16, 32], strides = [1, 1]} : vector<16x128xf32> to vector<16x32xf32>
    %58 = vector.extract_strided_slice %33 {offsets = [0, 32], sizes = [16, 32], strides = [1, 1]} : vector<16x128xf32> to vector<16x32xf32>
    %59 = arith.truncf %57 : vector<16x32xf32> to vector<16x32xbf16>
    %60 = arith.truncf %58 : vector<16x32xf32> to vector<16x32xbf16>
    %cst_21 = arith.constant dense<0.000000e+00> : vector<16x16xf32>
    %61 = tpu.matmul %59, %60, %cst_21 {dimension_numbers = #tpu.dot_dimension_numbers<[1], [1], [0], [0], [0, 0, 1, 0], [], []>} : vector<16x32xbf16>, vector<16x32xbf16>, vector<16x16xf32> -> vector<16x16xf32>
    %cst_22 = arith.constant 0.176776692 : f32
    %62 = vector.broadcast %cst_22 : f32 to vector<16x16xf32>
    %63 = arith.mulf %61, %62 : vector<16x16xf32>
    %64 = arith.addf %63, %25 : vector<16x16xf32>
    %cst_23 = arith.constant dense<0xFF800000> : vector<16xf32>
    %65 = vector.multi_reduction <maximumf>, %64, %cst_23 [1] : vector<16x16xf32> to vector<16xf32>
    %66 = vector.shape_cast %65 : vector<16xf32> to vector<16x1xf32>
    %67 = vector.broadcast %66 : vector<16x1xf32> to vector<16x16xf32>
    %68 = arith.subf %64, %67 : vector<16x16xf32>
    %69 = math.exp %68 : vector<16x16xf32>
    %cst_24 = arith.constant dense<0.000000e+00> : vector<16xf32>
    %70 = vector.multi_reduction <add>, %69, %cst_24 [1] : vector<16x16xf32> to vector<16xf32>
    %71 = vector.shape_cast %70 : vector<16xf32> to vector<16x1xf32>
    %72 = tpu.reciprocal %71 {approx = true} : vector<16x1xf32> -> vector<16x1xf32>
    %73 = vector.broadcast %72 : vector<16x1xf32> to vector<16x16xf32>
    %74 = arith.mulf %69, %73 : vector<16x16xf32>
    %75 = vector.extract_strided_slice %34 {offsets = [0, 32], sizes = [16, 32], strides = [1, 1]} : vector<16x128xf32> to vector<16x32xf32>
    %76 = arith.truncf %74 : vector<16x16xf32> to vector<16x16xbf16>
    %77 = arith.truncf %75 : vector<16x32xf32> to vector<16x32xbf16>
    %cst_25 = arith.constant dense<0.000000e+00> : vector<16x32xf32>
    %78 = tpu.matmul %76, %77, %cst_25 {dimension_numbers = #tpu.dot_dimension_numbers<[1], [0], [0], [1], [0, 0, 1, 1], [], []>} : vector<16x16xbf16>, vector<16x32xbf16>, vector<16x32xf32> -> vector<16x32xf32>
    %79 = vector.extract_strided_slice %32 {offsets = [0, 64], sizes = [16, 32], strides = [1, 1]} : vector<16x128xf32> to vector<16x32xf32>
    %80 = vector.extract_strided_slice %33 {offsets = [0, 64], sizes = [16, 32], strides = [1, 1]} : vector<16x128xf32> to vector<16x32xf32>
    %81 = arith.truncf %79 : vector<16x32xf32> to vector<16x32xbf16>
    %82 = arith.truncf %80 : vector<16x32xf32> to vector<16x32xbf16>
    %cst_26 = arith.constant dense<0.000000e+00> : vector<16x16xf32>
    %83 = tpu.matmul %81, %82, %cst_26 {dimension_numbers = #tpu.dot_dimension_numbers<[1], [1], [0], [0], [0, 0, 1, 0], [], []>} : vector<16x32xbf16>, vector<16x32xbf16>, vector<16x16xf32> -> vector<16x16xf32>
    %cst_27 = arith.constant 0.176776692 : f32
    %84 = vector.broadcast %cst_27 : f32 to vector<16x16xf32>
    %85 = arith.mulf %83, %84 : vector<16x16xf32>
    %86 = arith.addf %85, %25 : vector<16x16xf32>
    %cst_28 = arith.constant dense<0xFF800000> : vector<16xf32>
    %87 = vector.multi_reduction <maximumf>, %86, %cst_28 [1] : vector<16x16xf32> to vector<16xf32>
    %88 = vector.shape_cast %87 : vector<16xf32> to vector<16x1xf32>
    %89 = vector.broadcast %88 : vector<16x1xf32> to vector<16x16xf32>
    %90 = arith.subf %86, %89 : vector<16x16xf32>
    %91 = math.exp %90 : vector<16x16xf32>
    %cst_29 = arith.constant dense<0.000000e+00> : vector<16xf32>
    %92 = vector.multi_reduction <add>, %91, %cst_29 [1] : vector<16x16xf32> to vector<16xf32>
    %93 = vector.shape_cast %92 : vector<16xf32> to vector<16x1xf32>
    %94 = tpu.reciprocal %93 {approx = true} : vector<16x1xf32> -> vector<16x1xf32>
    %95 = vector.broadcast %94 : vector<16x1xf32> to vector<16x16xf32>
    %96 = arith.mulf %91, %95 : vector<16x16xf32>
    %97 = vector.extract_strided_slice %34 {offsets = [0, 64], sizes = [16, 32], strides = [1, 1]} : vector<16x128xf32> to vector<16x32xf32>
    %98 = arith.truncf %96 : vector<16x16xf32> to vector<16x16xbf16>
    %99 = arith.truncf %97 : vector<16x32xf32> to vector<16x32xbf16>
    %cst_30 = arith.constant dense<0.000000e+00> : vector<16x32xf32>
    %100 = tpu.matmul %98, %99, %cst_30 {dimension_numbers = #tpu.dot_dimension_numbers<[1], [0], [0], [1], [0, 0, 1, 1], [], []>} : vector<16x16xbf16>, vector<16x32xbf16>, vector<16x32xf32> -> vector<16x32xf32>
    %101 = vector.extract_strided_slice %32 {offsets = [0, 96], sizes = [16, 32], strides = [1, 1]} : vector<16x128xf32> to vector<16x32xf32>
    %102 = vector.extract_strided_slice %33 {offsets = [0, 96], sizes = [16, 32], strides = [1, 1]} : vector<16x128xf32> to vector<16x32xf32>
    %103 = arith.truncf %101 : vector<16x32xf32> to vector<16x32xbf16>
    %104 = arith.truncf %102 : vector<16x32xf32> to vector<16x32xbf16>
    %cst_31 = arith.constant dense<0.000000e+00> : vector<16x16xf32>
    %105 = tpu.matmul %103, %104, %cst_31 {dimension_numbers = #tpu.dot_dimension_numbers<[1], [1], [0], [0], [0, 0, 1, 0], [], []>} : vector<16x32xbf16>, vector<16x32xbf16>, vector<16x16xf32> -> vector<16x16xf32>
    %cst_32 = arith.constant 0.176776692 : f32
    %106 = vector.broadcast %cst_32 : f32 to vector<16x16xf32>
    %107 = arith.mulf %105, %106 : vector<16x16xf32>
    %108 = arith.addf %107, %25 : vector<16x16xf32>
    %cst_33 = arith.constant dense<0xFF800000> : vector<16xf32>
    %109 = vector.multi_reduction <maximumf>, %108, %cst_33 [1] : vector<16x16xf32> to vector<16xf32>
    %110 = vector.shape_cast %109 : vector<16xf32> to vector<16x1xf32>
    %111 = vector.broadcast %110 : vector<16x1xf32> to vector<16x16xf32>
    %112 = arith.subf %108, %111 : vector<16x16xf32>
    %113 = math.exp %112 : vector<16x16xf32>
    %cst_34 = arith.constant dense<0.000000e+00> : vector<16xf32>
    %114 = vector.multi_reduction <add>, %113, %cst_34 [1] : vector<16x16xf32> to vector<16xf32>
    %115 = vector.shape_cast %114 : vector<16xf32> to vector<16x1xf32>
    %116 = tpu.reciprocal %115 {approx = true} : vector<16x1xf32> -> vector<16x1xf32>
    %117 = vector.broadcast %116 : vector<16x1xf32> to vector<16x16xf32>
    %118 = arith.mulf %113, %117 : vector<16x16xf32>
    %119 = vector.extract_strided_slice %34 {offsets = [0, 96], sizes = [16, 32], strides = [1, 1]} : vector<16x128xf32> to vector<16x32xf32>
    %120 = arith.truncf %118 : vector<16x16xf32> to vector<16x16xbf16>
    %121 = arith.truncf %119 : vector<16x32xf32> to vector<16x32xbf16>
    %cst_35 = arith.constant dense<0.000000e+00> : vector<16x32xf32>
    %122 = tpu.matmul %120, %121, %cst_35 {dimension_numbers = #tpu.dot_dimension_numbers<[1], [0], [0], [1], [0, 0, 1, 1], [], []>} : vector<16x16xbf16>, vector<16x32xbf16>, vector<16x32xf32> -> vector<16x32xf32>
    %123 = tpu.concatenate %56, %78, %100, %122 in 1 : vector<16x32xf32>, vector<16x32xf32>, vector<16x32xf32>, vector<16x32xf32> -> vector<16x128xf32>
    %c0_36 = arith.constant 0 : index
    %c0_37 = arith.constant 0 : index
    %124 = vector.load %arg12[%c0_36, %c0_37] : memref<128x128xbf16, #tpu.memory_space<vmem>>, vector<128x128xbf16>
    %125 = arith.truncf %123 : vector<16x128xf32> to vector<16x128xbf16>
    %cst_38 = arith.constant dense<0.000000e+00> : vector<16x128xf32>
    %126 = tpu.matmul %125, %124, %cst_38 {dimension_numbers = #tpu.dot_dimension_numbers<[1], [0], [0], [1], [0, 0, 1, 1], [], []>} : vector<16x128xbf16>, vector<128x128xbf16>, vector<16x128xf32> -> vector<16x128xf32>
    %c0_39 = arith.constant 0 : index
    %c0_40 = arith.constant 0 : index
    %127 = vector.load %arg13[%c0_39, %c0_40] : memref<1x128xf32, #tpu.memory_space<vmem>>, vector<1x128xf32>
    %128 = vector.broadcast %127 : vector<1x128xf32> to vector<16x128xf32>
    %129 = arith.addf %126, %128 : vector<16x128xf32>
    %130 = arith.addf %24, %129 : vector<16x128xf32>
    %c0_41 = arith.constant 0 : index
    %c0_42 = arith.constant 0 : index
    %131 = vector.load %arg14[%c0_41, %c0_42] : memref<1x128xf32, #tpu.memory_space<vmem>>, vector<1x128xf32>
    %c0_43 = arith.constant 0 : index
    %c0_44 = arith.constant 0 : index
    %132 = vector.load %arg15[%c0_43, %c0_44] : memref<1x128xf32, #tpu.memory_space<vmem>>, vector<1x128xf32>
    %cst_45 = arith.constant dense<0.000000e+00> : vector<16xf32>
    %133 = vector.multi_reduction <add>, %130, %cst_45 [1] : vector<16x128xf32> to vector<16xf32>
    %134 = vector.shape_cast %133 : vector<16xf32> to vector<16x1xf32>
    %cst_46 = arith.constant 1.280000e+02 : f32
    %135 = vector.broadcast %cst_46 : f32 to vector<16x1xf32>
    %136 = arith.divf %134, %135 : vector<16x1xf32>
    %137 = vector.broadcast %136 : vector<16x1xf32> to vector<16x128xf32>
    %138 = arith.subf %130, %137 : vector<16x128xf32>
    %139 = arith.mulf %138, %138 : vector<16x128xf32>
    %cst_47 = arith.constant dense<0.000000e+00> : vector<16xf32>
    %140 = vector.multi_reduction <add>, %139, %cst_47 [1] : vector<16x128xf32> to vector<16xf32>
    %141 = vector.shape_cast %140 : vector<16xf32> to vector<16x1xf32>
    %cst_48 = arith.constant 1.280000e+02 : f32
    %142 = vector.broadcast %cst_48 : f32 to vector<16x1xf32>
    %143 = arith.divf %141, %142 : vector<16x1xf32>
    %144 = vector.broadcast %136 : vector<16x1xf32> to vector<16x128xf32>
    %145 = arith.subf %130, %144 : vector<16x128xf32>
    %cst_49 = arith.constant 9.99999996E-13 : f32
    %146 = vector.broadcast %cst_49 : f32 to vector<16x1xf32>
    %147 = arith.addf %143, %146 : vector<16x1xf32>
    %148 = math.rsqrt %147 : vector<16x1xf32>
    %149 = vector.broadcast %148 : vector<16x1xf32> to vector<16x128xf32>
    %150 = arith.mulf %145, %149 : vector<16x128xf32>
    %151 = vector.broadcast %131 : vector<1x128xf32> to vector<16x128xf32>
    %152 = arith.mulf %150, %151 : vector<16x128xf32>
    %153 = vector.broadcast %132 : vector<1x128xf32> to vector<16x128xf32>
    %154 = arith.addf %152, %153 : vector<16x128xf32>
    %c0_50 = arith.constant 0 : index
    %c0_51 = arith.constant 0 : index
    %155 = vector.load %arg16[%c0_50, %c0_51] : memref<128x256xbf16, #tpu.memory_space<vmem>>, vector<128x256xbf16>
    %156 = arith.truncf %154 : vector<16x128xf32> to vector<16x128xbf16>
    %cst_52 = arith.constant dense<0.000000e+00> : vector<16x256xf32>
    %157 = tpu.matmul %156, %155, %cst_52 {dimension_numbers = #tpu.dot_dimension_numbers<[1], [0], [0], [1], [0, 0, 1, 1], [], []>} : vector<16x128xbf16>, vector<128x256xbf16>, vector<16x256xf32> -> vector<16x256xf32>
    %c0_53 = arith.constant 0 : index
    %c0_54 = arith.constant 0 : index
    %158 = vector.load %arg17[%c0_53, %c0_54] : memref<1x256xf32, #tpu.memory_space<vmem>>, vector<1x256xf32>
    %159 = vector.broadcast %158 : vector<1x256xf32> to vector<16x256xf32>
    %160 = arith.addf %157, %159 : vector<16x256xf32>
    %cst_55 = arith.constant 5.000000e-01 : f32
    %161 = vector.broadcast %cst_55 : f32 to vector<16x256xf32>
    %162 = arith.mulf %161, %160 : vector<16x256xf32>
    %cst_56 = arith.constant 4.471500e-02 : f32
    %163 = vector.broadcast %cst_56 : f32 to vector<16x256xf32>
    %164 = arith.mulf %163, %160 : vector<16x256xf32>
    %165 = arith.mulf %164, %160 : vector<16x256xf32>
    %166 = arith.mulf %165, %160 : vector<16x256xf32>
    %167 = arith.addf %160, %166 : vector<16x256xf32>
    %cst_57 = arith.constant 0.797884583 : f32
    %168 = vector.broadcast %cst_57 : f32 to vector<16x256xf32>
    %169 = arith.mulf %168, %167 : vector<16x256xf32>
    %170 = math.tanh %169 : vector<16x256xf32>
    %cst_58 = arith.constant 1.000000e+00 : f32
    %171 = vector.broadcast %cst_58 : f32 to vector<16x256xf32>
    %172 = arith.addf %171, %170 : vector<16x256xf32>
    %173 = arith.mulf %162, %172 : vector<16x256xf32>
    %c0_59 = arith.constant 0 : index
    %c0_60 = arith.constant 0 : index
    %174 = vector.load %arg18[%c0_59, %c0_60] : memref<256x128xbf16, #tpu.memory_space<vmem>>, vector<256x128xbf16>
    %175 = arith.truncf %173 : vector<16x256xf32> to vector<16x256xbf16>
    %cst_61 = arith.constant dense<0.000000e+00> : vector<16x128xf32>
    %176 = tpu.matmul %175, %174, %cst_61 {dimension_numbers = #tpu.dot_dimension_numbers<[1], [0], [0], [1], [0, 0, 1, 1], [], []>} : vector<16x256xbf16>, vector<256x128xbf16>, vector<16x128xf32> -> vector<16x128xf32>
    %c0_62 = arith.constant 0 : index
    %c0_63 = arith.constant 0 : index
    %177 = vector.load %arg19[%c0_62, %c0_63] : memref<1x128xf32, #tpu.memory_space<vmem>>, vector<1x128xf32>
    %178 = vector.broadcast %177 : vector<1x128xf32> to vector<16x128xf32>
    %179 = arith.addf %176, %178 : vector<16x128xf32>
    %180 = arith.addf %154, %179 : vector<16x128xf32>
    %c0_64 = arith.constant 0 : index
    %c0_65 = arith.constant 0 : index
    %181 = vector.load %arg20[%c0_64, %c0_65] : memref<1x128xf32, #tpu.memory_space<vmem>>, vector<1x128xf32>
    %c0_66 = arith.constant 0 : index
    %c0_67 = arith.constant 0 : index
    %182 = vector.load %arg21[%c0_66, %c0_67] : memref<1x128xf32, #tpu.memory_space<vmem>>, vector<1x128xf32>
    %cst_68 = arith.constant dense<0.000000e+00> : vector<16xf32>
    %183 = vector.multi_reduction <add>, %180, %cst_68 [1] : vector<16x128xf32> to vector<16xf32>
    %184 = vector.shape_cast %183 : vector<16xf32> to vector<16x1xf32>
    %cst_69 = arith.constant 1.280000e+02 : f32
    %185 = vector.broadcast %cst_69 : f32 to vector<16x1xf32>
    %186 = arith.divf %184, %185 : vector<16x1xf32>
    %187 = vector.broadcast %186 : vector<16x1xf32> to vector<16x128xf32>
    %188 = arith.subf %180, %187 : vector<16x128xf32>
    %189 = arith.mulf %188, %188 : vector<16x128xf32>
    %cst_70 = arith.constant dense<0.000000e+00> : vector<16xf32>
    %190 = vector.multi_reduction <add>, %189, %cst_70 [1] : vector<16x128xf32> to vector<16xf32>
    %191 = vector.shape_cast %190 : vector<16xf32> to vector<16x1xf32>
    %cst_71 = arith.constant 1.280000e+02 : f32
    %192 = vector.broadcast %cst_71 : f32 to vector<16x1xf32>
    %193 = arith.divf %191, %192 : vector<16x1xf32>
    %194 = vector.broadcast %186 : vector<16x1xf32> to vector<16x128xf32>
    %195 = arith.subf %180, %194 : vector<16x128xf32>
    %cst_72 = arith.constant 9.99999996E-13 : f32
    %196 = vector.broadcast %cst_72 : f32 to vector<16x1xf32>
    %197 = arith.addf %193, %196 : vector<16x1xf32>
    %198 = math.rsqrt %197 : vector<16x1xf32>
    %199 = vector.broadcast %198 : vector<16x1xf32> to vector<16x128xf32>
    %200 = arith.mulf %195, %199 : vector<16x128xf32>
    %201 = vector.broadcast %181 : vector<1x128xf32> to vector<16x128xf32>
    %202 = arith.mulf %200, %201 : vector<16x128xf32>
    %203 = vector.broadcast %182 : vector<1x128xf32> to vector<16x128xf32>
    %204 = arith.addf %202, %203 : vector<16x128xf32>
    %c0_73 = arith.constant 0 : index
    %c0_74 = arith.constant 0 : index
    %205 = vector.load %arg22[%c0_73, %c0_74] : memref<128x384xbf16, #tpu.memory_space<vmem>>, vector<128x384xbf16>
    %206 = arith.truncf %204 : vector<16x128xf32> to vector<16x128xbf16>
    %cst_75 = arith.constant dense<0.000000e+00> : vector<16x384xf32>
    %207 = tpu.matmul %206, %205, %cst_75 {dimension_numbers = #tpu.dot_dimension_numbers<[1], [0], [0], [1], [0, 0, 1, 1], [], []>} : vector<16x128xbf16>, vector<128x384xbf16>, vector<16x384xf32> -> vector<16x384xf32>
    %c0_76 = arith.constant 0 : index
    %c0_77 = arith.constant 0 : index
    %208 = vector.load %arg23[%c0_76, %c0_77] : memref<1x384xf32, #tpu.memory_space<vmem>>, vector<1x384xf32>
    %209 = vector.broadcast %208 : vector<1x384xf32> to vector<16x384xf32>
    %210 = arith.addf %207, %209 : vector<16x384xf32>
    %211 = vector.extract_strided_slice %210 {offsets = [0, 0], sizes = [16, 128], strides = [1, 1]} : vector<16x384xf32> to vector<16x128xf32>
    %212 = vector.extract_strided_slice %210 {offsets = [0, 128], sizes = [16, 128], strides = [1, 1]} : vector<16x384xf32> to vector<16x128xf32>
    %213 = vector.extract_strided_slice %210 {offsets = [0, 256], sizes = [16, 128], strides = [1, 1]} : vector<16x384xf32> to vector<16x128xf32>
    %214 = vector.extract_strided_slice %211 {offsets = [0, 0], sizes = [16, 32], strides = [1, 1]} : vector<16x128xf32> to vector<16x32xf32>
    %215 = vector.extract_strided_slice %212 {offsets = [0, 0], sizes = [16, 32], strides = [1, 1]} : vector<16x128xf32> to vector<16x32xf32>
    %216 = arith.truncf %214 : vector<16x32xf32> to vector<16x32xbf16>
    %217 = arith.truncf %215 : vector<16x32xf32> to vector<16x32xbf16>
    %cst_78 = arith.constant dense<0.000000e+00> : vector<16x16xf32>
    %218 = tpu.matmul %216, %217, %cst_78 {dimension_numbers = #tpu.dot_dimension_numbers<[1], [1], [0], [0], [0, 0, 1, 0], [], []>} : vector<16x32xbf16>, vector<16x32xbf16>, vector<16x16xf32> -> vector<16x16xf32>
    %cst_79 = arith.constant 0.176776692 : f32
    %219 = vector.broadcast %cst_79 : f32 to vector<16x16xf32>
    %220 = arith.mulf %218, %219 : vector<16x16xf32>
    %221 = arith.addf %220, %25 : vector<16x16xf32>
    %cst_80 = arith.constant dense<0xFF800000> : vector<16xf32>
    %222 = vector.multi_reduction <maximumf>, %221, %cst_80 [1] : vector<16x16xf32> to vector<16xf32>
    %223 = vector.shape_cast %222 : vector<16xf32> to vector<16x1xf32>
    %224 = vector.broadcast %223 : vector<16x1xf32> to vector<16x16xf32>
    %225 = arith.subf %221, %224 : vector<16x16xf32>
    %226 = math.exp %225 : vector<16x16xf32>
    %cst_81 = arith.constant dense<0.000000e+00> : vector<16xf32>
    %227 = vector.multi_reduction <add>, %226, %cst_81 [1] : vector<16x16xf32> to vector<16xf32>
    %228 = vector.shape_cast %227 : vector<16xf32> to vector<16x1xf32>
    %229 = tpu.reciprocal %228 {approx = true} : vector<16x1xf32> -> vector<16x1xf32>
    %230 = vector.broadcast %229 : vector<16x1xf32> to vector<16x16xf32>
    %231 = arith.mulf %226, %230 : vector<16x16xf32>
    %232 = vector.extract_strided_slice %213 {offsets = [0, 0], sizes = [16, 32], strides = [1, 1]} : vector<16x128xf32> to vector<16x32xf32>
    %233 = arith.truncf %231 : vector<16x16xf32> to vector<16x16xbf16>
    %234 = arith.truncf %232 : vector<16x32xf32> to vector<16x32xbf16>
    %cst_82 = arith.constant dense<0.000000e+00> : vector<16x32xf32>
    %235 = tpu.matmul %233, %234, %cst_82 {dimension_numbers = #tpu.dot_dimension_numbers<[1], [0], [0], [1], [0, 0, 1, 1], [], []>} : vector<16x16xbf16>, vector<16x32xbf16>, vector<16x32xf32> -> vector<16x32xf32>
    %236 = vector.extract_strided_slice %211 {offsets = [0, 32], sizes = [16, 32], strides = [1, 1]} : vector<16x128xf32> to vector<16x32xf32>
    %237 = vector.extract_strided_slice %212 {offsets = [0, 32], sizes = [16, 32], strides = [1, 1]} : vector<16x128xf32> to vector<16x32xf32>
    %238 = arith.truncf %236 : vector<16x32xf32> to vector<16x32xbf16>
    %239 = arith.truncf %237 : vector<16x32xf32> to vector<16x32xbf16>
    %cst_83 = arith.constant dense<0.000000e+00> : vector<16x16xf32>
    %240 = tpu.matmul %238, %239, %cst_83 {dimension_numbers = #tpu.dot_dimension_numbers<[1], [1], [0], [0], [0, 0, 1, 0], [], []>} : vector<16x32xbf16>, vector<16x32xbf16>, vector<16x16xf32> -> vector<16x16xf32>
    %cst_84 = arith.constant 0.176776692 : f32
    %241 = vector.broadcast %cst_84 : f32 to vector<16x16xf32>
    %242 = arith.mulf %240, %241 : vector<16x16xf32>
    %243 = arith.addf %242, %25 : vector<16x16xf32>
    %cst_85 = arith.constant dense<0xFF800000> : vector<16xf32>
    %244 = vector.multi_reduction <maximumf>, %243, %cst_85 [1] : vector<16x16xf32> to vector<16xf32>
    %245 = vector.shape_cast %244 : vector<16xf32> to vector<16x1xf32>
    %246 = vector.broadcast %245 : vector<16x1xf32> to vector<16x16xf32>
    %247 = arith.subf %243, %246 : vector<16x16xf32>
    %248 = math.exp %247 : vector<16x16xf32>
    %cst_86 = arith.constant dense<0.000000e+00> : vector<16xf32>
    %249 = vector.multi_reduction <add>, %248, %cst_86 [1] : vector<16x16xf32> to vector<16xf32>
    %250 = vector.shape_cast %249 : vector<16xf32> to vector<16x1xf32>
    %251 = tpu.reciprocal %250 {approx = true} : vector<16x1xf32> -> vector<16x1xf32>
    %252 = vector.broadcast %251 : vector<16x1xf32> to vector<16x16xf32>
    %253 = arith.mulf %248, %252 : vector<16x16xf32>
    %254 = vector.extract_strided_slice %213 {offsets = [0, 32], sizes = [16, 32], strides = [1, 1]} : vector<16x128xf32> to vector<16x32xf32>
    %255 = arith.truncf %253 : vector<16x16xf32> to vector<16x16xbf16>
    %256 = arith.truncf %254 : vector<16x32xf32> to vector<16x32xbf16>
    %cst_87 = arith.constant dense<0.000000e+00> : vector<16x32xf32>
    %257 = tpu.matmul %255, %256, %cst_87 {dimension_numbers = #tpu.dot_dimension_numbers<[1], [0], [0], [1], [0, 0, 1, 1], [], []>} : vector<16x16xbf16>, vector<16x32xbf16>, vector<16x32xf32> -> vector<16x32xf32>
    %258 = vector.extract_strided_slice %211 {offsets = [0, 64], sizes = [16, 32], strides = [1, 1]} : vector<16x128xf32> to vector<16x32xf32>
    %259 = vector.extract_strided_slice %212 {offsets = [0, 64], sizes = [16, 32], strides = [1, 1]} : vector<16x128xf32> to vector<16x32xf32>
    %260 = arith.truncf %258 : vector<16x32xf32> to vector<16x32xbf16>
    %261 = arith.truncf %259 : vector<16x32xf32> to vector<16x32xbf16>
    %cst_88 = arith.constant dense<0.000000e+00> : vector<16x16xf32>
    %262 = tpu.matmul %260, %261, %cst_88 {dimension_numbers = #tpu.dot_dimension_numbers<[1], [1], [0], [0], [0, 0, 1, 0], [], []>} : vector<16x32xbf16>, vector<16x32xbf16>, vector<16x16xf32> -> vector<16x16xf32>
    %cst_89 = arith.constant 0.176776692 : f32
    %263 = vector.broadcast %cst_89 : f32 to vector<16x16xf32>
    %264 = arith.mulf %262, %263 : vector<16x16xf32>
    %265 = arith.addf %264, %25 : vector<16x16xf32>
    %cst_90 = arith.constant dense<0xFF800000> : vector<16xf32>
    %266 = vector.multi_reduction <maximumf>, %265, %cst_90 [1] : vector<16x16xf32> to vector<16xf32>
    %267 = vector.shape_cast %266 : vector<16xf32> to vector<16x1xf32>
    %268 = vector.broadcast %267 : vector<16x1xf32> to vector<16x16xf32>
    %269 = arith.subf %265, %268 : vector<16x16xf32>
    %270 = math.exp %269 : vector<16x16xf32>
    %cst_91 = arith.constant dense<0.000000e+00> : vector<16xf32>
    %271 = vector.multi_reduction <add>, %270, %cst_91 [1] : vector<16x16xf32> to vector<16xf32>
    %272 = vector.shape_cast %271 : vector<16xf32> to vector<16x1xf32>
    %273 = tpu.reciprocal %272 {approx = true} : vector<16x1xf32> -> vector<16x1xf32>
    %274 = vector.broadcast %273 : vector<16x1xf32> to vector<16x16xf32>
    %275 = arith.mulf %270, %274 : vector<16x16xf32>
    %276 = vector.extract_strided_slice %213 {offsets = [0, 64], sizes = [16, 32], strides = [1, 1]} : vector<16x128xf32> to vector<16x32xf32>
    %277 = arith.truncf %275 : vector<16x16xf32> to vector<16x16xbf16>
    %278 = arith.truncf %276 : vector<16x32xf32> to vector<16x32xbf16>
    %cst_92 = arith.constant dense<0.000000e+00> : vector<16x32xf32>
    %279 = tpu.matmul %277, %278, %cst_92 {dimension_numbers = #tpu.dot_dimension_numbers<[1], [0], [0], [1], [0, 0, 1, 1], [], []>} : vector<16x16xbf16>, vector<16x32xbf16>, vector<16x32xf32> -> vector<16x32xf32>
    %280 = vector.extract_strided_slice %211 {offsets = [0, 96], sizes = [16, 32], strides = [1, 1]} : vector<16x128xf32> to vector<16x32xf32>
    %281 = vector.extract_strided_slice %212 {offsets = [0, 96], sizes = [16, 32], strides = [1, 1]} : vector<16x128xf32> to vector<16x32xf32>
    %282 = arith.truncf %280 : vector<16x32xf32> to vector<16x32xbf16>
    %283 = arith.truncf %281 : vector<16x32xf32> to vector<16x32xbf16>
    %cst_93 = arith.constant dense<0.000000e+00> : vector<16x16xf32>
    %284 = tpu.matmul %282, %283, %cst_93 {dimension_numbers = #tpu.dot_dimension_numbers<[1], [1], [0], [0], [0, 0, 1, 0], [], []>} : vector<16x32xbf16>, vector<16x32xbf16>, vector<16x16xf32> -> vector<16x16xf32>
    %cst_94 = arith.constant 0.176776692 : f32
    %285 = vector.broadcast %cst_94 : f32 to vector<16x16xf32>
    %286 = arith.mulf %284, %285 : vector<16x16xf32>
    %287 = arith.addf %286, %25 : vector<16x16xf32>
    %cst_95 = arith.constant dense<0xFF800000> : vector<16xf32>
    %288 = vector.multi_reduction <maximumf>, %287, %cst_95 [1] : vector<16x16xf32> to vector<16xf32>
    %289 = vector.shape_cast %288 : vector<16xf32> to vector<16x1xf32>
    %290 = vector.broadcast %289 : vector<16x1xf32> to vector<16x16xf32>
    %291 = arith.subf %287, %290 : vector<16x16xf32>
    %292 = math.exp %291 : vector<16x16xf32>
    %cst_96 = arith.constant dense<0.000000e+00> : vector<16xf32>
    %293 = vector.multi_reduction <add>, %292, %cst_96 [1] : vector<16x16xf32> to vector<16xf32>
    %294 = vector.shape_cast %293 : vector<16xf32> to vector<16x1xf32>
    %295 = tpu.reciprocal %294 {approx = true} : vector<16x1xf32> -> vector<16x1xf32>
    %296 = vector.broadcast %295 : vector<16x1xf32> to vector<16x16xf32>
    %297 = arith.mulf %292, %296 : vector<16x16xf32>
    %298 = vector.extract_strided_slice %213 {offsets = [0, 96], sizes = [16, 32], strides = [1, 1]} : vector<16x128xf32> to vector<16x32xf32>
    %299 = arith.truncf %297 : vector<16x16xf32> to vector<16x16xbf16>
    %300 = arith.truncf %298 : vector<16x32xf32> to vector<16x32xbf16>
    %cst_97 = arith.constant dense<0.000000e+00> : vector<16x32xf32>
    %301 = tpu.matmul %299, %300, %cst_97 {dimension_numbers = #tpu.dot_dimension_numbers<[1], [0], [0], [1], [0, 0, 1, 1], [], []>} : vector<16x16xbf16>, vector<16x32xbf16>, vector<16x32xf32> -> vector<16x32xf32>
    %302 = tpu.concatenate %235, %257, %279, %301 in 1 : vector<16x32xf32>, vector<16x32xf32>, vector<16x32xf32>, vector<16x32xf32> -> vector<16x128xf32>
    %c0_98 = arith.constant 0 : index
    %c0_99 = arith.constant 0 : index
    %303 = vector.load %arg24[%c0_98, %c0_99] : memref<128x128xbf16, #tpu.memory_space<vmem>>, vector<128x128xbf16>
    %304 = arith.truncf %302 : vector<16x128xf32> to vector<16x128xbf16>
    %cst_100 = arith.constant dense<0.000000e+00> : vector<16x128xf32>
    %305 = tpu.matmul %304, %303, %cst_100 {dimension_numbers = #tpu.dot_dimension_numbers<[1], [0], [0], [1], [0, 0, 1, 1], [], []>} : vector<16x128xbf16>, vector<128x128xbf16>, vector<16x128xf32> -> vector<16x128xf32>
    %c0_101 = arith.constant 0 : index
    %c0_102 = arith.constant 0 : index
    %306 = vector.load %arg25[%c0_101, %c0_102] : memref<1x128xf32, #tpu.memory_space<vmem>>, vector<1x128xf32>
    %307 = vector.broadcast %306 : vector<1x128xf32> to vector<16x128xf32>
    %308 = arith.addf %305, %307 : vector<16x128xf32>
    %309 = arith.addf %204, %308 : vector<16x128xf32>
    %c0_103 = arith.constant 0 : index
    %c0_104 = arith.constant 0 : index
    %310 = vector.load %arg26[%c0_103, %c0_104] : memref<1x128xf32, #tpu.memory_space<vmem>>, vector<1x128xf32>
    %c0_105 = arith.constant 0 : index
    %c0_106 = arith.constant 0 : index
    %311 = vector.load %arg27[%c0_105, %c0_106] : memref<1x128xf32, #tpu.memory_space<vmem>>, vector<1x128xf32>
    %cst_107 = arith.constant dense<0.000000e+00> : vector<16xf32>
    %312 = vector.multi_reduction <add>, %309, %cst_107 [1] : vector<16x128xf32> to vector<16xf32>
    %313 = vector.shape_cast %312 : vector<16xf32> to vector<16x1xf32>
    %cst_108 = arith.constant 1.280000e+02 : f32
    %314 = vector.broadcast %cst_108 : f32 to vector<16x1xf32>
    %315 = arith.divf %313, %314 : vector<16x1xf32>
    %316 = vector.broadcast %315 : vector<16x1xf32> to vector<16x128xf32>
    %317 = arith.subf %309, %316 : vector<16x128xf32>
    %318 = arith.mulf %317, %317 : vector<16x128xf32>
    %cst_109 = arith.constant dense<0.000000e+00> : vector<16xf32>
    %319 = vector.multi_reduction <add>, %318, %cst_109 [1] : vector<16x128xf32> to vector<16xf32>
    %320 = vector.shape_cast %319 : vector<16xf32> to vector<16x1xf32>
    %cst_110 = arith.constant 1.280000e+02 : f32
    %321 = vector.broadcast %cst_110 : f32 to vector<16x1xf32>
    %322 = arith.divf %320, %321 : vector<16x1xf32>
    %323 = vector.broadcast %315 : vector<16x1xf32> to vector<16x128xf32>
    %324 = arith.subf %309, %323 : vector<16x128xf32>
    %cst_111 = arith.constant 9.99999996E-13 : f32
    %325 = vector.broadcast %cst_111 : f32 to vector<16x1xf32>
    %326 = arith.addf %322, %325 : vector<16x1xf32>
    %327 = math.rsqrt %326 : vector<16x1xf32>
    %328 = vector.broadcast %327 : vector<16x1xf32> to vector<16x128xf32>
    %329 = arith.mulf %324, %328 : vector<16x128xf32>
    %330 = vector.broadcast %310 : vector<1x128xf32> to vector<16x128xf32>
    %331 = arith.mulf %329, %330 : vector<16x128xf32>
    %332 = vector.broadcast %311 : vector<1x128xf32> to vector<16x128xf32>
    %333 = arith.addf %331, %332 : vector<16x128xf32>
    %c0_112 = arith.constant 0 : index
    %c0_113 = arith.constant 0 : index
    %334 = vector.load %arg28[%c0_112, %c0_113] : memref<128x256xbf16, #tpu.memory_space<vmem>>, vector<128x256xbf16>
    %335 = arith.truncf %333 : vector<16x128xf32> to vector<16x128xbf16>
    %cst_114 = arith.constant dense<0.000000e+00> : vector<16x256xf32>
    %336 = tpu.matmul %335, %334, %cst_114 {dimension_numbers = #tpu.dot_dimension_numbers<[1], [0], [0], [1], [0, 0, 1, 1], [], []>} : vector<16x128xbf16>, vector<128x256xbf16>, vector<16x256xf32> -> vector<16x256xf32>
    %c0_115 = arith.constant 0 : index
    %c0_116 = arith.constant 0 : index
    %337 = vector.load %arg29[%c0_115, %c0_116] : memref<1x256xf32, #tpu.memory_space<vmem>>, vector<1x256xf32>
    %338 = vector.broadcast %337 : vector<1x256xf32> to vector<16x256xf32>
    %339 = arith.addf %336, %338 : vector<16x256xf32>
    %cst_117 = arith.constant 5.000000e-01 : f32
    %340 = vector.broadcast %cst_117 : f32 to vector<16x256xf32>
    %341 = arith.mulf %340, %339 : vector<16x256xf32>
    %cst_118 = arith.constant 4.471500e-02 : f32
    %342 = vector.broadcast %cst_118 : f32 to vector<16x256xf32>
    %343 = arith.mulf %342, %339 : vector<16x256xf32>
    %344 = arith.mulf %343, %339 : vector<16x256xf32>
    %345 = arith.mulf %344, %339 : vector<16x256xf32>
    %346 = arith.addf %339, %345 : vector<16x256xf32>
    %cst_119 = arith.constant 0.797884583 : f32
    %347 = vector.broadcast %cst_119 : f32 to vector<16x256xf32>
    %348 = arith.mulf %347, %346 : vector<16x256xf32>
    %349 = math.tanh %348 : vector<16x256xf32>
    %cst_120 = arith.constant 1.000000e+00 : f32
    %350 = vector.broadcast %cst_120 : f32 to vector<16x256xf32>
    %351 = arith.addf %350, %349 : vector<16x256xf32>
    %352 = arith.mulf %341, %351 : vector<16x256xf32>
    %c0_121 = arith.constant 0 : index
    %c0_122 = arith.constant 0 : index
    %353 = vector.load %arg30[%c0_121, %c0_122] : memref<256x128xbf16, #tpu.memory_space<vmem>>, vector<256x128xbf16>
    %354 = arith.truncf %352 : vector<16x256xf32> to vector<16x256xbf16>
    %cst_123 = arith.constant dense<0.000000e+00> : vector<16x128xf32>
    %355 = tpu.matmul %354, %353, %cst_123 {dimension_numbers = #tpu.dot_dimension_numbers<[1], [0], [0], [1], [0, 0, 1, 1], [], []>} : vector<16x256xbf16>, vector<256x128xbf16>, vector<16x128xf32> -> vector<16x128xf32>
    %c0_124 = arith.constant 0 : index
    %c0_125 = arith.constant 0 : index
    %356 = vector.load %arg31[%c0_124, %c0_125] : memref<1x128xf32, #tpu.memory_space<vmem>>, vector<1x128xf32>
    %357 = vector.broadcast %356 : vector<1x128xf32> to vector<16x128xf32>
    %358 = arith.addf %355, %357 : vector<16x128xf32>
    %359 = arith.addf %333, %358 : vector<16x128xf32>
    %c0_126 = arith.constant 0 : index
    %c0_127 = arith.constant 0 : index
    %360 = vector.load %arg32[%c0_126, %c0_127] : memref<1x128xf32, #tpu.memory_space<vmem>>, vector<1x128xf32>
    %c0_128 = arith.constant 0 : index
    %c0_129 = arith.constant 0 : index
    %361 = vector.load %arg33[%c0_128, %c0_129] : memref<1x128xf32, #tpu.memory_space<vmem>>, vector<1x128xf32>
    %cst_130 = arith.constant dense<0.000000e+00> : vector<16xf32>
    %362 = vector.multi_reduction <add>, %359, %cst_130 [1] : vector<16x128xf32> to vector<16xf32>
    %363 = vector.shape_cast %362 : vector<16xf32> to vector<16x1xf32>
    %cst_131 = arith.constant 1.280000e+02 : f32
    %364 = vector.broadcast %cst_131 : f32 to vector<16x1xf32>
    %365 = arith.divf %363, %364 : vector<16x1xf32>
    %366 = vector.broadcast %365 : vector<16x1xf32> to vector<16x128xf32>
    %367 = arith.subf %359, %366 : vector<16x128xf32>
    %368 = arith.mulf %367, %367 : vector<16x128xf32>
    %cst_132 = arith.constant dense<0.000000e+00> : vector<16xf32>
    %369 = vector.multi_reduction <add>, %368, %cst_132 [1] : vector<16x128xf32> to vector<16xf32>
    %370 = vector.shape_cast %369 : vector<16xf32> to vector<16x1xf32>
    %cst_133 = arith.constant 1.280000e+02 : f32
    %371 = vector.broadcast %cst_133 : f32 to vector<16x1xf32>
    %372 = arith.divf %370, %371 : vector<16x1xf32>
    %373 = vector.broadcast %365 : vector<16x1xf32> to vector<16x128xf32>
    %374 = arith.subf %359, %373 : vector<16x128xf32>
    %cst_134 = arith.constant 9.99999996E-13 : f32
    %375 = vector.broadcast %cst_134 : f32 to vector<16x1xf32>
    %376 = arith.addf %372, %375 : vector<16x1xf32>
    %377 = math.rsqrt %376 : vector<16x1xf32>
    %378 = vector.broadcast %377 : vector<16x1xf32> to vector<16x128xf32>
    %379 = arith.mulf %374, %378 : vector<16x128xf32>
    %380 = vector.broadcast %360 : vector<1x128xf32> to vector<16x128xf32>
    %381 = arith.mulf %379, %380 : vector<16x128xf32>
    %382 = vector.broadcast %361 : vector<1x128xf32> to vector<16x128xf32>
    %383 = arith.addf %381, %382 : vector<16x128xf32>
    %c0_135 = arith.constant 0 : index
    %c0_136 = arith.constant 0 : index
    %384 = vector.load %arg4[%c0_135, %c0_136] : memref<128x128xbf16, #tpu.memory_space<vmem>>, vector<128x128xbf16>
    %385 = arith.truncf %383 : vector<16x128xf32> to vector<16x128xbf16>
    %cst_137 = arith.constant dense<0.000000e+00> : vector<16x128xf32>
    %386 = tpu.matmul %385, %384, %cst_137 {dimension_numbers = #tpu.dot_dimension_numbers<[1], [0], [0], [1], [0, 0, 1, 1], [], []>} : vector<16x128xbf16>, vector<128x128xbf16>, vector<16x128xf32> -> vector<16x128xf32>
    %c0_138 = arith.constant 0 : index
    %c0_139 = arith.constant 0 : index
    %387 = vector.load %arg5[%c0_138, %c0_139] : memref<1x128xf32, #tpu.memory_space<vmem>>, vector<1x128xf32>
    %388 = vector.broadcast %387 : vector<1x128xf32> to vector<16x128xf32>
    %389 = arith.addf %386, %388 : vector<16x128xf32>
    %390 = math.tanh %389 : vector<16x128xf32>
    %c0_140 = arith.constant 0 : index
    %c0_141 = arith.constant 0 : index
    %391 = vector.load %arg6[%c0_140, %c0_141] : memref<128x128xbf16, #tpu.memory_space<vmem>>, vector<128x128xbf16>
    %392 = arith.truncf %390 : vector<16x128xf32> to vector<16x128xbf16>
    %cst_142 = arith.constant dense<0.000000e+00> : vector<16x128xf32>
    %393 = tpu.matmul %392, %391, %cst_142 {dimension_numbers = #tpu.dot_dimension_numbers<[1], [0], [0], [1], [0, 0, 1, 1], [], []>} : vector<16x128xbf16>, vector<128x128xbf16>, vector<16x128xf32> -> vector<16x128xf32>
    %c0_143 = arith.constant 0 : index
    %c0_144 = arith.constant 0 : index
    %394 = vector.load %arg7[%c0_143, %c0_144] : memref<1x128xf32, #tpu.memory_space<vmem>>, vector<1x128xf32>
    %395 = vector.broadcast %394 : vector<1x128xf32> to vector<16x128xf32>
    %396 = arith.addf %393, %395 : vector<16x128xf32>
    %cst_145 = arith.constant 0.000000e+00 : f32
    %397 = vector.broadcast %cst_145 : f32 to vector<16x128xf32>
    %398 = arith.maximumf %396, %397 : vector<16x128xf32>
    %c0_146 = arith.constant 0 : index
    %c0_147 = arith.constant 0 : index
    %399 = vector.load %arg8[%c0_146, %c0_147] : memref<128x128xbf16, #tpu.memory_space<vmem>>, vector<128x128xbf16>
    %400 = arith.truncf %398 : vector<16x128xf32> to vector<16x128xbf16>
    %cst_148 = arith.constant dense<0.000000e+00> : vector<16x128xf32>
    %401 = tpu.matmul %400, %399, %cst_148 {dimension_numbers = #tpu.dot_dimension_numbers<[1], [0], [0], [1], [0, 0, 1, 1], [], []>} : vector<16x128xbf16>, vector<128x128xbf16>, vector<16x128xf32> -> vector<16x128xf32>
    %c0_149 = arith.constant 0 : index
    %c0_150 = arith.constant 0 : index
    %402 = vector.load %arg9[%c0_149, %c0_150] : memref<1x128xf32, #tpu.memory_space<vmem>>, vector<1x128xf32>
    %403 = vector.broadcast %402 : vector<1x128xf32> to vector<16x128xf32>
    %404 = arith.addf %401, %403 : vector<16x128xf32>
    %cst_151 = arith.constant 0.000000e+00 : f32
    %405 = vector.broadcast %cst_151 : f32 to vector<16x128xf32>
    %406 = arith.subf %405, %404 : vector<16x128xf32>
    %407 = math.exp %406 : vector<16x128xf32>
    %cst_152 = arith.constant 1.000000e+00 : f32
    %408 = vector.broadcast %cst_152 : f32 to vector<16x128xf32>
    %409 = arith.addf %408, %407 : vector<16x128xf32>
    %cst_153 = arith.constant 1.000000e+00 : f32
    %410 = vector.broadcast %cst_153 : f32 to vector<16x128xf32>
    %411 = arith.divf %410, %409 : vector<16x128xf32>
    %c0_154 = arith.constant 0 : index
    %c0_155 = arith.constant 0 : index
    %412 = vector.load %arg34[%c0_154, %c0_155] : memref<16x128xf32, #tpu.memory_space<vmem>>, vector<16x128xf32>
    tpu.vector_store %arg34[%c0_154, %c0_155], %411 {strides = array<i32>} : memref<16x128xf32, #tpu.memory_space<vmem>>, vector<16x128xf32>,
    return
  }
}

</mosaic_0001>

<bundles_post_ra>
// kernel: tpu_custom_call.1
= control target key start
LH: loop header
LB: loop body
LE: loop exit
PB: predicated region body
PF: predicated region fallthrough
CT: control target
= control target key end

     0   :  { %s4760_s6 = smov 1   ;;  %s4761_s10 = smov 2   ;;  %s5468_s0 = inlined_call_operand.smem [shape: u32[35], index: -1, kind: input, shape index: {}] }
   0x1   :  { %s4827_s5 = sld [smem:[%s5468_s0]]   ;;  %s4762_s14 = smov 3  }
   0x2   :  { %s4832_s9 = sld [smem:[%s5468_s0 + %s4760_s6]]   ;;  %s4763_s18 = smov 4  }
   0x3   :  { %s4837_s13 = sld [smem:[%s5468_s0 + %s4761_s10]]   ;;  %s4764_s22 = smov 5  }
   0x4   :  { %s4842_s17 = sld [smem:[%s5468_s0 + %s4762_s14]]   ;;  %s4765_s26 = smov 6  }
   0x5   :  { %s4847_s21 = sld [smem:[%s5468_s0 + %s4763_s18]]   ;;  %s4766_s30 = smov 7  }
   0x6   :  { %s4852_s25 = sld [smem:[%s5468_s0 + %s4764_s22]]   ;;  %s4767_s4 = smov 8  }
   0x7   :  { %s4857_s29 = sld [smem:[%s5468_s0 + %s4765_s26]]   ;;  %s4768_s10 = smov 9  }
   0x8   :  { %s4862_s3 = sld [smem:[%s5468_s0 + %s4766_s30]]   ;;  %s4769_s15 = smov 10  }
   0x9   :  { %s4867_s8 = sld [smem:[%s5468_s0 + %s4767_s4]]   ;;  %s4770_s20 = smov 11  }
   0xa   :  { %s4872_s14 = sld [smem:[%s5468_s0 + %s4768_s10]]   ;;  %s4771_s26 = smov 12  }
   0xb   :  { %s4877_s19 = sld [smem:[%s5468_s0 + %s4769_s15]]   ;;  %s4772_s1 = smov 13  }
   0xc   :  { %5470 = sst [smem:[#allocation32_spill]] %s4852_s25  ;;  %s4773_s7 = smov 14  }
   0xd   :  { %s4882_s24 = sld [smem:[%s5468_s0 + %s4770_s20]]   ;;  %s4774_s15 = smov 15  }
   0xe   :  { %5471 = sst [smem:[#allocation33_spill]] %s4862_s3  ;;  %s4775_s22 = smov 16  }
   0xf   :  { %s4887_s30 = sld [smem:[%s5468_s0 + %s4771_s26]]   ;;  %s4776_s28 = smov 17  }
  0x10   :  { %5472 = sst [smem:[#allocation34_spill]] %s4872_s14 }
  0x11   :  { %s4892_s6 = sld [smem:[%s5468_s0 + %s4772_s1]]  }
  0x12   :  { %s4897_s12 = sld [smem:[%s5468_s0 + %s4773_s7]]   ;;  %s4777_s7 = smov 18  }
  0x13   :  { %5473 = sst [smem:[#allocation35_spill]] %s4882_s24 }
  0x14   :  { %s4902_s20 = sld [smem:[%s5468_s0 + %s4774_s15]]   ;;  %s4778_s15 = smov 19  }
  0x15   :  { %s4907_s27 = sld [smem:[%s5468_s0 + %s4775_s22]]   ;;  %s4779_s22 = smov 20  }
  0x16   :  { %s4912_s4 = sld [smem:[%s5468_s0 + %s4776_s28]]   ;;  %s4780_s28 = smov 21  }
  0x17   :  { %5474 = sst [smem:[#allocation36_spill]] %s4892_s6 }
  0x18   :  { %5475 = sst [smem:[#allocation37_spill]] %s4897_s12 }
  0x19   :  { %s4917_s14 = sld [smem:[%s5468_s0 + %s4777_s7]]   ;;  %s4781_s7 = smov 22  }
  0x1a   :  { %5476 = sst [smem:[#allocation38_spill]] %s4902_s20 }
  0x1b   :  { %s4922_s3 = sld [smem:[%s5468_s0 + %s4778_s15]]   ;;  %s4782_s15 = smov 23  }
  0x1c   :  { %5477 = sst [smem:[#allocation39_spill]] %s4912_s4 }
  0x1d   :  { %s4927_s25 = sld [smem:[%s5468_s0 + %s4779_s22]]   ;;  %s4783_s22 = smov 24  }
  0x1e   :  { %s4932_s4 = sld [smem:[%s5468_s0 + %s4780_s28]]   ;;  %s4784_s28 = smov 25  }
  0x1f   :  { %s4937_s20 = sld [smem:[%s5468_s0 + %s4781_s7]]   ;;  %s4785_s7 = smov 26  }
  0x20   :  { %s4957_s12 = sld [smem:[%s5468_s0 + %s4785_s7]]   ;;  %s4789_s7 = smov 30  }
  0x21   :  { %5478 = sst [smem:[#allocation40_spill]] %s4922_s3 }
  0x22   :  { %s4942_s3 = sld [smem:[%s5468_s0 + %s4782_s15]]   ;;  %s4786_s15 = smov 27  }
  0x23   :  { %5479 = sst [smem:[#allocation41_spill]] %s4927_s25 }
  0x24   :  { %5480 = sst [smem:[#allocation42_spill]] %s4932_s4 }
  0x25   :  { %s4947_s25 = sld [smem:[%s5468_s0 + %s4783_s22]]   ;;  %s4787_s22 = smov 28  }
  0x26   :  { %s4952_s4 = sld [smem:[%s5468_s0 + %s4784_s28]]   ;;  %s4788_s28 = smov 29  }
  0x27   :  { %5484 = sst [smem:[#allocation46_spill]] %s4957_s12 }
  0x28   :  { %5481 = sst [smem:[#allocation43_spill]] %s4942_s3 }
  0x29   :  { %s4962_s3 = sld [smem:[%s5468_s0 + %s4786_s15]]   ;;  %s4790_s15 = smov 31  }
  0x2a   :  { %s4977_s12 = sld [smem:[%s5468_s0 + %s4789_s7]]   ;;  %s4793_s7 = smov 34  }
  0x2b   :  { %5482 = sst [smem:[#allocation44_spill]] %s4947_s25 }
  0x2c   :  { %5483 = sst [smem:[#allocation45_spill]] %s4952_s4 }
  0x2d   :  { %s4967_s25 = sld [smem:[%s5468_s0 + %s4787_s22]]   ;;  %s4791_s22 = smov 32  }
  0x2e   :  { %s4972_s4 = sld [smem:[%s5468_s0 + %s4788_s28]]   ;;  %s4792_s28 = smov 33  }
  0x2f   :  { %5485 = sst [smem:[#allocation47_spill]] %s4962_s3 }
  0x30   :  { %s4982_s3 = sld [smem:[%s5468_s0 + %s4790_s15]]  }
  0x31   :  { %s4987_s6 = sld [smem:[%s5468_s0 + %s4791_s22]]  }
  0x32   :  { %s4997_s24 = sld [smem:[%s5468_s0 + %s4793_s7]]  }
  0x34   :  { %5486 = sst [smem:[#allocation48_spill]] %s4972_s4 }
  0x35   :  { %s4992_s4 = sld [smem:[%s5468_s0 + %s4792_s28]]  }
  0x36   :  { %74 = vsyncpa [#allocation3], 0 }
  0x37   :  { %75 = vsyncpa [#allocation6], 0 }
  0x38   :  { %76 = vsyncpa [#allocation9], 0 }
  0x39   :  { %77 = vsyncpa [#allocation12], 0 }
  0x3a   :  { %78 = vsyncpa [#allocation15], 0 }
  0x3b   :  { %79 = vsyncpa [#allocation18], 0 }
  0x3c   :  { %80 = vsyncpa [#allocation21], 0 }
  0x3d   :  { %81 = vsyncpa [#allocation4], 0  ;;  %s4794_s15 = smov [#allocation5]   ;;  %s4795_s18 = smov [#allocation8]  }
  0x3e   :  { %s99_s16 = sshll.u32 %s4794_s15, 4  ;;  %s123_s22 = sshll.u32 %s4795_s18, 4  ;;  %s100_s16 = int_to_ptr.vmem [resolvable:$true] %s99_s16  ;;  %s4999_s22 = int_to_ptr.vmem [resolvable:$true] %s123_s22 }
  0x3f   :  { %s4436_s0 = scalar_lea.hbm %s4832_s9, 256 }
  0x40   :  { %p4437_p0 = scmp.ne.s32.totalorder %s4832_s9, %s4436_s0  ;;  %p4440_p1 = scmp.lt.u32.totalorder %s4436_s0, %s4832_s9 }
  0x42   :  { %p4442_p2 = pnand %p4440_p1, %p4437_p0 }
  0x44   :  { %4445 = shalt.err (!%p4442_p2)
}
  0x45   :  { %s4446_s23 = scalar_lea.vmem %s100_s16, 256  ;;  %p4451_p4 = scmp.lt.s32.totalorder %s100_s16, %s100_s16 }
  0x46   :  { %p4447_p3 = scmp.ne.s32.totalorder %s100_s16, %s4446_s23  ;;  %p4452_p5 = scmp.lt.s32.totalorder %s4446_s23, %s4446_s23 }
  0x48   :  { %p4453_p6 = por %p4452_p5, %p4451_p4 }
  0x4a   :  { %p4454_p7 = pnand %p4453_p6, %p4447_p3 }
  0x4c   :  { %4457 = shalt.err (!%p4454_p7)
}
  0x4d   :  { %s4796_s26 = smov 128   ;;  %s4797_s28 = smov 8  }
  0x4e   :  { %105 = dma.hbm_to_vmem [thread:$0]  %s4832_s9, 256, %s100_s16, [#allocation6], %s4796_s26, %s4796_s26, %s4797_s28  }
  0x4f   :  { %s4458_s1 = scalar_lea.hbm %s4847_s21, 1024 }
  0x50   :  { %p4459_p8 = scmp.ne.s32.totalorder %s4847_s21, %s4458_s1  ;;  %p4462_p9 = scmp.lt.u32.totalorder %s4458_s1, %s4847_s21 }
  0x52   :  { %p4464_p10 = pnand %p4462_p9, %p4459_p8 }
  0x54   :  { %4467 = shalt.err (!%p4464_p10)
}
  0x55   :  { %s4468_s2 = scalar_lea.vmem %s4999_s22, 1024  ;;  %p4473_p12 = scmp.lt.s32.totalorder %s4999_s22, %s4999_s22 }
  0x56   :  { %p4469_p11 = scmp.ne.s32.totalorder %s4999_s22, %s4468_s2  ;;  %p4474_p13 = scmp.lt.s32.totalorder %s4468_s2, %s4468_s2 }
  0x58   :  { %p4475_p0 = por %p4474_p13, %p4473_p12 }
  0x5a   :  { %p4476_p1 = pnand %p4475_p0, %p4469_p11 }
  0x5c   :  { %4479 = shalt.err (!%p4476_p1)
}
  0x5d   :  { %s4798_s7 = smov 64   ;;  %s4799_s9 = smov 4  }
  0x5e   :  { %129 = dma.hbm_to_vmem [thread:$0]  %s4847_s21, 1024, %s4999_s22, [#allocation9], %s4798_s7, %s4798_s7, %s4799_s9  }
  0x5f   :  { %s4800_s10 = smov [#allocation11]   ;;  %s4801_s15 = smov [#allocation14]  }
  0x60   :  { %s151_s11 = sshll.u32 %s4800_s10, 4  ;;  %s179_s16 = sshll.u32 %s4801_s15, 4  ;;  %s152_s11 = int_to_ptr.vmem [resolvable:$true] %s151_s11  ;;  %s5020_s16 = int_to_ptr.vmem [resolvable:$true] %s179_s16 }
  0x61   :  { %s4480_s18 = scalar_lea.hbm %s4867_s8, 1024 }
  0x62   :  { %p4481_p2 = scmp.ne.s32.totalorder %s4867_s8, %s4480_s18  ;;  %p4484_p3 = scmp.lt.u32.totalorder %s4480_s18, %s4867_s8 }
  0x64   :  { %p4486_p4 = pnand %p4484_p3, %p4481_p2 }
  0x66   :  { %4489 = shalt.err (!%p4486_p4)
}
  0x67   :  { %s4490_s0 = scalar_lea.vmem %s152_s11, 1024  ;;  %p4495_p6 = scmp.lt.s32.totalorder %s152_s11, %s152_s11 }
  0x68   :  { %p4491_p5 = scmp.ne.s32.totalorder %s152_s11, %s4490_s0  ;;  %p4496_p7 = scmp.lt.s32.totalorder %s4490_s0, %s4490_s0 }
  0x6a   :  { %p4497_p8 = por %p4496_p7, %p4495_p6 }
  0x6c   :  { %p4498_p9 = pnand %p4497_p8, %p4491_p5 }
  0x6e   :  { %4501 = shalt.err (!%p4498_p9)
}
  0x6f   :  { %157 = dma.hbm_to_vmem [thread:$0]  %s4867_s8, 1024, %s152_s11, [#allocation12], %s4798_s7, %s4798_s7, %s4799_s9  }
  0x70   :  { %s4502_s21 = scalar_lea.hbm %s4887_s30, 1024 }
  0x71   :  { %p4503_p10 = scmp.ne.s32.totalorder %s4887_s30, %s4502_s21  ;;  %p4506_p11 = scmp.lt.u32.totalorder %s4502_s21, %s4887_s30 }
  0x73   :  { %p4508_p12 = pnand %p4506_p11, %p4503_p10 }
  0x75   :  { %4511 = shalt.err (!%p4508_p12)
}
  0x76   :  { %s4512_s22 = scalar_lea.vmem %s5020_s16, 1024  ;;  %p4517_p0 = scmp.lt.s32.totalorder %s5020_s16, %s5020_s16 }
  0x77   :  { %p4513_p13 = scmp.ne.s32.totalorder %s5020_s16, %s4512_s22  ;;  %p4518_p1 = scmp.lt.s32.totalorder %s4512_s22, %s4512_s22 }
  0x79   :  { %p4519_p2 = por %p4518_p1, %p4517_p0 }
  0x7b   :  { %p4520_p3 = pnand %p4519_p2, %p4513_p13 }
  0x7d   :  { %4523 = shalt.err (!%p4520_p3)
}
  0x7e   :  { %185 = dma.hbm_to_vmem [thread:$0]  %s4887_s30, 1024, %s5020_s16, [#allocation15], %s4798_s7, %s4798_s7, %s4799_s9  }
  0x7f   :  { %s4802_s8 = smov [#allocation17]   ;;  %s4803_s1 = smov [#allocation20]  }
  0x80   :  { %s211_s23 = sshll.u32 %s4802_s8, 4  ;;  %s251_s2 = sshll.u32 %s4803_s1, 4  ;;  %s212_s23 = int_to_ptr.vmem [resolvable:$true] %s211_s23  ;;  %s5041_s2 = int_to_ptr.vmem [resolvable:$true] %s251_s2 }
  0x81   :  { %s4524_s10 = scalar_lea.hbm %s4917_s14, 2048 }
  0x82   :  { %p4525_p4 = scmp.ne.s32.totalorder %s4917_s14, %s4524_s10  ;;  %p4528_p5 = scmp.lt.u32.totalorder %s4524_s10, %s4917_s14 }
  0x84   :  { %p4530_p6 = pnand %p4528_p5, %p4525_p4 }
  0x86   :  { %4533 = shalt.err (!%p4530_p6)
}
  0x87   :  { %s4534_s11 = scalar_lea.vmem %s212_s23, 2048  ;;  %p4539_p8 = scmp.lt.s32.totalorder %s212_s23, %s212_s23 }
  0x88   :  { %p4535_p7 = scmp.ne.s32.totalorder %s212_s23, %s4534_s11  ;;  %p4540_p9 = scmp.lt.s32.totalorder %s4534_s11, %s4534_s11 }
  0x8a   :  { %p4541_p10 = por %p4540_p9, %p4539_p8 }
  0x8c   :  { %p4542_p11 = pnand %p4541_p10, %p4535_p7 }
  0x8e   :  { %4545 = shalt.err (!%p4542_p11)
}
  0x8f   :  { %217 = dma.hbm_to_vmem [thread:$0]  %s4917_s14, 2048, %s212_s23, [#allocation18], %s4798_s7, %s4798_s7, %s4799_s9  }
  0x90   :  { %s4546_s30 = scalar_lea.hbm %s4967_s25, 2048 }
  0x91   :  { %p4547_p12 = scmp.ne.s32.totalorder %s4967_s25, %s4546_s30  ;;  %p4550_p13 = scmp.lt.u32.totalorder %s4546_s30, %s4967_s25 }
  0x93   :  { %p4552_p0 = pnand %p4550_p13, %p4547_p12 }
  0x95   :  { %4555 = shalt.err (!%p4552_p0)
}
  0x96   :  { %s4556_s15 = scalar_lea.vmem %s5041_s2, 2048  ;;  %p4561_p2 = scmp.lt.s32.totalorder %s5041_s2, %s5041_s2 }
  0x97   :  { %p4557_p1 = scmp.ne.s32.totalorder %s5041_s2, %s4556_s15  ;;  %p4562_p3 = scmp.lt.s32.totalorder %s4556_s15, %s4556_s15 }
  0x99   :  { %p4563_p4 = por %p4562_p3, %p4561_p2 }
  0x9b   :  { %p4564_p5 = pnand %p4563_p4, %p4557_p1 }
  0x9d   :  { %4567 = shalt.err (!%p4564_p5)
}
  0x9e   :  { %257 = dma.hbm_to_vmem [thread:$0]  %s4967_s25, 2048, %s5041_s2, [#allocation21], %s4796_s26, %s4796_s26, %s4797_s28  }
  0x9f   :  { %s4804_s14 = smov [#allocation2]   ;;  %s4805_s18 = smov [#allocation7]  }
  0xa0   :  { %s87_s16 = sshll.u32 %s4804_s14, 4  ;;  %s114_s0 = sshll.u32 %s4805_s18, 4  ;;  %s88_s16 = int_to_ptr.vmem [resolvable:$true] %s87_s16  ;;  %s115_s0 = int_to_ptr.vmem [resolvable:$true] %s114_s0 }
  0xa1   :  { %s4568_s21 = scalar_lea.hbm %s4827_s5, 256 }
  0xa2   :  { %p4569_p6 = scmp.ne.s32.totalorder %s4827_s5, %s4568_s21  ;;  %p4572_p7 = scmp.lt.u32.totalorder %s4568_s21, %s4827_s5 }
  0xa4   :  { %p4574_p8 = pnand %p4572_p7, %p4569_p6 }
  0xa6   :  { %4577 = shalt.err (!%p4574_p8)
}
  0xa7   :  { %s4578_s22 = scalar_lea.vmem %s88_s16, 256  ;;  %p4583_p10 = scmp.lt.s32.totalorder %s88_s16, %s88_s16 }
  0xa8   :  { %p4579_p9 = scmp.ne.s32.totalorder %s88_s16, %s4578_s22  ;;  %p4584_p11 = scmp.lt.s32.totalorder %s4578_s22, %s4578_s22 }
  0xaa   :  { %p4585_p12 = por %p4584_p11, %p4583_p10 }
  0xac   :  { %p4586_p13 = pnand %p4585_p12, %p4579_p9 }
  0xae   :  { %4589 = shalt.err (!%p4586_p13)
}
  0xaf   :  { %93 = dma.hbm_to_vmem [thread:$0]  %s4827_s5, 256, %s88_s16, [#allocation3], %s4796_s26, %s4796_s26, %s4797_s28  }
  0xb0   :  { %s4590_s25 = scalar_lea.hbm %s4842_s17, 16 }
  0xb1   :  { %p4591_p0 = scmp.ne.s32.totalorder %s4842_s17, %s4590_s25  ;;  %p4594_p1 = scmp.lt.u32.totalorder %s4590_s25, %s4842_s17 }
  0xb3   :  { %p4596_p2 = pnand %p4594_p1, %p4591_p0 }
  0xb5   :  { %4599 = shalt.err (!%p4596_p2)
}
  0xb6   :  { %s4600_s8 = scalar_lea.vmem %s115_s0, 16  ;;  %s4604_s23 = scalar_lea.vmem %s115_s0, 32 }
  0xb7   :  { %p4601_p3 = scmp.ne.s32.totalorder %s115_s0, %s4600_s8  ;;  %p4605_p4 = scmp.lt.s32.totalorder %s115_s0, %s115_s0 }
  0xb8   :  { %p4606_p5 = scmp.lt.s32.totalorder %s4604_s23, %s4600_s8 }
  0xba   :  { %p4607_p6 = por %p4606_p5, %p4605_p4 }
  0xbc   :  { %p4608_p7 = pnand %p4607_p6, %p4601_p3 }
  0xbe   :  { %4611 = shalt.err (!%p4608_p7)
}
  0xbf   :  { %117 = dma.hbm_to_vmem [thread:$0]  %s4842_s17, 16, %s115_s0, [#allocation6]  }
  0xc0   :  { %s4806_s1 = smov [#allocation10]   ;;  %s4807_s2 = smov [#allocation13]  }
  0xc1   :  { %s137_s5 = sshll.u32 %s4806_s1, 4  ;;  %s165_s10 = sshll.u32 %s4807_s2, 4  ;;  %s138_s5 = int_to_ptr.vmem [resolvable:$true] %s137_s5  ;;  %s5073_s10 = int_to_ptr.vmem [resolvable:$true] %s165_s10 }
  0xc2   :  { %s4612_s11 = scalar_lea.hbm %s4857_s29, 1024 }
  0xc3   :  { %p4613_p8 = scmp.ne.s32.totalorder %s4857_s29, %s4612_s11  ;;  %p4616_p9 = scmp.lt.u32.totalorder %s4612_s11, %s4857_s29 }
  0xc5   :  { %p4618_p10 = pnand %p4616_p9, %p4613_p8 }
  0xc7   :  { %4621 = shalt.err (!%p4618_p10)
}
  0xc8   :  { %s4622_s30 = scalar_lea.vmem %s138_s5, 1024  ;;  %p4627_p12 = scmp.lt.s32.totalorder %s138_s5, %s138_s5 }
  0xc9   :  { %p4623_p11 = scmp.ne.s32.totalorder %s138_s5, %s4622_s30  ;;  %p4628_p13 = scmp.lt.s32.totalorder %s4622_s30, %s4622_s30 }
  0xcb   :  { %p4629_p0 = por %p4628_p13, %p4627_p12 }
  0xcd   :  { %p4630_p1 = pnand %p4629_p0, %p4623_p11 }
  0xcf   :  { %4633 = shalt.err (!%p4630_p1)
}
  0xd0   :  { %143 = dma.hbm_to_vmem [thread:$0]  %s4857_s29, 1024, %s138_s5, [#allocation9], %s4798_s7, %s4798_s7, %s4799_s9  }
  0xd1   :  { %s4634_s17 = scalar_lea.hbm %s4877_s19, 3072 }
  0xd2   :  { %p4635_p2 = scmp.ne.s32.totalorder %s4877_s19, %s4634_s17  ;;  %p4638_p3 = scmp.lt.u32.totalorder %s4634_s17, %s4877_s19 }
  0xd4   :  { %p4640_p4 = pnand %p4638_p3, %p4635_p2 }
  0xd6   :  { %4643 = shalt.err (!%p4640_p4)
}
  0xd7   :  { %s4644_s15 = scalar_lea.vmem %s5073_s10, 3072  ;;  %p4649_p6 = scmp.lt.s32.totalorder %s5073_s10, %s5073_s10 }
  0xd8   :  { %p4645_p5 = scmp.ne.s32.totalorder %s5073_s10, %s4644_s15  ;;  %p4650_p7 = scmp.lt.s32.totalorder %s4644_s15, %s4644_s15 }
  0xda   :  { %p4651_p8 = por %p4650_p7, %p4649_p6 }
  0xdc   :  { %p4652_p9 = pnand %p4651_p8, %p4645_p5 }
  0xde   :  { %4655 = shalt.err (!%p4652_p9)
}
  0xdf   :  { %s4808_s14 = smov 192   ;;  %s4809_s29 = smov 12  }
  0xe0   :  { %171 = dma.hbm_to_vmem [thread:$0]  %s4877_s19, 3072, %s5073_s10, [#allocation12], %s4808_s14, %s4808_s14, %s4809_s29  }
  0xe1   :  { %s4810_s16 = smov [#allocation16]   ;;  %s4811_s0 = smov [#allocation19]  }
  0xe2   :  { %s197_s18 = sshll.u32 %s4810_s16, 4  ;;  %s229_s21 = sshll.u32 %s4811_s0, 4  ;;  %s198_s18 = int_to_ptr.vmem [resolvable:$true] %s197_s18  ;;  %s5094_s21 = int_to_ptr.vmem [resolvable:$true] %s229_s21 }
  0xe3   :  { %s4656_s22 = scalar_lea.hbm %s4907_s27, 2048 }
  0xe4   :  { %p4657_p10 = scmp.ne.s32.totalorder %s4907_s27, %s4656_s22  ;;  %p4660_p11 = scmp.lt.u32.totalorder %s4656_s22, %s4907_s27 }
  0xe6   :  { %p4662_p12 = pnand %p4660_p11, %p4657_p10 }
  0xe8   :  { %4665 = shalt.err (!%p4662_p12)
}
  0xe9   :  { %s4666_s25 = scalar_lea.vmem %s198_s18, 2048  ;;  %p4671_p0 = scmp.lt.s32.totalorder %s198_s18, %s198_s18 }
  0xea   :  { %p4667_p13 = scmp.ne.s32.totalorder %s198_s18, %s4666_s25  ;;  %p4672_p1 = scmp.lt.s32.totalorder %s4666_s25, %s4666_s25 }
  0xec   :  { %p4673_p2 = por %p4672_p1, %p4671_p0 }
  0xee   :  { %p4674_p3 = pnand %p4673_p2, %p4667_p13 }
  0xf0   :  { %4677 = shalt.err (!%p4674_p3)
}
  0xf1   :  { %203 = dma.hbm_to_vmem [thread:$0]  %s4907_s27, 2048, %s198_s18, [#allocation15], %s4796_s26, %s4796_s26, %s4797_s28  }
  0xf2   :  { %s4678_s19 = scalar_lea.hbm %s4937_s20, 3072 }
  0xf3   :  { %p4679_p4 = scmp.ne.s32.totalorder %s4937_s20, %s4678_s19  ;;  %p4682_p5 = scmp.lt.u32.totalorder %s4678_s19, %s4937_s20 }
  0xf5   :  { %p4684_p6 = pnand %p4682_p5, %p4679_p4 }
  0xf7   :  { %4687 = shalt.err (!%p4684_p6)
}
  0xf8   :  { %s4688_s8 = scalar_lea.vmem %s5094_s21, 3072  ;;  %p4693_p8 = scmp.lt.s32.totalorder %s5094_s21, %s5094_s21 }
  0xf9   :  { %p4689_p7 = scmp.ne.s32.totalorder %s5094_s21, %s4688_s8  ;;  %p4694_p9 = scmp.lt.s32.totalorder %s4688_s8, %s4688_s8 }
  0xfb   :  { %p4695_p10 = por %p4694_p9, %p4693_p8 }
  0xfd   :  { %p4696_p11 = pnand %p4695_p10, %p4689_p7 }
  0xff   :  { %4699 = shalt.err (!%p4696_p11)
}
 0x100   :  { %235 = dma.hbm_to_vmem [thread:$0]  %s4937_s20, 3072, %s5094_s21, [#allocation18], %s4808_s14, %s4808_s14, %s4809_s29  }
 0x101   :  { %s4812_s27 = smov [#allocation22]   ;;  %s4700_s1 = scalar_lea.hbm %s4977_s12, 2048 }
 0x102   :  { %s265_s23 = sshll.u32 %s4812_s27, 4  ;;  %p4701_p12 = scmp.ne.s32.totalorder %s4977_s12, %s4700_s1  ;;  %s266_s23 = int_to_ptr.vmem [resolvable:$true] %s265_s23 }
 0x103   :  { %p4704_p13 = scmp.lt.u32.totalorder %s4700_s1, %s4977_s12 }
 0x105   :  { %p4706_p0 = pnand %p4704_p13, %p4701_p12 }
 0x107   :  { %4709 = shalt.err (!%p4706_p0)
}
 0x108   :  { %s4710_s5 = scalar_lea.vmem %s266_s23, 2048  ;;  %p4715_p2 = scmp.lt.s32.totalorder %s266_s23, %s266_s23 }
 0x109   :  { %p4711_p1 = scmp.ne.s32.totalorder %s266_s23, %s4710_s5  ;;  %p4716_p3 = scmp.lt.s32.totalorder %s4710_s5, %s4710_s5 }
 0x10b   :  { %p4717_p4 = por %p4716_p3, %p4715_p2 }
 0x10d   :  { %p4718_p5 = pnand %p4717_p4, %p4711_p1 }
 0x10f   :  { %4721 = shalt.err (!%p4718_p5)
}
 0x110   :  { %271 = dma.hbm_to_vmem [thread:$0]  %s4977_s12, 2048, %s266_s23, [#allocation21], %s4798_s7, %s4798_s7, %s4799_s9  }
 0x111   :  { %4744 = dma.done.wait [#allocation3], 256  }
 0x112   :  { %4745 = vsyncadd [#allocation3], 4294967040 }
 0x113   :  { %4746 = dma.done.wait [#allocation6], 272  }
 0x114   :  { %4747 = vsyncadd [#allocation6], 4294967024 }
 0x115   :  { %4748 = dma.done.wait [#allocation9], 2048  }
 0x116   :  { %4749 = vsyncadd [#allocation9], 4294965248 }
 0x117   :  { %4750 = dma.done.wait [#allocation12], 4096  }
 0x118   :  { %4751 = vsyncadd [#allocation12], 4294963200 }
 0x119   :  { %4752 = dma.done.wait [#allocation15], 3072  }
 0x11a   :  { %4753 = vsyncadd [#allocation15], 4294964224 }
 0x11b   :  { %4754 = dma.done.wait [#allocation18], 5120  }
 0x11c   :  { %4755 = vsyncadd [#allocation18], 4294962176 }
 0x11d   :  { %4756 = dma.done.wait [#allocation21], 4096  }
 0x11e   :  { %4757 = vsyncadd [#allocation21], 4294963200  ;;  %v318_v0 = vld [vmem:[#allocation2] sm:$0xff]  ;;  %v319_v1 = vld [vmem:[#allocation2 + $0x8] sm:$0xff]  ;;  %v4813_v4 = vmov 0.0   ;;  %v4814_v30 = vmov 0   ;;  %v398_v53 = vlaneseq }
 0x11f   :  { %322 = vadd.xlane.f32.xlu0 %v318_v0  ;;  %v4138_v2 = vld [vmem:[#allocation13 + $0x4] ss:$12 sps:$4 sm:$0xff]   ;;  %v4140_v3 = vld [vmem:[#allocation13] ss:$12 sps:$4 sm:$0xff]   ;;  %3813 = vmatprep.subr.bf16.mxu1 %v4813_v4  ;;  %v4141_v5 = vld [vmem:[#allocation13 + $0x8] ss:$12 sps:$4 sm:$0xff]  }
 0x120   :  { %v4142_v6 = vld [vmem:[#allocation13 + $0x1c] ss:$12 sps:$4 sm:$0xff]   ;;  %541 = vmatprep.subr.bf16.mxu0 %v4138_v2  ;;  %3814 = vmatpush3.bf16.msra.mxu1 %v4141_v5  ;;  %v4144_v15 = vld [vmem:[#allocation13 + $0x18] ss:$12 sps:$4 sm:$0xff]   ;;  %v4145_v16 = vld [vmem:[#allocation13 + $0x20] ss:$12 sps:$4 sm:$0xff]  }
 0x121   :  { %542 = vmatpush1.bf16.msra.mxu0 %v4140_v3  ;;  %3815 = vmatprep.subr.bf16.mxu1 %v4813_v4  ;;  %v4146_v17 = vld [vmem:[#allocation13 + $0x34] ss:$12 sps:$4 sm:$0xff]   ;;  %v4148_v18 = vld [vmem:[#allocation13 + $0x30] ss:$12 sps:$4 sm:$0xff]   ;;  %v4149_v19 = vld [vmem:[#allocation13 + $0x38] ss:$12 sps:$4 sm:$0xff]  }
 0x122   :  { %543 = vmatprep.subr.bf16.mxu0 %v4142_v6  ;;  %v4150_v20 = vld [vmem:[#allocation13 + $0x4c] ss:$12 sps:$4 sm:$0xff]   ;;  %v4152_v21 = vld [vmem:[#allocation13 + $0x48] ss:$12 sps:$4 sm:$0xff]   ;;  %v4153_v22 = vld [vmem:[#allocation13 + $0x50] ss:$12 sps:$4 sm:$0xff]   ;;  %573 = vmatprep.mubr.bf16.mxu0 %v4814_v30 }
 0x123   :  { %324 = vadd.xlane.f32.xlu0 %v319_v1  ;;  %v4154_v23 = vld [vmem:[#allocation13 + $0x64] ss:$12 sps:$4 sm:$0xff]   ;;  %v4156_v24 = vld [vmem:[#allocation13 + $0x60] ss:$12 sps:$4 sm:$0xff]   ;;  %v4157_v25 = vld [vmem:[#allocation13 + $0x68] ss:$12 sps:$4 sm:$0xff]  }
 0x124   :  { %3816 = vmatpush3.bf16.msra.mxu1 %v4145_v16  ;;  %v4158_v26 = vld [vmem:[#allocation13 + $0x7c] ss:$12 sps:$4 sm:$0xff]   ;;  %v4160_v27 = vld [vmem:[#allocation13 + $0x78] ss:$12 sps:$4 sm:$0xff]   ;;  %v4161_v28 = vld [vmem:[#allocation13 + $0x80] ss:$12 sps:$4 sm:$0xff]  }
 0x125   :  { %544 = vmatpush1.bf16.msra.mxu0 %v4144_v15  ;;  %3817 = vmatprep.subr.bf16.mxu1 %v4813_v4  ;;  %v4162_v29 = vld [vmem:[#allocation13 + $0x94] ss:$12 sps:$4 sm:$0xff]   ;;  %vm4815_vm0 = vmmov 0   ;;  %v4164_v31 = vld [vmem:[#allocation13 + $0x90] ss:$12 sps:$4 sm:$0xff]   ;;  %s5487_s12 = sld [smem:[#allocation35_spill]] }
 0x126   :  { %545 = vmatprep.subr.bf16.mxu0 %v4146_v17  ;;  %3829 = vmatprep.mubr.msk.bf16.mxu1 %vm4815_vm0, %v4813_v4  ;;  %v4165_v32 = vld [vmem:[#allocation13 + $0x98] ss:$12 sps:$4 sm:$0xff]   ;;  %v4168_v34 = vld [vmem:[#allocation13 + $0xa8] ss:$12 sps:$4 sm:$0xff]   ;;  %v4169_v35 = vld [vmem:[#allocation13 + $0xb0] ss:$12 sps:$4 sm:$0xff]  }
 0x127   :  { %v4166_v33 = vld [vmem:[#allocation13 + $0xac] ss:$12 sps:$4 sm:$0xff]   ;;  %v3489_v44 = vld [vmem:[%s4837_s13] ss:$0 sm:$0xff]  ;;  %v5156_v54 = vshrl.u32 %v398_v53, 7  ;;  %vm627_vm1 = vcmask 261120  }
 0x128   :  { %3818 = vmatpush3.bf16.msra.mxu1 %v4149_v19  ;;  %v3490_v48 = vld [vmem:[#allocation7] ss:$0 sm:$0xff]  ;;  %s4816_s13 = smov 96   ;;  %s4817_s20 = smov 32   ;;  %vm679_vm2 = vcmask 130048   ;;  %vm1152_vm3 = vcmask 523264  }
 0x129   :  { %546 = vmatpush1.bf16.msra.mxu0 %v4148_v18  ;;  %3819 = vmatprep.subr.bf16.mxu1 %v4813_v4  ;;  %v5159_v55 = vsub.s32 0, %v5156_v54  ;;  %v408_v56 = vsub.s32 2, %v5156_v54  ;;  %v5164_v58 = vsub.s32 1, %v5156_v54  ;;  %s5488_s9 = sld [smem:[#allocation36_spill]]  ;;  %vm1155_vm4 = vcmask 785408   ;;  %s5489_s2 = sld [smem:[#allocation37_spill]] }
 0x12a   :  { %547 = vmatprep.subr.bf16.mxu0 %v4150_v20  ;;  %s5490_s10 = sld [smem:[#allocation38_spill]]  ;;  %s5491_s11 = sld [smem:[#allocation39_spill]] }
 0x12b   :  { %v396_v57 = vld [vmem:[%s5487_s12] sm:$0x7]  ;;  %s5492_s30 = sld [smem:[#allocation40_spill]]  ;;  %s5493_s17 = sld [smem:[#allocation41_spill]] }
 0x12c   :  { %3820 = vmatpush3.bf16.msra.mxu1 %v4153_v22  ;;  %v401_v59 = vrot.slane %v396_v57, %v5159_v55  ;;  %v409_v60 = vrot.slane %v396_v57, %v408_v56  ;;  %v405_v63 = vrot.slane %v396_v57, %v5164_v58  ;;  %s5494_s15 = sld [smem:[#allocation42_spill]]  ;;  %s5495_s14 = sld [smem:[#allocation43_spill]] }
 0x12d   :  { %548 = vmatpush1.bf16.msra.mxu0 %v4152_v21  ;;  %3821 = vmatprep.subr.bf16.mxu1 %v4813_v4  ;;  %s5496_s29 = sld [smem:[#allocation44_spill]]  ;;  %s5497_s16 = sld [smem:[#allocation45_spill]] }
 0x12e   :  { %549 = vmatprep.subr.bf16.mxu0 %v4154_v23  ;;  %s5499_s18 = sld [smem:[#allocation47_spill]]  ;;  %s5500_s0 = sld [smem:[#allocation48_spill]] }
 0x12f   :  { %s4818_s21 = smov [#allocation23]  }
 0x130   :  { %3822 = vmatpush3.bf16.msra.mxu1 %v4157_v25  ;;  %s3437_s22 = sshll.u32 %s4818_s21, 4  ;;  %s3438_s22 = int_to_ptr.vmem [resolvable:$true] %s3437_s22 }
 0x131   :  { %550 = vmatpush1.bf16.msra.mxu0 %v4156_v24  ;;  %3823 = vmatprep.subr.bf16.mxu1 %v4813_v4  ;;  %s4722_s25 = scalar_lea.vmem %s3438_s22, 256  ;;  %p4727_p7 = scmp.lt.s32.totalorder %s3438_s22, %s3438_s22 }
 0x132   :  { %551 = vmatprep.subr.bf16.mxu0 %v4158_v26  ;;  %p4723_p6 = scmp.ne.s32.totalorder %s3438_s22, %s4722_s25  ;;  %p4728_p8 = scmp.lt.s32.totalorder %s4722_s25, %s4722_s25 }
 0x134   :  { %3824 = vmatpush3.bf16.msra.mxu1 %v4161_v28  ;;  %p4729_p9 = por %p4728_p8, %p4727_p7 }
 0x135   :  { %552 = vmatpush1.bf16.msra.mxu0 %v4160_v27  ;;  %3825 = vmatprep.subr.bf16.mxu1 %v4813_v4  ;;  %v361_v27 = vld [vmem:[#allocation5] sm:$0xff] }
 0x136   :  { %553 = vmatprep.subr.bf16.mxu0 %v4162_v29  ;;  %p4730_p10 = pnand %p4729_p9, %p4723_p6 }
 0x138   :  { %3826 = vmatpush3.bf16.msra.mxu1 %v4165_v32  ;;  %v362_v32 = vld [vmem:[#allocation5 + $0x8] sm:$0xff] }
 0x139   :  { %554 = vmatpush1.bf16.msra.mxu0 %v4164_v31  ;;  %3827 = vmatprep.subr.bf16.mxu1 %v4813_v4 }
 0x13a   :  { %555 = vmatprep.subr.bf16.mxu0 %v4166_v33 }
 0x13c   :  { %3828 = vmatpush3.bf16.msra.mxu1 %v4169_v35 }
 0x13d   :  { %556 = vmatpush1.bf16.msra.mxu0 %v4168_v34  ;;  %3839 = vmatprep.subr.bf16.mxu1 %v4813_v4 }
 0x13e   :  { %3833 = vmatprep.subr.bf16.mxu0 %v4813_v4 }
 0x1ac   :  { %v323_v7 = vpop.xlane.xlu0 %322 }
 0x1ad   :  { %v327_v8 = vmul.f32 0.0078125, %v323_v7 }
 0x1af   :  { %v5124_v9 = vsub.f32 %v318_v0, %v327_v8 }
 0x1b0   :  { %v325_v10 = vpop.xlane.xlu0 %324 }
 0x1b1   :  { %v328_v11 = vmul.f32 0.0078125, %v325_v10  ;;  %v331_v12 = vmul.f32 %v5124_v9, %v5124_v9 }
 0x1b3   :  { %v5128_v13 = vsub.f32 %v319_v1, %v328_v11  ;;  %333 = vadd.xlane.f32.xlu1 %v331_v12 }
 0x1b5   :  { %v332_v14 = vmul.f32 %v5128_v13, %v5128_v13 }
 0x1b7   :  { %335 = vadd.xlane.f32.xlu1 %v332_v14 }
 0x240   :  { %v334_v36 = vpop.xlane.xlu1 %333 }
 0x241   :  { %v337_v37 = vmul.f32 0.0078125, %v334_v36 }
 0x243   :  { %v339_v38 = vadd.f32 1e-12, %v337_v37 }
 0x244   :  { %v336_v39 = vpop.xlane.xlu1 %335 }
 0x245   :  { %4322 = vrsqrt.f32 %v339_v38  ;;  %v338_v40 = vmul.f32 0.0078125, %v336_v39 }
 0x247   :  { %v340_v41 = vadd.f32 1e-12, %v338_v40 }
 0x249   :  { %4324 = vrsqrt.f32 %v340_v41 }
 0x24f   :  { %v4323_v42 = vpop.eup %4322 }
 0x250   :  { %v343_v43 = vmul.f32 %v4323_v42, %v5124_v9 }
 0x252   :  { %v351_v47 = vmul.f32 %v3489_v44, %v343_v43 }
 0x253   :  { %v4325_v45 = vpop.eup %4324 }
 0x254   :  { %v344_v46 = vmul.f32 %v4325_v45, %v5128_v13  ;;  %v5146_v50 = vadd.f32 %v3490_v48, %v351_v47 }
 0x256   :  { %v352_v49 = vmul.f32 %v3489_v44, %v344_v46 }
 0x258   :  { %v5148_v51 = vadd.f32 %v3490_v48, %v352_v49 }
 0x25a   :  { %v395_v52 = vpack.c.bf16 %v5148_v51, %v5146_v50 }
 0x25c   :  { %574 = vmatmul.mubr.bf16.vlgmr.msra.gmra.mrb[0].mxu0 %v395_v52  ;;  %3830 = vmatmul.mubr.bf16.vlgmr.msra.gmra.mrb[0].mxu1 %v395_v52 }
 0x25d   :  { %3835 = vmatprep.mubr.msk.bf16.mxu0 %vm4815_vm0, %v4813_v4  ;;  %3841 = vmatprep.mubr.msk.bf16.mxu1 %vm4815_vm0, %v4813_v4 }
 0x32f   :  { %v575_v61 = vpop.f32.mrb[0].mxu0  ;;  %v618_v62 = vpop.f32.mrb[0].mxu1 }
 0x330   :  { %v577_v0 = vpop.f32.mrb[1].mxu0  ;;  %v3831_v1 = vpop.f32.mrb[1].mxu1  ;;  %v576_v5 = vadd.f32 %v575_v61, %v401_v59  ;;  %v619_v6 = vadd.f32 %v618_v62, %v409_v60 }
 0x331   :  { %v579_v2 = vpop.f32.mrb[2].mxu0  ;;  %v621_v3 = vpop.f32.mrb[2].mxu1  ;;  %v578_v11 = vadd.f32 %v577_v0, %v405_v63 }
 0x332   :  { %v580_v7 = vadd.f32 %v579_v2, %v401_v59  ;;  %v622_v8 = vadd.f32 %v621_v3, %v409_v60  ;;  %v581_v9 = vpop.f32.mrb[3].mxu0  ;;  %v3832_v10 = vpop.f32.mrb[3].mxu1 }
 0x333   :  { %v582_v12 = vadd.f32 %v581_v9, %v405_v63 }
 0x334   :  { %v625_v13 = vpack.c.bf16 %v580_v7, %v576_v5  ;;  %v5170_v14 = vpack.c.bf16 %v622_v8, %v619_v6 }
 0x335   :  { %v626_v15 = vpack.c.bf16 %v582_v12, %v578_v11 }
 0x336   :  { %3840 = vmatpush3.bf16.msra.mxu1 %v5170_v14  ;;  %749 = vrot.lane.b32.xlu1 %v625_v13, %s4816_s13 }
 0x337   :  { %752 = vrot.lane.b32.xlu0 %v626_v15, %s4816_s13  ;;  %v632_v16 = vsel %vm627_vm1, %v626_v15, 0  ;;  %3851 = vmatprep.subr.bf16.mxu1 %v4813_v4 }
 0x338   :  { %3834 = vmatpush3.bf16.xpose.msra.mxu0 %v632_v16 }
 0x339   :  { %3845 = vmatprep.subr.bf16.mxu0 %v4813_v4 }
 0x33a   :  { %878 = vrot.lane.b32.xlu1 %v626_v15, %s4798_s7 }
 0x33b   :  { %1003 = vrot.lane.b32.xlu0 %v626_v15, %s4817_s20 }
 0x33e   :  { %876 = vrot.lane.b32.xlu1 %v625_v13, %s4798_s7 }
 0x33f   :  { %3836 = vmatmul.mubr.msk.bf16.vlgmr.msra.gmra.mrb[4].mxu0 %vm627_vm1, %v625_v13 }
 0x340   :  { %3847 = vmatprep.mubr.msk.bf16.mxu0 %vm4815_vm0, %v4813_v4 }
 0x342   :  { %1001 = vrot.lane.b32.xlu1 %v625_v13, %s4817_s20 }
 0x3a8   :  { %v750_v17 = vpop.permute.xlu1 %749 }
 0x3a9   :  { %v753_v18 = vpop.permute.xlu0 %752 }
 0x3aa   :  { %v758_v19 = vsel %vm627_vm1, %v753_v18, 0 }
 0x3ab   :  { %3846 = vmatpush3.bf16.xpose.msra.mxu0 %v758_v19 }
 0x3ac   :  { %3857 = vmatprep.subr.bf16.mxu0 %v4813_v4  ;;  %v879_v20 = vpop.permute.xlu1 %878 }
 0x3ad   :  { %v884_v21 = vsel %vm627_vm1, %v879_v20, 0  ;;  %v1004_v22 = vpop.permute.xlu0 %1003 }
 0x3ae   :  { %v1009_v24 = vsel %vm627_vm1, %v1004_v22, 0 }
 0x3b0   :  { %v877_v23 = vpop.permute.xlu1 %876 }
 0x3b2   :  { %3848 = vmatmul.mubr.msk.bf16.vlgmr.msra.gmra.mrb[8].mxu0 %vm627_vm1, %v750_v17 }
 0x3b3   :  { %3858 = vmatpush3.bf16.xpose.msra.mxu0 %v884_v21  ;;  %3859 = vmatprep.mubr.msk.bf16.mxu0 %vm4815_vm0, %v4813_v4 }
 0x3b4   :  { %3869 = vmatprep.subr.bf16.mxu0 %v4813_v4  ;;  %v1002_v25 = vpop.permute.xlu1 %1001 }
 0x3ba   :  { %3860 = vmatmul.mubr.msk.bf16.vlgmr.msra.gmra.mrb[12].mxu0 %vm627_vm1, %v877_v23 }
 0x3bb   :  { %3870 = vmatpush3.bf16.xpose.msra.mxu0 %v1009_v24  ;;  %3871 = vmatprep.mubr.msk.bf16.mxu0 %vm4815_vm0, %v4813_v4 }
 0x3bc   :  { %3881 = vmatprep.subr.bf16.mxu0 %v4813_v4 }
 0x3c2   :  { %3872 = vmatmul.mubr.msk.bf16.vlgmr.msra.gmra.mrb[16].mxu0 %vm627_vm1, %v1002_v25 }
 0x3c3   :  { %3897 = vmatprep.mubr.msk.bf16.mxu0 %vm4815_vm0, %v4813_v4 }
 0x412   :  { %v668_v26 = vpop.f32.mrb[4].mxu0 }
 0x413   :  { %v675_v28 = vmul.f32 0.17677669, %v668_v26  ;;  %v3837_v29 = vpop.f32.mrb[5].mxu0 }
 0x414   :  { %v671_v31 = vpop.f32.mrb[6].mxu0 }
 0x415   :  { %v676_v33 = vmul.f32 0.17677669, %v671_v31  ;;  %v3838_v34 = vpop.f32.mrb[7].mxu0  ;;  %v677_v35 = vadd.f32 %v675_v28, %v361_v27 }
 0x417   :  { %v680_v36 = vsel %vm679_vm2, %v677_v35, -inf  ;;  %v678_v37 = vadd.f32 %v676_v33, %v362_v32 }
 0x418   :  { %681 = vmax.xlane.f32.xlu0 %v680_v36 }
 0x419   :  { %v683_v38 = vsel %vm679_vm2, %v678_v37, -inf }
 0x41a   :  { %684 = vmax.xlane.f32.xlu1 %v683_v38 }
 0x485   :  { %v794_v39 = vpop.f32.mrb[8].mxu0 }
 0x486   :  { %v801_v40 = vmul.f32 0.17677669, %v794_v39  ;;  %v3849_v41 = vpop.f32.mrb[9].mxu0 }
 0x487   :  { %v797_v42 = vpop.f32.mrb[10].mxu0 }
 0x488   :  { %v802_v43 = vmul.f32 0.17677669, %v797_v42  ;;  %v3850_v44 = vpop.f32.mrb[11].mxu0  ;;  %v803_v45 = vadd.f32 %v801_v40, %v361_v27 }
 0x48a   :  { %v805_v46 = vsel %vm679_vm2, %v803_v45, -inf  ;;  %v804_v47 = vadd.f32 %v802_v43, %v362_v32 }
 0x48b   :  { %806 = vmax.xlane.f32.xlu0 %v805_v46 }
 0x48c   :  { %v808_v53 = vsel %vm679_vm2, %v804_v47, -inf }
 0x48d   :  { %v920_v48 = vpop.f32.mrb[12].mxu0 }
 0x48e   :  { %v927_v49 = vmul.f32 0.17677669, %v920_v48  ;;  %v3861_v52 = vpop.f32.mrb[13].mxu0 }
 0x48f   :  { %809 = vmax.xlane.f32.xlu0 %v808_v53  ;;  %v923_v57 = vpop.f32.mrb[14].mxu0 }
 0x490   :  { %v928_v59 = vmul.f32 0.17677669, %v923_v57  ;;  %v3862_v60 = vpop.f32.mrb[15].mxu0  ;;  %v929_v61 = vadd.f32 %v927_v49, %v361_v27 }
 0x492   :  { %v931_v62 = vsel %vm679_vm2, %v929_v61, -inf  ;;  %v930_v63 = vadd.f32 %v928_v59, %v362_v32 }
 0x493   :  { %932 = vmax.xlane.f32.xlu0 %v931_v62 }
 0x494   :  { %v934_v0 = vsel %vm679_vm2, %v930_v63, -inf }
 0x495   :  { %935 = vmax.xlane.f32.xlu1 %v934_v0  ;;  %v1045_v1 = vpop.f32.mrb[16].mxu0 }
 0x496   :  { %v1052_v2 = vmul.f32 0.17677669, %v1045_v1  ;;  %v3873_v3 = vpop.f32.mrb[17].mxu0 }
 0x497   :  { %v1048_v5 = vpop.f32.mrb[18].mxu0 }
 0x498   :  { %v1053_v6 = vmul.f32 0.17677669, %v1048_v5  ;;  %v3874_v7 = vpop.f32.mrb[19].mxu0  ;;  %v1054_v8 = vadd.f32 %v1052_v2, %v361_v27 }
 0x49a   :  { %v1056_v9 = vsel %vm679_vm2, %v1054_v8, -inf  ;;  %v5207_v10 = vadd.f32 %v1053_v6, %v362_v32 }
 0x49b   :  { %1057 = vmax.xlane.f32.xlu0 %v1056_v9 }
 0x49c   :  { %v1059_v11 = vsel %vm679_vm2, %v5207_v10, -inf }
 0x49d   :  { %1060 = vmax.xlane.f32.xlu1 %v1059_v11 }
 0x4a5   :  { %v682_v12 = vpop.xlane.xlu0 %681 }
 0x4a6   :  { %v686_v13 = vsub.f32 %v677_v35, %v682_v12 }
 0x4a7   :  { %v685_v15 = vpop.xlane.xlu1 %684 }
 0x4a8   :  { %v688_v16 = vmul.f32 1.442695, %v686_v13  ;;  %v687_v17 = vsub.f32 %v678_v37, %v685_v15 }
 0x4aa   :  { %4326 = vpow2.f32 %v688_v16  ;;  %v690_v18 = vmul.f32 1.442695, %v687_v17 }
 0x4ac   :  { %4328 = vpow2.f32 %v690_v18 }
 0x4b4   :  { %v4327_v19 = vpop.eup %4326 }
 0x4b5   :  { %v692_v20 = vsel %vm679_vm2, %v4327_v19, 0.0 }
 0x4b6   :  { %v4329_v21 = vpop.eup %4328  ;;  %693 = vadd.xlane.f32.xlu0 %v692_v20 }
 0x4b7   :  { %v695_v22 = vsel %vm679_vm2, %v4329_v21, 0.0 }
 0x4b8   :  { %696 = vadd.xlane.f32.xlu1 %v695_v22 }
 0x518   :  { %v807_v23 = vpop.xlane.xlu0 %806 }
 0x519   :  { %v811_v24 = vsub.f32 %v803_v45, %v807_v23 }
 0x51b   :  { %v813_v25 = vmul.f32 1.442695, %v811_v24 }
 0x51c   :  { %v810_v26 = vpop.xlane.xlu0 %809 }
 0x51d   :  { %4330 = vpow2.f32 %v813_v25  ;;  %v812_v27 = vsub.f32 %v804_v47, %v810_v26 }
 0x51f   :  { %v815_v28 = vmul.f32 1.442695, %v812_v27 }
 0x520   :  { %v933_v29 = vpop.xlane.xlu0 %932 }
 0x521   :  { %4332 = vpow2.f32 %v815_v28  ;;  %v937_v31 = vsub.f32 %v929_v61, %v933_v29 }
 0x522   :  { %v936_v32 = vpop.xlane.xlu1 %935 }
 0x523   :  { %v939_v33 = vmul.f32 1.442695, %v937_v31  ;;  %v938_v34 = vsub.f32 %v930_v63, %v936_v32 }
 0x525   :  { %4334 = vpow2.f32 %v939_v33  ;;  %v941_v35 = vmul.f32 1.442695, %v938_v34 }
 0x527   :  { %v4331_v36 = vpop.eup %4330  ;;  %4336 = vpow2.f32 %v941_v35 }
 0x528   :  { %v1058_v37 = vpop.xlane.xlu0 %1057  ;;  %v817_v38 = vsel %vm679_vm2, %v4331_v36, 0.0 }
 0x529   :  { %v1062_v39 = vsub.f32 %v1054_v8, %v1058_v37  ;;  %818 = vadd.xlane.f32.xlu0 %v817_v38 }
 0x52a   :  { %v1061_v49 = vpop.xlane.xlu1 %1060 }
 0x52b   :  { %v4333_v40 = vpop.eup %4332  ;;  %v1064_v41 = vmul.f32 1.442695, %v1062_v39  ;;  %v1063_v62 = vsub.f32 %v5207_v10, %v1061_v49  ;;  %v4171_v39 = vld [vmem:[#allocation14 + $0x8] sm:$0xff]   ;;  %v4176_v49 = vld [vmem:[#allocation14 + $0x30] sm:$0xff]  }
 0x52c   :  { %v820_v42 = vsel %vm679_vm2, %v4333_v40, 0.0 }
 0x52d   :  { %4338 = vpow2.f32 %v1064_v41  ;;  %821 = vadd.xlane.f32.xlu1 %v820_v42  ;;  %v1066_v0 = vmul.f32 1.442695, %v1063_v62  ;;  %v4172_v41 = vld [vmem:[#allocation14 + $0x10] sm:$0xff]  }
 0x52f   :  { %v4335_v43 = vpop.eup %4334 }
 0x530   :  { %v943_v44 = vsel %vm679_vm2, %v4335_v43, 0.0 }
 0x531   :  { %v4337_v45 = vpop.eup %4336  ;;  %944 = vadd.xlane.f32.xlu0 %v943_v44 }
 0x532   :  { %v946_v46 = vsel %vm679_vm2, %v4337_v45, 0.0 }
 0x533   :  { %947 = vadd.xlane.f32.xlu1 %v946_v46  ;;  %v4173_v46 = vld [vmem:[#allocation14 + $0x18] sm:$0xff]  }
 0x537   :  { %v4339_v47 = vpop.eup %4338 }
 0x538   :  { %v1068_v48 = vsel %vm679_vm2, %v4339_v47, 0.0 }
 0x539   :  { %1069 = vadd.xlane.f32.xlu0 %v1068_v48  ;;  %v4175_v48 = vld [vmem:[#allocation14 + $0x28] sm:$0xff]  }
 0x543   :  { %v694_v52 = vpop.xlane.xlu0 %693 }
 0x544   :  { %4340 = vrcp.f32 %v694_v52  ;;  %954 = vrot.lane.b32.xlu1 %v5170_v14, %s4798_s7  ;;  %v4177_v52 = vld [vmem:[#allocation14 + $0x38] sm:$0xff]  }
 0x545   :  { %v697_v53 = vpop.xlane.xlu1 %696 }
 0x546   :  { %4342 = vrcp.f32 %v697_v53 }
 0x547   :  { %4344 = vpow2.f32 %v1066_v0 }
 0x54e   :  { %v4341_v57 = vpop.eup %4340 }
 0x54f   :  { %829 = vrot.lane.b32.xlu0 %v5170_v14, %s4816_s13  ;;  %v700_v60 = vmul.f32 %v4341_v57, %v4327_v19 }
 0x550   :  { %v4343_v59 = vpop.eup %4342 }
 0x551   :  { %v701_v61 = vmul.f32 %v4343_v59, %v4329_v21  ;;  %v4345_v1 = vpop.eup %4344 }
 0x552   :  { %v1071_v2 = vsel %vm679_vm2, %v4345_v1, 0.0 }
 0x553   :  { %v702_v63 = vpack.c.bf16 %v701_v61, %v700_v60 }
 0x555   :  { %3842 = vmatmul.mubr.msk.bf16.vlgmr.msra.gmra.mrb[4].mxu1 %vm679_vm2, %v702_v63 }
 0x556   :  { %3853 = vmatprep.mubr.msk.bf16.mxu1 %vm4815_vm0, %v4813_v4 }
 0x568   :  { %1072 = vadd.xlane.f32.xlu1 %v1071_v2 }
 0x579   :  { %1079 = vrot.lane.b32.xlu1 %v5170_v14, %s4817_s20 }
 0x5b6   :  { %v819_v3 = vpop.xlane.xlu0 %818 }
 0x5ba   :  { %v822_v5 = vpop.xlane.xlu1 %821 }
 0x5bb   :  { %4346 = vrcp.f32 %v822_v5 }
 0x5bc   :  { %4348 = vrcp.f32 %v819_v3 }
 0x5be   :  { %v945_v7 = vpop.xlane.xlu0 %944 }
 0x5c0   :  { %v948_v6 = vpop.xlane.xlu1 %947 }
 0x5c1   :  { %4350 = vrcp.f32 %v948_v6 }
 0x5c2   :  { %4352 = vrcp.f32 %v945_v7 }
 0x5c4   :  { %v955_v14 = vpop.permute.xlu1 %954 }
 0x5c5   :  { %v4347_v8 = vpop.eup %4346 }
 0x5c6   :  { %v1070_v9 = vpop.xlane.xlu0 %1069  ;;  %v4349_v10 = vpop.eup %4348  ;;  %v826_v11 = vmul.f32 %v4347_v8, %v4333_v40 }
 0x5c7   :  { %v825_v12 = vmul.f32 %v4349_v10, %v4331_v36  ;;  %4354 = vrcp.f32 %v1070_v9  ;;  %v4170_v36 = vld [vmem:[#allocation14] sm:$0xff]  }
 0x5c8   :  { %3882 = vmatpush3.bf16.msra.mxu0 %v4170_v36  ;;  %v4184_v36 = vld [vmem:[#allocation16 + $0x20] ss:$8 sps:$4 sm:$0xff]  }
 0x5c9   :  { %v827_v15 = vpack.c.bf16 %v826_v11, %v825_v12  ;;  %3883 = vmatprep.subr.bf16.mxu0 %v4813_v4 }
 0x5ca   :  { %v830_v13 = vpop.permute.xlu0 %829 }
 0x5cb   :  { %3852 = vmatpush3.bf16.msra.mxu1 %v830_v13  ;;  %v4351_v16 = vpop.eup %4350 }
 0x5cc   :  { %3863 = vmatprep.subr.bf16.mxu1 %v4813_v4  ;;  %v4353_v17 = vpop.eup %4352  ;;  %v952_v18 = vmul.f32 %v4351_v16, %v4337_v45  ;;  %3884 = vmatpush3.bf16.msra.mxu0 %v4171_v39  ;;  %v3523_v16 = vld [vmem:[%s5488_s9] ss:$0 sm:$0xff]  ;;  %v4192_v39 = vld [vmem:[#allocation16 + $0x44] ss:$8 sps:$4 sm:$0xff]  }
 0x5cd   :  { %v951_v19 = vmul.f32 %v4353_v17, %v4335_v43  ;;  %3885 = vmatprep.subr.bf16.mxu0 %v4813_v4 }
 0x5ce   :  { %3854 = vmatmul.mubr.msk.bf16.vlgmr.msra.gmra.mrb[8].mxu1 %vm679_vm2, %v827_v15 }
 0x5cf   :  { %3864 = vmatpush3.bf16.msra.mxu1 %v955_v14  ;;  %3865 = vmatprep.mubr.msk.bf16.mxu1 %vm4815_vm0, %v4813_v4  ;;  %v953_v20 = vpack.c.bf16 %v952_v18, %v951_v19 }
 0x5d0   :  { %3875 = vmatprep.subr.bf16.mxu1 %v4813_v4  ;;  %3886 = vmatpush3.bf16.msra.mxu0 %v4172_v41  ;;  %v4195_v41 = vld [vmem:[#allocation16 + $0x54] ss:$8 sps:$4 sm:$0xff]  }
 0x5d1   :  { %v4355_v23 = vpop.eup %4354  ;;  %3887 = vmatprep.subr.bf16.mxu0 %v4813_v4 }
 0x5d2   :  { %v1076_v25 = vmul.f32 %v4355_v23, %v4339_v47  ;;  %v4174_v47 = vld [vmem:[#allocation14 + $0x20] sm:$0xff]  }
 0x5d4   :  { %3888 = vmatpush3.bf16.msra.mxu0 %v4173_v46  ;;  %v4199_v46 = vld [vmem:[#allocation16 + $0x70] ss:$8 sps:$4 sm:$0xff]  }
 0x5d5   :  { %3889 = vmatprep.subr.bf16.mxu0 %v4813_v4 }
 0x5d6   :  { %3866 = vmatmul.mubr.msk.bf16.vlgmr.msra.gmra.mrb[12].mxu1 %vm679_vm2, %v953_v20 }
 0x5d7   :  { %3877 = vmatprep.mubr.msk.bf16.mxu1 %vm4815_vm0, %v4813_v4 }
 0x5d8   :  { %3890 = vmatpush3.bf16.msra.mxu0 %v4174_v47 }
 0x5d9   :  { %3891 = vmatprep.subr.bf16.mxu0 %v4813_v4 }
 0x5dc   :  { %3892 = vmatpush3.bf16.msra.mxu0 %v4175_v48 }
 0x5dd   :  { %3893 = vmatprep.subr.bf16.mxu0 %v4813_v4 }
 0x5e0   :  { %3894 = vmatpush3.bf16.msra.mxu0 %v4176_v49 }
 0x5e1   :  { %3895 = vmatprep.subr.bf16.mxu0 %v4813_v4 }
 0x5e4   :  { %3896 = vmatpush3.bf16.msra.mxu0 %v4177_v52 }
 0x5f5   :  { %v1073_v21 = vpop.xlane.xlu1 %1072 }
 0x5f6   :  { %4356 = vrcp.f32 %v1073_v21 }
 0x5f9   :  { %v1080_v22 = vpop.permute.xlu1 %1079 }
 0x5fa   :  { %3876 = vmatpush3.bf16.msra.mxu1 %v1080_v22 }
 0x600   :  { %v4357_v24 = vpop.eup %4356 }
 0x601   :  { %v1077_v26 = vmul.f32 %v4357_v24, %v4345_v1  ;;  %v4178_v24 = vld [vmem:[#allocation16] ss:$8 sps:$4 sm:$0xff]  }
 0x603   :  { %v1078_v27 = vpack.c.bf16 %v1077_v26, %v1076_v25  ;;  %v4180_v25 = vld [vmem:[#allocation16 + $0x4] ss:$8 sps:$4 sm:$0xff]   ;;  %v4183_v26 = vld [vmem:[#allocation16 + $0x14] ss:$8 sps:$4 sm:$0xff]  }
 0x604   :  { %1422 = vmatprep.subr.bf16.mxu1 %v4180_v25 }
 0x605   :  { %3878 = vmatmul.mubr.msk.bf16.vlgmr.msra.gmra.mrb[16].mxu1 %vm679_vm2, %v1078_v27  ;;  %v4181_v27 = vld [vmem:[#allocation16 + $0x10] ss:$8 sps:$4 sm:$0xff]  }
 0x606   :  { %1454 = vmatprep.mubr.bf16.mxu1 %v4814_v30  ;;  %1423 = vmatpush1.bf16.msra.mxu1 %v4178_v24 }
 0x607   :  { %1424 = vmatprep.subr.bf16.mxu1 %v4183_v26 }
 0x60a   :  { %1425 = vmatpush1.bf16.msra.mxu1 %v4181_v27 }
 0x628   :  { %v741_v28 = vpop.f32.mrb[4].mxu1 }
 0x629   :  { %v3843_v29 = vpop.f32.mrb[5].mxu1 }
 0x62a   :  { %v744_v31 = vpop.f32.mrb[6].mxu1 }
 0x62b   :  { %v3844_v32 = vpop.f32.mrb[7].mxu1 }
 0x6a1   :  { %v869_v33 = vpop.f32.mrb[8].mxu1 }
 0x6a2   :  { %v3855_v34 = vpop.f32.mrb[9].mxu1 }
 0x6a3   :  { %v872_v35 = vpop.f32.mrb[10].mxu1 }
 0x6a4   :  { %v4108_v37 = vpack.i.bf16 %v872_v35, %v869_v33  ;;  %v3856_v38 = vpop.f32.mrb[11].mxu1 }
 0x6a5   :  { %v4187_v38 = vld [vmem:[#allocation16 + $0x30] ss:$8 sps:$4 sm:$0xff]  }
 0x6a6   :  { %4109 = vrot.lane.b32.xlu1 %v4108_v37, %s4817_s20  ;;  %v4189_v37 = vld [vmem:[#allocation16 + $0x34] ss:$8 sps:$4 sm:$0xff]  }
 0x6a9   :  { %v994_v40 = vpop.f32.mrb[12].mxu1 }
 0x6aa   :  { %v3867_v42 = vpop.f32.mrb[13].mxu1 }
 0x6ab   :  { %v997_v43 = vpop.f32.mrb[14].mxu1  ;;  %v4193_v42 = vld [vmem:[#allocation16 + $0x50] ss:$8 sps:$4 sm:$0xff]  }
 0x6ac   :  { %v4113_v44 = vpack.i.bf16 %v997_v43, %v994_v40  ;;  %v3868_v45 = vpop.f32.mrb[15].mxu1  ;;  %v4190_v40 = vld [vmem:[#allocation16 + $0x40] ss:$8 sps:$4 sm:$0xff]   ;;  %v4198_v43 = vld [vmem:[#allocation16 + $0x64] ss:$8 sps:$4 sm:$0xff]  }
 0x6ad   :  { %v4201_v45 = vld [vmem:[#allocation16 + $0x74] ss:$8 sps:$4 sm:$0xff]  }
 0x6ae   :  { %4114 = vrot.lane.b32.xlu0 %v4113_v44, %s4798_s7  ;;  %v4196_v44 = vld [vmem:[#allocation16 + $0x60] ss:$8 sps:$4 sm:$0xff]  }
 0x6d8   :  { %v1119_v53 = vpop.f32.mrb[16].mxu1 }
 0x6d9   :  { %v3879_v57 = vpop.f32.mrb[17].mxu1 }
 0x6da   :  { %v1122_v59 = vpop.f32.mrb[18].mxu1 }
 0x6db   :  { %v4118_v60 = vpack.i.bf16 %v1122_v59, %v1119_v53  ;;  %v3880_v61 = vpop.f32.mrb[19].mxu1 }
 0x6dc   :  { %v3532_v61 = vld [vmem:[%s5489_s2] ss:$0 sm:$0xff] }
 0x6dd   :  { %4119 = vrot.lane.b32.xlu1 %v4118_v60, %s4816_s13 }
 0x718   :  { %v4110_v62 = vpop.permute.xlu1 %4109 }
 0x719   :  { %v4112_v0 = vunpack.i.h.bf16 %v4110_v62  ;;  %v4111_v1 = vunpack.i.l.bf16 %v4110_v62 }
 0x71b   :  { %v1151_v6 = vsel %vm627_vm1, %v744_v31, %v4112_v0  ;;  %v1150_v7 = vsel %vm627_vm1, %v741_v28, %v4111_v1  ;;  %v3533_v1 = vld [vmem:[%s5490_s10] ss:$0 sm:$0xff] }
 0x720   :  { %v4115_v63 = vpop.permute.xlu0 %4114 }
 0x721   :  { %v4117_v2 = vunpack.i.h.bf16 %v4115_v63  ;;  %v4116_v3 = vunpack.i.l.bf16 %v4115_v63 }
 0x723   :  { %v1153_v10 = vsel %vm1152_vm3, %v1150_v7, %v4116_v3  ;;  %v1154_v11 = vsel %vm1152_vm3, %v1151_v6, %v4117_v2  ;;  %v4202_v7 = vld [vmem:[#allocation17 + $0x40] sm:$0xff]  }
 0x724   :  { %3708 = vmatprep.subr.bf16.mxu0 %v4202_v7 }
 0x74f   :  { %v4120_v5 = vpop.permute.xlu1 %4119 }
 0x750   :  { %v4122_v8 = vunpack.i.h.bf16 %v4120_v5  ;;  %v4121_v9 = vunpack.i.l.bf16 %v4120_v5 }
 0x752   :  { %v1156_v12 = vsel %vm1155_vm4, %v1153_v10, %v4121_v9  ;;  %v1157_v13 = vsel %vm1155_vm4, %v1154_v11, %v4122_v8  ;;  %v4203_v8 = vld [vmem:[#allocation17] sm:$0xff]   ;;  %v4204_v9 = vld [vmem:[#allocation17 + $0x48] sm:$0xff]   ;;  %v4206_v11 = vld [vmem:[#allocation17 + $0x50] sm:$0xff]  }
 0x753   :  { %v1174_v15 = vpack.c.bf16 %v1157_v13, %v1156_v12  ;;  %v4205_v10 = vld [vmem:[#allocation17 + $0x8] sm:$0xff]   ;;  %v4207_v12 = vld [vmem:[#allocation17 + $0x10] sm:$0xff]   ;;  %v4208_v13 = vld [vmem:[#allocation17 + $0x58] sm:$0xff]  }
 0x755   :  { %3898 = vmatmul.mubr.bf16.vlgmr.msra.gmra.mrb[20].mxu0 %v1174_v15  ;;  %v4209_v15 = vld [vmem:[#allocation17 + $0x18] sm:$0xff]  }
 0x756   :  { %3709 = vmatpush3.bf16.msra.mxu0 %v4203_v8 }
 0x757   :  { %3710 = vmatprep.subr.bf16.mxu0 %v4204_v9 }
 0x75a   :  { %3711 = vmatpush3.bf16.msra.mxu0 %v4205_v10 }
 0x75b   :  { %3712 = vmatprep.subr.bf16.mxu0 %v4206_v11 }
 0x75e   :  { %3713 = vmatpush3.bf16.msra.mxu0 %v4207_v12 }
 0x75f   :  { %3714 = vmatprep.subr.bf16.mxu0 %v4208_v13 }
 0x762   :  { %3715 = vmatpush3.bf16.msra.mxu0 %v4209_v15 }
 0x828   :  { %v1264_v14 = vpop.f32.mrb[20].mxu0 }
 0x829   :  { %v1265_v17 = vadd.f32 %v3523_v16, %v1264_v14  ;;  %v3899_v18 = vpop.f32.mrb[21].mxu0  ;;  %v4211_v14 = vld [vmem:[#allocation17 + $0x20] sm:$0xff]  }
 0x82a   :  { %v1267_v19 = vpop.f32.mrb[22].mxu0  ;;  %v4213_v18 = vld [vmem:[#allocation17 + $0x28] sm:$0xff]  }
 0x82b   :  { %v1268_v20 = vadd.f32 %v3523_v16, %v1267_v19  ;;  %v3900_v21 = vpop.f32.mrb[23].mxu0  ;;  %v1271_v22 = vadd.f32 %v1265_v17, %v5146_v50  ;;  %v4210_v16 = vld [vmem:[#allocation17 + $0x60] sm:$0xff]   ;;  %v4212_v17 = vld [vmem:[#allocation17 + $0x68] sm:$0xff]   ;;  %v4214_v19 = vld [vmem:[#allocation17 + $0x70] sm:$0xff]  }
 0x82c   :  { %3716 = vmatprep.subr.bf16.mxu0 %v4210_v16  ;;  %v4216_v21 = vld [vmem:[#allocation17 + $0x78] sm:$0xff]  }
 0x82d   :  { %1275 = vadd.xlane.f32.xlu0 %v1271_v22  ;;  %v1272_v23 = vadd.f32 %v1268_v20, %v5148_v51  ;;  %v4186_v51 = vld [vmem:[#allocation16 + $0x24] ss:$8 sps:$4 sm:$0xff]   ;;  %3717 = vmatpush3.bf16.msra.mxu0 %v4211_v14  ;;  %v4215_v20 = vld [vmem:[#allocation17 + $0x30] sm:$0xff]  }
 0x82e   :  { %1426 = vmatprep.subr.bf16.mxu1 %v4186_v51  ;;  %3718 = vmatprep.subr.bf16.mxu0 %v4212_v17  ;;  %v3550_v17 = vld [vmem:[%s5492_s30] ss:$0 sm:$0xff] }
 0x82f   :  { %1277 = vadd.xlane.f32.xlu1 %v1272_v23  ;;  %1427 = vmatpush1.bf16.msra.mxu1 %v4184_v36 }
 0x830   :  { %1428 = vmatprep.subr.bf16.mxu1 %v4189_v37 }
 0x831   :  { %3719 = vmatpush3.bf16.msra.mxu0 %v4213_v18 }
 0x832   :  { %3720 = vmatprep.subr.bf16.mxu0 %v4214_v19 }
 0x833   :  { %1429 = vmatpush1.bf16.msra.mxu1 %v4187_v38 }
 0x834   :  { %1430 = vmatprep.subr.bf16.mxu1 %v4192_v39 }
 0x835   :  { %3721 = vmatpush3.bf16.msra.mxu0 %v4215_v20 }
 0x836   :  { %3722 = vmatprep.subr.bf16.mxu0 %v4216_v21 }
 0x837   :  { %1431 = vmatpush1.bf16.msra.mxu1 %v4190_v40 }
 0x838   :  { %1432 = vmatprep.subr.bf16.mxu1 %v4195_v41 }
 0x83b   :  { %1433 = vmatpush1.bf16.msra.mxu1 %v4193_v42 }
 0x83c   :  { %1434 = vmatprep.subr.bf16.mxu1 %v4198_v43 }
 0x83f   :  { %1435 = vmatpush1.bf16.msra.mxu1 %v4196_v44 }
 0x840   :  { %1436 = vmatprep.subr.bf16.mxu1 %v4201_v45 }
 0x843   :  { %1437 = vmatpush1.bf16.msra.mxu1 %v4199_v46 }
 0x8ba   :  { %v1276_v28 = vpop.xlane.xlu0 %1275 }
 0x8bb   :  { %v1279_v29 = vmul.f32 0.0078125, %v1276_v28 }
 0x8bc   :  { %v1278_v31 = vpop.xlane.xlu1 %1277 }
 0x8bd   :  { %v1281_v32 = vsub.f32 %v1271_v22, %v1279_v29  ;;  %v1280_v33 = vmul.f32 0.0078125, %v1278_v31  ;;  %v4217_v22 = vld [vmem:[#allocation17 + $0x38] sm:$0xff]  }
 0x8be   :  { %3723 = vmatpush3.bf16.msra.mxu0 %v4217_v22 }
 0x8bf   :  { %v1282_v34 = vsub.f32 %v1272_v23, %v1280_v33  ;;  %v1283_v35 = vmul.f32 %v1281_v32, %v1281_v32  ;;  %3901 = vmatprep.subr.bf16.mxu0 %v4813_v4  ;;  %v1330_v23 = vld [vmem:[%s5491_s11] sm:$0x3] }
 0x8c0   :  { %v1335_v24 = vrot.slane %v1330_v23, %v5159_v55  ;;  %v1339_v25 = vrot.slane %v1330_v23, %v5164_v58 }
 0x8c1   :  { %1285 = vadd.xlane.f32.xlu0 %v1283_v35  ;;  %v1284_v50 = vmul.f32 %v1282_v34, %v1282_v34 }
 0x8c5   :  { %1287 = vadd.xlane.f32.xlu0 %v1284_v50 }
 0x94e   :  { %v1286_v47 = vpop.xlane.xlu0 %1285 }
 0x94f   :  { %v1289_v48 = vmul.f32 0.0078125, %v1286_v47 }
 0x951   :  { %v1291_v49 = vadd.f32 1e-12, %v1289_v48 }
 0x952   :  { %v1288_v52 = vpop.xlane.xlu0 %1287 }
 0x953   :  { %4358 = vrsqrt.f32 %v1291_v49  ;;  %v1290_v53 = vmul.f32 0.0078125, %v1288_v52 }
 0x955   :  { %v1292_v57 = vadd.f32 1e-12, %v1290_v53 }
 0x957   :  { %4360 = vrsqrt.f32 %v1292_v57 }
 0x95d   :  { %v4359_v59 = vpop.eup %4358 }
 0x95e   :  { %v1295_v60 = vmul.f32 %v4359_v59, %v1281_v32 }
 0x960   :  { %v1303_v0 = vmul.f32 %v3532_v61, %v1295_v60 }
 0x961   :  { %v4361_v62 = vpop.eup %4360 }
 0x962   :  { %v1296_v63 = vmul.f32 %v4361_v62, %v1282_v34  ;;  %v5260_v3 = vadd.f32 %v3533_v1, %v1303_v0 }
 0x964   :  { %v1304_v2 = vmul.f32 %v3532_v61, %v1296_v63 }
 0x966   :  { %v5262_v5 = vadd.f32 %v3533_v1, %v1304_v2 }
 0x968   :  { %v1329_v6 = vpack.c.bf16 %v5262_v5, %v5260_v3 }
 0x96a   :  { %1455 = vmatmul.mubr.bf16.vlgmr.msra.gmra.mrb[20].mxu1 %v1329_v6 }
 0x96b   :  { %1931 = vmatprep.mubr.bf16.mxu1 %v4814_v30 }
 0xa3d   :  { %v1456_v26 = vpop.f32.mrb[20].mxu1 }
 0xa3e   :  { %v1457_v27 = vadd.f32 %v1456_v26, %v1335_v24  ;;  %v1458_v28 = vpop.f32.mrb[21].mxu1 }
 0xa3f   :  { %v1459_v29 = vadd.f32 %v1458_v28, %v1339_v25  ;;  %v1460_v31 = vpop.f32.mrb[22].mxu1  ;;  %v4220_v28 = vld [vmem:[#allocation19 + $0x4] ss:$12 sps:$4 sm:$0xff]  }
 0xa40   :  { %v1469_v32 = vmul.f32 0.044715, %v1457_v27  ;;  %v1461_v33 = vadd.f32 %v1460_v31, %v1335_v24  ;;  %v1462_v34 = vpop.f32.mrb[23].mxu1  ;;  %v1465_v1 = vmul.f32 0.5, %v1457_v27  ;;  %v4224_v31 = vld [vmem:[#allocation19 + $0x1c] ss:$12 sps:$4 sm:$0xff]   ;;  %1899 = vmatprep.subr.bf16.mxu1 %v4220_v28 }
 0xa41   :  { %v1470_v35 = vmul.f32 0.044715, %v1459_v29  ;;  %v1463_v50 = vadd.f32 %v1462_v34, %v1339_v25  ;;  %v1466_v7 = vmul.f32 0.5, %v1459_v29 }
 0xa42   :  { %v1473_v51 = vmul.f32 %v1469_v32, %v1457_v27  ;;  %v1471_v36 = vmul.f32 0.044715, %v1461_v33  ;;  %v1467_v2 = vmul.f32 0.5, %v1461_v33  ;;  %v4225_v32 = vld [vmem:[#allocation19 + $0x20] ss:$12 sps:$4 sm:$0xff]  }
 0xa43   :  { %v1474_v37 = vmul.f32 %v1470_v35, %v1459_v29  ;;  %v1472_v38 = vmul.f32 0.044715, %v1463_v50  ;;  %v1468_v8 = vmul.f32 0.5, %v1463_v50 }
 0xa44   :  { %v1477_v39 = vmul.f32 %v1473_v51, %v1457_v27  ;;  %v1475_v40 = vmul.f32 %v1471_v36, %v1461_v33 }
 0xa45   :  { %v1478_v41 = vmul.f32 %v1474_v37, %v1459_v29  ;;  %v1476_v42 = vmul.f32 %v1472_v38, %v1463_v50  ;;  %v4228_v38 = vld [vmem:[#allocation19 + $0x34] ss:$12 sps:$4 sm:$0xff]  }
 0xa46   :  { %v1481_v43 = vadd.f32 %v1477_v39, %v1457_v27  ;;  %v1479_v44 = vmul.f32 %v1475_v40, %v1461_v33  ;;  %v4218_v27 = vld [vmem:[#allocation19] ss:$12 sps:$4 sm:$0xff]   ;;  %v4226_v39 = vld [vmem:[#allocation19 + $0x30] ss:$12 sps:$4 sm:$0xff]   ;;  %v4229_v40 = vld [vmem:[#allocation19 + $0x38] ss:$12 sps:$4 sm:$0xff]  }
 0xa47   :  { %v1480_v45 = vmul.f32 %v1476_v42, %v1463_v50  ;;  %v1482_v46 = vadd.f32 %v1478_v41, %v1459_v29  ;;  %v4221_v29 = vld [vmem:[#allocation19 + $0x8] ss:$12 sps:$4 sm:$0xff]   ;;  %1900 = vmatpush1.bf16.msra.mxu1 %v4218_v27  ;;  %v4232_v41 = vld [vmem:[#allocation19 + $0x4c] ss:$12 sps:$4 sm:$0xff]  }
 0xa48   :  { %v1485_v47 = vmul.f32 0.7978846, %v1481_v43  ;;  %v1483_v48 = vadd.f32 %v1479_v44, %v1461_v33  ;;  %v4222_v33 = vld [vmem:[#allocation19 + $0x18] ss:$12 sps:$4 sm:$0xff]   ;;  %1901 = vmatprep.subr.bf16.mxu1 %v4224_v31  ;;  %v4230_v42 = vld [vmem:[#allocation19 + $0x48] ss:$12 sps:$4 sm:$0xff]  }
 0xa49   :  { %v1484_v49 = vadd.f32 %v1480_v45, %v1463_v50  ;;  %v1486_v52 = vmul.f32 0.7978846, %v1482_v46  ;;  %v4233_v43 = vld [vmem:[#allocation19 + $0x50] ss:$12 sps:$4 sm:$0xff]   ;;  %v4234_v45 = vld [vmem:[#allocation19 + $0x60] ss:$12 sps:$4 sm:$0xff]  }
 0xa4a   :  { %4362 = vtanh.f32 %v1485_v47  ;;  %v1487_v53 = vmul.f32 0.7978846, %v1483_v48  ;;  %v4236_v44 = vld [vmem:[#allocation19 + $0x64] ss:$12 sps:$4 sm:$0xff]   ;;  %v4237_v46 = vld [vmem:[#allocation19 + $0x68] ss:$12 sps:$4 sm:$0xff]  }
 0xa4b   :  { %v1488_v57 = vmul.f32 0.7978846, %v1484_v49  ;;  %4364 = vtanh.f32 %v1486_v52  ;;  %1902 = vmatpush1.bf16.msra.mxu1 %v4222_v33  ;;  %v4240_v47 = vld [vmem:[#allocation19 + $0x7c] ss:$12 sps:$4 sm:$0xff]   ;;  %v4238_v48 = vld [vmem:[#allocation19 + $0x78] ss:$12 sps:$4 sm:$0xff]  }
 0xa4c   :  { %4366 = vtanh.f32 %v1487_v53  ;;  %1903 = vmatprep.subr.bf16.mxu1 %v4228_v38  ;;  %v4241_v49 = vld [vmem:[#allocation19 + $0x80] ss:$12 sps:$4 sm:$0xff]   ;;  %v4242_v53 = vld [vmem:[#allocation19 + $0x90] ss:$12 sps:$4 sm:$0xff]  }
 0xa4d   :  { %4368 = vtanh.f32 %v1488_v57  ;;  %v4244_v52 = vld [vmem:[#allocation19 + $0x94] ss:$12 sps:$4 sm:$0xff]   ;;  %v4245_v57 = vld [vmem:[#allocation19 + $0x98] ss:$12 sps:$4 sm:$0xff]  }
 0xa4f   :  { %1904 = vmatpush1.bf16.msra.mxu1 %v4226_v39 }
 0xa50   :  { %1905 = vmatprep.subr.bf16.mxu1 %v4232_v41  ;;  %v5311_v41 = vld [vmem:[#allocation5] sm:$0xff] }
 0xa53   :  { %1906 = vmatpush1.bf16.msra.mxu1 %v4230_v42 }
 0xa54   :  { %v4363_v59 = vpop.eup %4362  ;;  %1907 = vmatprep.subr.bf16.mxu1 %v4236_v44  ;;  %v5315_v44 = vld [vmem:[#allocation5 + $0x8] sm:$0xff] }
 0xa55   :  { %v4365_v60 = vpop.eup %4364  ;;  %v1493_v61 = vadd.f32 1.0, %v4363_v59  ;;  %v4248_v59 = vld [vmem:[#allocation19 + $0xac] ss:$12 sps:$4 sm:$0xff]  }
 0xa56   :  { %v4367_v62 = vpop.eup %4366  ;;  %v1494_v63 = vadd.f32 1.0, %v4365_v60  ;;  %v4246_v60 = vld [vmem:[#allocation19 + $0xa8] ss:$12 sps:$4 sm:$0xff]  }
 0xa57   :  { %v4369_v0 = vpop.eup %4368  ;;  %v1495_v6 = vadd.f32 1.0, %v4367_v62  ;;  %v1497_v10 = vmul.f32 %v1493_v61, %v1465_v1  ;;  %1908 = vmatpush1.bf16.msra.mxu1 %v4234_v45  ;;  %v4249_v61 = vld [vmem:[#allocation19 + $0xb0] ss:$12 sps:$4 sm:$0xff]  }
 0xa58   :  { %v1496_v9 = vadd.f32 1.0, %v4369_v0  ;;  %v1498_v12 = vmul.f32 %v1494_v63, %v1466_v7  ;;  %1909 = vmatprep.subr.bf16.mxu1 %v4240_v47 }
 0xa59   :  { %v1499_v11 = vmul.f32 %v1495_v6, %v1467_v2 }
 0xa5a   :  { %v1500_v13 = vmul.f32 %v1496_v9, %v1468_v8  ;;  %v3567_v8 = vld [vmem:[%s5493_s17] ss:$0 sm:$0xff] }
 0xa5b   :  { %v1533_v15 = vpack.c.bf16 %v1499_v11, %v1497_v10  ;;  %1910 = vmatpush1.bf16.msra.mxu1 %v4238_v48 }
 0xa5c   :  { %v1534_v16 = vpack.c.bf16 %v1500_v13, %v1498_v12  ;;  %1911 = vmatprep.subr.bf16.mxu1 %v4244_v52  ;;  %v3568_v13 = vld [vmem:[%s5494_s15] ss:$0 sm:$0xff] }
 0xa5e   :  { %1670 = vmatprep.mubr.bf16.mxu0 %v1534_v16 }
 0xa5f   :  { %1671 = vmatmul.mubr.bf16.vlgmr.msra.gmra.mrb[24].mxu0 %v1533_v15  ;;  %1912 = vmatpush1.bf16.msra.mxu1 %v4242_v53 }
 0xa60   :  { %3917 = vmatprep.mubr.msk.bf16.mxu0 %vm4815_vm0, %v4813_v4  ;;  %3902 = vmatpush3.bf16.msra.mxu0 %v4221_v29 }
 0xa61   :  { %3903 = vmatprep.subr.bf16.mxu0 %v4813_v4  ;;  %1913 = vmatprep.subr.bf16.mxu1 %v4248_v59 }
 0xa63   :  { %1914 = vmatpush1.bf16.msra.mxu1 %v4246_v60 }
 0xa64   :  { %3904 = vmatpush3.bf16.msra.mxu0 %v4225_v32  ;;  %3921 = vmatprep.subr.bf16.mxu1 %v4813_v4 }
 0xa65   :  { %3905 = vmatprep.subr.bf16.mxu0 %v4813_v4 }
 0xa68   :  { %3906 = vmatpush3.bf16.msra.mxu0 %v4229_v40 }
 0xa69   :  { %3907 = vmatprep.subr.bf16.mxu0 %v4813_v4 }
 0xa6c   :  { %3908 = vmatpush3.bf16.msra.mxu0 %v4233_v43 }
 0xa6d   :  { %3909 = vmatprep.subr.bf16.mxu0 %v4813_v4 }
 0xa70   :  { %3910 = vmatpush3.bf16.msra.mxu0 %v4237_v46 }
 0xa71   :  { %3911 = vmatprep.subr.bf16.mxu0 %v4813_v4 }
 0xa74   :  { %3912 = vmatpush3.bf16.msra.mxu0 %v4241_v49 }
 0xa75   :  { %3913 = vmatprep.subr.bf16.mxu0 %v4813_v4 }
 0xa78   :  { %3914 = vmatpush3.bf16.msra.mxu0 %v4245_v57 }
 0xa79   :  { %3915 = vmatprep.subr.bf16.mxu0 %v4813_v4 }
 0xa7c   :  { %3916 = vmatpush3.bf16.msra.mxu0 %v4249_v61 }
 0xa7d   :  { %3945 = vmatprep.subr.bf16.mxu0 %v4813_v4 }
 0xb32   :  { %v3724_v14 = vpop.f32.mrb[24].mxu0 }
 0xb33   :  { %v3725_v18 = vpop.f32.mrb[25].mxu0 }
 0xb34   :  { %v3726_v19 = vadd.f32 %v3725_v18, %v3724_v14  ;;  %v3727_v20 = vpop.f32.mrb[26].mxu0  ;;  %v1754_v18 = vld [vmem:[%s5495_s14] sm:$0x7] }
 0xb35   :  { %v3728_v21 = vpop.f32.mrb[27].mxu0 }
 0xb36   :  { %v1673_v22 = vadd.f32 %v3726_v19, %v3550_v17  ;;  %v3729_v23 = vadd.f32 %v3728_v21, %v3727_v20  ;;  %v1759_v19 = vrot.slane %v1754_v18, %v5159_v55  ;;  %v1767_v20 = vrot.slane %v1754_v18, %v408_v56 }
 0xb38   :  { %v1676_v24 = vadd.f32 %v3729_v23, %v3550_v17  ;;  %v1679_v25 = vadd.f32 %v1673_v22, %v5260_v3  ;;  %v1763_v23 = vrot.slane %v1754_v18, %v5164_v58 }
 0xb3a   :  { %1683 = vadd.xlane.f32.xlu0 %v1679_v25  ;;  %v1680_v26 = vadd.f32 %v1676_v24, %v5262_v5 }
 0xb3c   :  { %1685 = vadd.xlane.f32.xlu1 %v1680_v26 }
 0xbc7   :  { %v1684_v3 = vpop.xlane.xlu0 %1683 }
 0xbc8   :  { %v1687_v34 = vmul.f32 0.0078125, %v1684_v3 }
 0xbc9   :  { %v1686_v5 = vpop.xlane.xlu1 %1685 }
 0xbca   :  { %v1689_v35 = vsub.f32 %v1679_v25, %v1687_v34  ;;  %v1688_v50 = vmul.f32 0.0078125, %v1686_v5 }
 0xbcc   :  { %v1690_v51 = vsub.f32 %v1680_v26, %v1688_v50  ;;  %v1691_v36 = vmul.f32 %v1689_v35, %v1689_v35 }
 0xbce   :  { %1693 = vadd.xlane.f32.xlu0 %v1691_v36  ;;  %v1692_v37 = vmul.f32 %v1690_v51, %v1690_v51 }
 0xbd0   :  { %1695 = vadd.xlane.f32.xlu1 %v1692_v37 }
 0xc5b   :  { %v1694_v62 = vpop.xlane.xlu0 %1693 }
 0xc5c   :  { %v1697_v63 = vmul.f32 0.0078125, %v1694_v62 }
 0xc5d   :  { %v1696_v0 = vpop.xlane.xlu1 %1695 }
 0xc5e   :  { %v1699_v1 = vadd.f32 1e-12, %v1697_v63  ;;  %v1698_v2 = vmul.f32 0.0078125, %v1696_v0 }
 0xc60   :  { %4370 = vrsqrt.f32 %v1699_v1  ;;  %v1700_v6 = vadd.f32 1e-12, %v1698_v2 }
 0xc62   :  { %4372 = vrsqrt.f32 %v1700_v6 }
 0xc6a   :  { %v4371_v7 = vpop.eup %4370 }
 0xc6b   :  { %v1703_v9 = vmul.f32 %v4371_v7, %v1689_v35 }
 0xc6c   :  { %v4373_v10 = vpop.eup %4372 }
 0xc6d   :  { %v1704_v11 = vmul.f32 %v4373_v10, %v1690_v51  ;;  %v1711_v12 = vmul.f32 %v3567_v8, %v1703_v9 }
 0xc6f   :  { %v1712_v15 = vmul.f32 %v3567_v8, %v1704_v11  ;;  %v5287_v16 = vadd.f32 %v3568_v13, %v1711_v12 }
 0xc71   :  { %v5289_v14 = vadd.f32 %v3568_v13, %v1712_v15 }
 0xc73   :  { %v1753_v17 = vpack.c.bf16 %v5289_v14, %v5287_v16 }
 0xc75   :  { %1932 = vmatmul.mubr.bf16.vlgmr.msra.gmra.mrb[24].mxu1 %v1753_v17  ;;  %3918 = vmatmul.mubr.bf16.vlgmr.msra.gmra.mrb[28].mxu0 %v1753_v17 }
 0xc76   :  { %3923 = vmatprep.mubr.msk.bf16.mxu1 %vm4815_vm0, %v4813_v4  ;;  %3947 = vmatprep.mubr.msk.bf16.mxu0 %vm4815_vm0, %v4813_v4 }
 0xd48   :  { %v1933_v21 = vpop.f32.mrb[24].mxu1  ;;  %v1976_v22 = vpop.f32.mrb[28].mxu0 }
 0xd49   :  { %v1935_v24 = vpop.f32.mrb[25].mxu1  ;;  %v3919_v25 = vpop.f32.mrb[29].mxu0  ;;  %v1934_v28 = vadd.f32 %v1933_v21, %v1759_v19  ;;  %v1977_v29 = vadd.f32 %v1976_v22, %v1767_v20 }
 0xd4a   :  { %v1937_v26 = vpop.f32.mrb[26].mxu1  ;;  %v1979_v27 = vpop.f32.mrb[30].mxu0  ;;  %v1936_v34 = vadd.f32 %v1935_v24, %v1763_v23 }
 0xd4b   :  { %v1938_v31 = vadd.f32 %v1937_v26, %v1759_v19  ;;  %v1980_v32 = vadd.f32 %v1979_v27, %v1767_v20  ;;  %v1939_v33 = vpop.f32.mrb[27].mxu1  ;;  %v3920_v3 = vpop.f32.mrb[31].mxu0 }
 0xd4c   :  { %v1940_v5 = vadd.f32 %v1939_v33, %v1763_v23 }
 0xd4d   :  { %v1983_v35 = vpack.c.bf16 %v1938_v31, %v1934_v28  ;;  %v5302_v50 = vpack.c.bf16 %v1980_v32, %v1977_v29 }
 0xd4e   :  { %v1984_v54 = vpack.c.bf16 %v1940_v5, %v1936_v34 }
 0xd50   :  { %v1989_v56 = vsel %vm627_vm1, %v1984_v54, 0 }
 0xd51   :  { %3922 = vmatpush3.bf16.xpose.msra.mxu1 %v1989_v56 }
 0xd52   :  { %3927 = vmatprep.subr.bf16.mxu1 %v4813_v4 }
 0xd58   :  { %3924 = vmatmul.mubr.msk.bf16.vlgmr.msra.gmra.mrb[28].mxu1 %vm627_vm1, %v1983_v35 }
 0xd59   :  { %3928 = vmatpush3.bf16.msra.mxu1 %v5302_v50  ;;  %3929 = vmatprep.mubr.msk.bf16.mxu1 %vm4815_vm0, %v4813_v4 }
 0xd5a   :  { %3933 = vmatprep.subr.bf16.mxu1 %v4813_v4 }
 0xe2b   :  { %v2025_v51 = vpop.f32.mrb[28].mxu1 }
 0xe2c   :  { %v2032_v36 = vmul.f32 0.17677669, %v2025_v51  ;;  %v3925_v37 = vpop.f32.mrb[29].mxu1 }
 0xe2d   :  { %v2028_v38 = vpop.f32.mrb[30].mxu1 }
 0xe2e   :  { %v2033_v39 = vmul.f32 0.17677669, %v2028_v38  ;;  %v3926_v40 = vpop.f32.mrb[31].mxu1  ;;  %v2034_v42 = vadd.f32 %v5311_v41, %v2032_v36 }
 0xe30   :  { %v2036_v43 = vsel %vm679_vm2, %v2034_v42, -inf  ;;  %v2035_v45 = vadd.f32 %v5315_v44, %v2033_v39 }
 0xe31   :  { %2037 = vmax.xlane.f32.xlu0 %v2036_v43 }
 0xe32   :  { %v2039_v46 = vsel %vm679_vm2, %v2035_v45, -inf }
 0xe33   :  { %2040 = vmax.xlane.f32.xlu1 %v2039_v46 }
 0xebe   :  { %v2038_v47 = vpop.xlane.xlu0 %2037 }
 0xebf   :  { %v2042_v48 = vsub.f32 %v2034_v42, %v2038_v47 }
 0xec0   :  { %v2041_v49 = vpop.xlane.xlu1 %2040 }
 0xec1   :  { %v2044_v52 = vmul.f32 1.442695, %v2042_v48  ;;  %v2043_v53 = vsub.f32 %v2035_v45, %v2041_v49 }
 0xec3   :  { %4374 = vpow2.f32 %v2044_v52  ;;  %v2046_v57 = vmul.f32 1.442695, %v2043_v53 }
 0xec5   :  { %4376 = vpow2.f32 %v2046_v57 }
 0xecd   :  { %v4375_v59 = vpop.eup %4374 }
 0xece   :  { %v2048_v60 = vsel %vm679_vm2, %v4375_v59, 0.0 }
 0xecf   :  { %v4377_v61 = vpop.eup %4376  ;;  %2049 = vadd.xlane.f32.xlu0 %v2048_v60 }
 0xed0   :  { %v2051_v62 = vsel %vm679_vm2, %v4377_v61, 0.0 }
 0xed1   :  { %2052 = vadd.xlane.f32.xlu1 %v2051_v62 }
 0xee2   :  { %2105 = vrot.lane.b32.xlu1 %v1983_v35, %s4816_s13 }
 0xee5   :  { %2108 = vrot.lane.b32.xlu0 %v1984_v54, %s4816_s13 }
 0xee6   :  { %2234 = vrot.lane.b32.xlu1 %v1984_v54, %s4798_s7 }
 0xee9   :  { %2359 = vrot.lane.b32.xlu0 %v1984_v54, %s4817_s20 }
 0xeea   :  { %2232 = vrot.lane.b32.xlu1 %v1983_v35, %s4798_s7 }
 0xeee   :  { %2357 = vrot.lane.b32.xlu1 %v1983_v35, %s4817_s20 }
 0xf5c   :  { %v2050_v63 = vpop.xlane.xlu0 %2049 }
 0xf5d   :  { %4378 = vrcp.f32 %v2050_v63 }
 0xf5e   :  { %v2053_v0 = vpop.xlane.xlu1 %2052 }
 0xf5f   :  { %4380 = vrcp.f32 %v2053_v0 }
 0xf60   :  { %v2109_v2 = vpop.permute.xlu0 %2108 }
 0xf61   :  { %v2114_v15 = vsel %vm627_vm1, %v2109_v2, 0 }
 0xf62   :  { %v2106_v1 = vpop.permute.xlu1 %2105 }
 0xf64   :  { %v2360_v12 = vpop.permute.xlu0 %2359 }
 0xf65   :  { %v2365_v18 = vsel %vm627_vm1, %v2360_v12, 0 }
 0xf66   :  { %v2235_v6 = vpop.permute.xlu1 %2234 }
 0xf67   :  { %v4379_v7 = vpop.eup %4378  ;;  %v2240_v8 = vsel %vm627_vm1, %v2235_v6, 0 }
 0xf68   :  { %3946 = vmatpush3.bf16.xpose.msra.mxu0 %v2240_v8  ;;  %v2056_v10 = vmul.f32 %v4379_v7, %v4375_v59 }
 0xf69   :  { %v4381_v9 = vpop.eup %4380  ;;  %3957 = vmatprep.subr.bf16.mxu0 %v4813_v4 }
 0xf6a   :  { %v2057_v11 = vmul.f32 %v4381_v9, %v4377_v61  ;;  %v2233_v17 = vpop.permute.xlu1 %2232 }
 0xf6c   :  { %v2058_v13 = vpack.c.bf16 %v2057_v11, %v2056_v10 }
 0xf6e   :  { %3930 = vmatmul.mubr.msk.bf16.vlgmr.msra.gmra.mrb[32].mxu1 %vm679_vm2, %v2058_v13  ;;  %v2358_v19 = vpop.permute.xlu1 %2357 }
 0xf6f   :  { %3934 = vmatpush3.bf16.xpose.msra.mxu1 %v2114_v15  ;;  %3948 = vmatmul.mubr.msk.bf16.vlgmr.msra.gmra.mrb[32].mxu0 %vm627_vm1, %v2233_v17 }
 0xf70   :  { %3958 = vmatpush3.bf16.xpose.msra.mxu0 %v2365_v18  ;;  %3935 = vmatprep.mubr.msk.bf16.mxu1 %vm4815_vm0, %v4813_v4 }
 0xf71   :  { %3959 = vmatprep.mubr.msk.bf16.mxu0 %vm4815_vm0, %v4813_v4  ;;  %3939 = vmatprep.subr.bf16.mxu1 %v4813_v4 }
 0xf72   :  { %3969 = vmatprep.subr.bf16.mxu0 %v4813_v4 }
 0xf76   :  { %3936 = vmatmul.mubr.msk.bf16.vlgmr.msra.gmra.mrb[36].mxu1 %vm627_vm1, %v2106_v1 }
 0xf77   :  { %3960 = vmatmul.mubr.msk.bf16.vlgmr.msra.gmra.mrb[36].mxu0 %vm627_vm1, %v2358_v19  ;;  %3941 = vmatprep.mubr.msk.bf16.mxu1 %vm4815_vm0, %v4813_v4 }
 0xf78   :  { %3985 = vmatprep.mubr.msk.bf16.mxu0 %vm4815_vm0, %v4813_v4 }
0x1041   :  { %v5345_v20 = vpop.f32.mrb[32].mxu1 }
0x1042   :  { %v3931_v21 = vpop.f32.mrb[33].mxu1  ;;  %v2276_v22 = vpop.f32.mrb[32].mxu0 }
0x1043   :  { %v5347_v23 = vpop.f32.mrb[34].mxu1  ;;  %v3949_v24 = vpop.f32.mrb[33].mxu0  ;;  %v2283_v29 = vmul.f32 0.17677669, %v2276_v22 }
0x1044   :  { %v3932_v25 = vpop.f32.mrb[35].mxu1  ;;  %v2279_v26 = vpop.f32.mrb[34].mxu0 }
0x1045   :  { %v3950_v27 = vpop.f32.mrb[35].mxu0  ;;  %v2284_v37 = vmul.f32 0.17677669, %v2279_v26  ;;  %v2285_v40 = vadd.f32 %v5311_v41, %v2283_v29 }
0x1047   :  { %v2287_v46 = vsel %vm679_vm2, %v2285_v40, -inf  ;;  %v2286_v47 = vadd.f32 %v5315_v44, %v2284_v37 }
0x1049   :  { %v2150_v28 = vpop.f32.mrb[36].mxu1  ;;  %v2290_v49 = vsel %vm679_vm2, %v2286_v47, -inf }
0x104a   :  { %v2157_v31 = vmul.f32 0.17677669, %v2150_v28  ;;  %v3937_v32 = vpop.f32.mrb[37].mxu1  ;;  %v2401_v33 = vpop.f32.mrb[36].mxu0 }
0x104b   :  { %v2153_v3 = vpop.f32.mrb[38].mxu1  ;;  %v3961_v34 = vpop.f32.mrb[37].mxu0  ;;  %v2408_v45 = vmul.f32 0.17677669, %v2401_v33 }
0x104c   :  { %v2158_v5 = vmul.f32 0.17677669, %v2153_v3  ;;  %v3938_v35 = vpop.f32.mrb[39].mxu1  ;;  %v2404_v54 = vpop.f32.mrb[38].mxu0  ;;  %v2159_v56 = vadd.f32 %v5311_v41, %v2157_v31 }
0x104d   :  { %v2409_v51 = vmul.f32 0.17677669, %v2404_v54  ;;  %v3962_v36 = vpop.f32.mrb[39].mxu0  ;;  %v2410_v52 = vadd.f32 %v5311_v41, %v2408_v45 }
0x104e   :  { %v2161_v38 = vsel %vm679_vm2, %v2159_v56, -inf  ;;  %v2160_v39 = vadd.f32 %v5315_v44, %v2158_v5 }
0x104f   :  { %2162 = vmax.xlane.f32.xlu0 %v2161_v38  ;;  %v2411_v43 = vadd.f32 %v5315_v44, %v2409_v51  ;;  %v2412_v53 = vsel %vm679_vm2, %v2410_v52, -inf }
0x1050   :  { %v2164_v42 = vsel %vm679_vm2, %v2160_v39, -inf }
0x1051   :  { %2165 = vmax.xlane.f32.xlu1 %v2164_v42  ;;  %v2415_v48 = vsel %vm679_vm2, %v2411_v43, -inf }
0x1053   :  { %2288 = vmax.xlane.f32.xlu0 %v2287_v46 }
0x1055   :  { %2416 = vmax.xlane.f32.xlu1 %v2415_v48 }
0x1057   :  { %2291 = vmax.xlane.f32.xlu0 %v2290_v49 }
0x105b   :  { %2413 = vmax.xlane.f32.xlu0 %v2412_v53  ;;  %v4251_v53 = vld [vmem:[%s5496_s29 + $0x8] sm:$0xff]  }
0x10dc   :  { %v2163_v57 = vpop.xlane.xlu0 %2162 }
0x10dd   :  { %v2167_v2 = vsub.f32 %v2159_v56, %v2163_v57  ;;  %v4252_v57 = vld [vmem:[%s5496_s29 + $0x10] sm:$0xff]  }
0x10de   :  { %v2166_v59 = vpop.xlane.xlu1 %2165 }
0x10df   :  { %v2168_v6 = vsub.f32 %v2160_v39, %v2166_v59  ;;  %v2169_v10 = vmul.f32 1.442695, %v2167_v2  ;;  %v4253_v59 = vld [vmem:[%s5496_s29 + $0x18] sm:$0xff]  }
0x10e0   :  { %v2289_v60 = vpop.xlane.xlu0 %2288 }
0x10e1   :  { %v2293_v61 = vsub.f32 %v2285_v40, %v2289_v60  ;;  %v2171_v11 = vmul.f32 1.442695, %v2168_v6  ;;  %v4254_v60 = vld [vmem:[%s5496_s29 + $0x20] sm:$0xff]  }
0x10e2   :  { %v2417_v62 = vpop.xlane.xlu1 %2416 }
0x10e3   :  { %v2295_v63 = vmul.f32 1.442695, %v2293_v61  ;;  %v2419_v0 = vsub.f32 %v2411_v43, %v2417_v62  ;;  %v4255_v62 = vld [vmem:[%s5496_s29 + $0x28] sm:$0xff]  }
0x10e4   :  { %v2292_v44 = vpop.xlane.xlu0 %2291 }
0x10e5   :  { %4382 = vpow2.f32 %v2295_v63  ;;  %v2294_v1 = vsub.f32 %v2286_v47, %v2292_v44  ;;  %v2422_v7 = vmul.f32 1.442695, %v2419_v0 }
0x10e7   :  { %v2297_v8 = vmul.f32 1.442695, %v2294_v1  ;;  %v4256_v1 = vld [vmem:[%s5496_s29 + $0x30] sm:$0xff]  }
0x10e8   :  { %v2414_v9 = vpop.xlane.xlu0 %2413 }
0x10e9   :  { %4384 = vpow2.f32 %v2297_v8  ;;  %v2418_v41 = vsub.f32 %v2410_v52, %v2414_v9  ;;  %v4250_v52 = vld [vmem:[%s5496_s29] sm:$0xff]  }
0x10ea   :  { %4386 = vpow2.f32 %v2422_v7  ;;  %3970 = vmatpush3.bf16.msra.mxu0 %v4250_v52  ;;  %v4257_v7 = vld [vmem:[%s5496_s29 + $0x38] sm:$0xff]   ;;  %v4264_v52 = vld [vmem:[#allocation20 + $0x20] ss:$8 sps:$4 sm:$0xff]  }
0x10eb   :  { %v2420_v12 = vmul.f32 1.442695, %v2418_v41  ;;  %3971 = vmatprep.subr.bf16.mxu0 %v4813_v4 }
0x10ed   :  { %4388 = vpow2.f32 %v2420_v12 }
0x10ee   :  { %4390 = vpow2.f32 %v2169_v10  ;;  %3972 = vmatpush3.bf16.msra.mxu0 %v4251_v53  ;;  %v4269_v53 = vld [vmem:[#allocation20 + $0x34] ss:$8 sps:$4 sm:$0xff]  }
0x10ef   :  { %v4383_v13 = vpop.eup %4382  ;;  %4392 = vpow2.f32 %v2171_v11  ;;  %3973 = vmatprep.subr.bf16.mxu0 %v4813_v4 }
0x10f0   :  { %v2299_v15 = vsel %vm679_vm2, %v4383_v13, 0.0 }
0x10f1   :  { %2300 = vadd.xlane.f32.xlu0 %v2299_v15 }
0x10f2   :  { %3974 = vmatpush3.bf16.msra.mxu0 %v4252_v57  ;;  %v4267_v57 = vld [vmem:[#allocation20 + $0x30] ss:$8 sps:$4 sm:$0xff]  }
0x10f3   :  { %v4385_v17 = vpop.eup %4384  ;;  %3975 = vmatprep.subr.bf16.mxu0 %v4813_v4 }
0x10f4   :  { %v2302_v18 = vsel %vm679_vm2, %v4385_v17, 0.0  ;;  %v4387_v19 = vpop.eup %4386 }
0x10f5   :  { %2303 = vadd.xlane.f32.xlu1 %v2302_v18  ;;  %v2427_v25 = vsel %vm679_vm2, %v4387_v19, 0.0 }
0x10f6   :  { %3976 = vmatpush3.bf16.msra.mxu0 %v4253_v59  ;;  %v4272_v59 = vld [vmem:[#allocation20 + $0x44] ss:$8 sps:$4 sm:$0xff]  }
0x10f7   :  { %v4389_v21 = vpop.eup %4388  ;;  %3977 = vmatprep.subr.bf16.mxu0 %v4813_v4 }
0x10f8   :  { %v4391_v22 = vpop.eup %4390  ;;  %v2424_v24 = vsel %vm679_vm2, %v4389_v21, 0.0 }
0x10f9   :  { %v4393_v26 = vpop.eup %4392  ;;  %2425 = vadd.xlane.f32.xlu0 %v2424_v24  ;;  %2428 = vadd.xlane.f32.xlu1 %v2427_v25  ;;  %v2173_v27 = vsel %vm679_vm2, %v4391_v22, 0.0 }
0x10fa   :  { %v2176_v28 = vsel %vm679_vm2, %v4393_v26, 0.0  ;;  %3978 = vmatpush3.bf16.msra.mxu0 %v4254_v60  ;;  %v4270_v60 = vld [vmem:[#allocation20 + $0x40] ss:$8 sps:$4 sm:$0xff]  }
0x10fb   :  { %3979 = vmatprep.subr.bf16.mxu0 %v4813_v4 }
0x10fd   :  { %2174 = vadd.xlane.f32.xlu0 %v2173_v27  ;;  %2177 = vadd.xlane.f32.xlu1 %v2176_v28 }
0x10fe   :  { %3980 = vmatpush3.bf16.msra.mxu0 %v4255_v62  ;;  %v4278_v62 = vld [vmem:[#allocation20 + $0x64] ss:$8 sps:$4 sm:$0xff]  }
0x10ff   :  { %3981 = vmatprep.subr.bf16.mxu0 %v4813_v4 }
0x1102   :  { %3982 = vmatpush3.bf16.msra.mxu0 %v4256_v1 }
0x1103   :  { %3983 = vmatprep.subr.bf16.mxu0 %v4813_v4 }
0x1106   :  { %3984 = vmatpush3.bf16.msra.mxu0 %v4257_v7 }
0x110e   :  { %2310 = vrot.lane.b32.xlu1 %v5302_v50, %s4798_s7 }
0x1112   :  { %2435 = vrot.lane.b32.xlu1 %v5302_v50, %s4817_s20 }
0x1113   :  { %2185 = vrot.lane.b32.xlu0 %v5302_v50, %s4816_s13 }
0x117e   :  { %v2301_v29 = vpop.xlane.xlu0 %2300 }
0x1182   :  { %v2304_v31 = vpop.xlane.xlu1 %2303 }
0x1186   :  { %v2426_v32 = vpop.xlane.xlu0 %2425  ;;  %v2429_v33 = vpop.xlane.xlu1 %2428 }
0x118a   :  { %v2175_v3 = vpop.xlane.xlu0 %2174  ;;  %v2178_v34 = vpop.xlane.xlu1 %2177 }
0x118b   :  { %4394 = vrcp.f32 %v2175_v3 }
0x118c   :  { %4396 = vrcp.f32 %v2178_v34 }
0x118d   :  { %4398 = vrcp.f32 %v2304_v31 }
0x118e   :  { %v2186_v5 = vpop.permute.xlu0 %2185  ;;  %4400 = vrcp.f32 %v2301_v29  ;;  %v2311_v37 = vpop.permute.xlu1 %2310 }
0x118f   :  { %3940 = vmatpush3.bf16.msra.mxu1 %v2186_v5  ;;  %4402 = vrcp.f32 %v2426_v32  ;;  %v3601_v5 = vld [vmem:[%s5497_s16] ss:$0 sm:$0xff] }
0x1190   :  { %3951 = vmatprep.subr.bf16.mxu1 %v4813_v4  ;;  %4404 = vrcp.f32 %v2429_v33 }
0x1192   :  { %v2436_v46 = vpop.permute.xlu1 %2435 }
0x1195   :  { %v4395_v35 = vpop.eup %4394 }
0x1196   :  { %v4397_v54 = vpop.eup %4396  ;;  %v2181_v56 = vmul.f32 %v4395_v35, %v4391_v22 }
0x1197   :  { %v2182_v51 = vmul.f32 %v4397_v54, %v4393_v26  ;;  %v4399_v36 = vpop.eup %4398 }
0x1198   :  { %v4401_v38 = vpop.eup %4400  ;;  %v2308_v39 = vmul.f32 %v4399_v36, %v4385_v17 }
0x1199   :  { %v2183_v50 = vpack.c.bf16 %v2182_v51, %v2181_v56  ;;  %v2307_v40 = vmul.f32 %v4401_v38, %v4383_v13  ;;  %v4403_v42 = vpop.eup %4402  ;;  %v4260_v38 = vld [vmem:[#allocation20 + $0x4] ss:$8 sps:$4 sm:$0xff]  }
0x119a   :  { %v4405_v45 = vpop.eup %4404  ;;  %v2432_v47 = vmul.f32 %v4403_v42, %v4389_v21 }
0x119b   :  { %3942 = vmatmul.mubr.msk.bf16.vlgmr.msra.gmra.mrb[40].mxu1 %vm679_vm2, %v2183_v50  ;;  %v2309_v43 = vpack.c.bf16 %v2308_v39, %v2307_v40  ;;  %v2433_v48 = vmul.f32 %v4405_v45, %v4387_v19  ;;  %v4263_v39 = vld [vmem:[#allocation20 + $0x14] ss:$8 sps:$4 sm:$0xff]   ;;  %v4261_v40 = vld [vmem:[#allocation20 + $0x10] ss:$8 sps:$4 sm:$0xff]  }
0x119c   :  { %3952 = vmatpush3.bf16.msra.mxu1 %v2311_v37  ;;  %3953 = vmatprep.mubr.msk.bf16.mxu1 %vm4815_vm0, %v4813_v4  ;;  %v4258_v37 = vld [vmem:[#allocation20] ss:$8 sps:$4 sm:$0xff]  }
0x119d   :  { %3963 = vmatprep.subr.bf16.mxu1 %v4813_v4  ;;  %v2434_v49 = vpack.c.bf16 %v2433_v48, %v2432_v47 }
0x11a3   :  { %3954 = vmatmul.mubr.msk.bf16.vlgmr.msra.gmra.mrb[44].mxu1 %vm679_vm2, %v2309_v43 }
0x11a4   :  { %3964 = vmatpush3.bf16.msra.mxu1 %v2436_v46  ;;  %3965 = vmatprep.mubr.msk.bf16.mxu1 %vm4815_vm0, %v4813_v4 }
0x11a5   :  { %2776 = vmatprep.subr.bf16.mxu1 %v4260_v38 }
0x11ab   :  { %3966 = vmatmul.mubr.msk.bf16.vlgmr.msra.gmra.mrb[48].mxu1 %vm679_vm2, %v2434_v49 }
0x11ac   :  { %2808 = vmatprep.mubr.bf16.mxu1 %v4814_v30  ;;  %2777 = vmatpush1.bf16.msra.mxu1 %v4258_v37 }
0x11ad   :  { %2778 = vmatprep.subr.bf16.mxu1 %v4263_v39 }
0x11b0   :  { %2779 = vmatpush1.bf16.msra.mxu1 %v4261_v40 }
0x126e   :  { %v2225_v30 = vpop.f32.mrb[40].mxu1 }
0x126f   :  { %v3943_v61 = vpop.f32.mrb[41].mxu1 }
0x1270   :  { %v2228_v63 = vpop.f32.mrb[42].mxu1  ;;  %v4273_v61 = vld [vmem:[#allocation20 + $0x50] ss:$8 sps:$4 sm:$0xff]  }
0x1271   :  { %v4123_v0 = vpack.i.bf16 %v2228_v63, %v2225_v30  ;;  %v3944_v44 = vpop.f32.mrb[43].mxu1  ;;  %v4275_v30 = vld [vmem:[#allocation20 + $0x54] ss:$8 sps:$4 sm:$0xff]   ;;  %v4276_v63 = vld [vmem:[#allocation20 + $0x60] ss:$8 sps:$4 sm:$0xff]  }
0x1272   :  { %v4279_v44 = vld [vmem:[#allocation20 + $0x70] ss:$8 sps:$4 sm:$0xff]  }
0x1273   :  { %4124 = vrot.lane.b32.xlu1 %v4123_v0, %s4817_s20  ;;  %v4281_v0 = vld [vmem:[#allocation20 + $0x74] ss:$8 sps:$4 sm:$0xff]  }
0x1276   :  { %v2350_v2 = vpop.f32.mrb[44].mxu1 }
0x1277   :  { %v3955_v6 = vpop.f32.mrb[45].mxu1 }
0x1278   :  { %v2353_v8 = vpop.f32.mrb[46].mxu1 }
0x1279   :  { %v4128_v9 = vpack.i.bf16 %v2353_v8, %v2350_v2  ;;  %v3956_v41 = vpop.f32.mrb[47].mxu1 }
0x127b   :  { %4129 = vrot.lane.b32.xlu0 %v4128_v9, %s4798_s7  ;;  %s5498_s7 = sld [smem:[#allocation46_spill]] }
0x127e   :  { %v2475_v10 = vpop.f32.mrb[48].mxu1 }
0x127f   :  { %v3967_v11 = vpop.f32.mrb[49].mxu1 }
0x1280   :  { %v2478_v12 = vpop.f32.mrb[50].mxu1 }
0x1281   :  { %v4133_v13 = vpack.i.bf16 %v2478_v12, %v2475_v10  ;;  %v3968_v15 = vpop.f32.mrb[51].mxu1  ;;  %v3610_v11 = vld [vmem:[%s5498_s7] ss:$0 sm:$0xff] }
0x1283   :  { %4134 = vrot.lane.b32.xlu1 %v4133_v13, %s4816_s13 }
0x12e5   :  { %v4125_v17 = vpop.permute.xlu1 %4124 }
0x12e6   :  { %v4127_v19 = vunpack.i.h.bf16 %v4125_v17  ;;  %v4126_v21 = vunpack.i.l.bf16 %v4125_v17  ;;  %v3611_v17 = vld [vmem:[%s5499_s18] ss:$0 sm:$0xff] }
0x12e8   :  { %v2507_v26 = vsel %vm627_vm1, %v5347_v23, %v4127_v19  ;;  %v2506_v27 = vsel %vm627_vm1, %v5345_v20, %v4126_v21 }
0x12ed   :  { %v4130_v18 = vpop.permute.xlu0 %4129 }
0x12ee   :  { %v4132_v22 = vunpack.i.h.bf16 %v4130_v18  ;;  %v4131_v24 = vunpack.i.l.bf16 %v4130_v18 }
0x12f0   :  { %v2509_v31 = vsel %vm1152_vm3, %v2507_v26, %v4132_v22  ;;  %v2508_v32 = vsel %vm1152_vm3, %v2506_v27, %v4131_v24  ;;  %v4282_v24 = vld [vmem:[#allocation22 + $0x40] sm:$0xff]   ;;  %v4284_v26 = vld [vmem:[#allocation22 + $0x48] sm:$0xff]  }
0x12f1   :  { %3764 = vmatprep.subr.bf16.mxu0 %v4282_v24  ;;  %v4285_v27 = vld [vmem:[#allocation22 + $0x8] sm:$0xff]  }
0x12f5   :  { %v4135_v25 = vpop.permute.xlu1 %4134 }
0x12f6   :  { %v4137_v28 = vunpack.i.h.bf16 %v4135_v25  ;;  %v4136_v29 = vunpack.i.l.bf16 %v4135_v25  ;;  %v4283_v25 = vld [vmem:[#allocation22] sm:$0xff]  }
0x12f8   :  { %v2511_v33 = vsel %vm1155_vm4, %v2509_v31, %v4137_v28  ;;  %v2510_v3 = vsel %vm1155_vm4, %v2508_v32, %v4136_v29  ;;  %v4286_v28 = vld [vmem:[#allocation22 + $0x50] sm:$0xff]   ;;  %v4288_v31 = vld [vmem:[#allocation22 + $0x58] sm:$0xff]  }
0x12f9   :  { %v2528_v34 = vpack.c.bf16 %v2511_v33, %v2510_v3  ;;  %v4287_v29 = vld [vmem:[#allocation22 + $0x10] sm:$0xff]   ;;  %v4289_v32 = vld [vmem:[#allocation22 + $0x18] sm:$0xff]   ;;  %v4290_v33 = vld [vmem:[#allocation22 + $0x60] sm:$0xff]  }
0x12fa   :  { %v4291_v3 = vld [vmem:[#allocation22 + $0x20] sm:$0xff]  }
0x12fb   :  { %3986 = vmatmul.mubr.bf16.vlgmr.msra.gmra.mrb[40].mxu0 %v2528_v34  ;;  %v4292_v34 = vld [vmem:[#allocation22 + $0x68] sm:$0xff]  }
0x12fc   :  { %3765 = vmatpush3.bf16.msra.mxu0 %v4283_v25 }
0x12fd   :  { %3766 = vmatprep.subr.bf16.mxu0 %v4284_v26 }
0x1300   :  { %3767 = vmatpush3.bf16.msra.mxu0 %v4285_v27 }
0x1301   :  { %3768 = vmatprep.subr.bf16.mxu0 %v4286_v28 }
0x1304   :  { %3769 = vmatpush3.bf16.msra.mxu0 %v4287_v29  ;;  %v3628_v29 = vld [vmem:[%s4982_s3] ss:$0 sm:$0xff]  ;;  %s5501_s3 = sld [smem:[#allocation32_spill]] }
0x1305   :  { %3770 = vmatprep.subr.bf16.mxu0 %v4288_v31 }
0x1308   :  { %3771 = vmatpush3.bf16.msra.mxu0 %v4289_v32 }
0x1309   :  { %3772 = vmatprep.subr.bf16.mxu0 %v4290_v33 }
0x130c   :  { %3773 = vmatpush3.bf16.msra.mxu0 %v4291_v3 }
0x130d   :  { %3774 = vmatprep.subr.bf16.mxu0 %v4292_v34 }
0x13ce   :  { %v2618_v35 = vpop.f32.mrb[40].mxu0 }
0x13cf   :  { %v2619_v54 = vadd.f32 %v3601_v5, %v2618_v35  ;;  %v3987_v56 = vpop.f32.mrb[41].mxu0  ;;  %v4294_v35 = vld [vmem:[#allocation22 + $0x70] sm:$0xff]  }
0x13d0   :  { %v2621_v23 = vpop.f32.mrb[42].mxu0  ;;  %v4296_v56 = vld [vmem:[#allocation22 + $0x78] sm:$0xff]  }
0x13d1   :  { %v2622_v51 = vadd.f32 %v3601_v5, %v2621_v23  ;;  %v3988_v50 = vpop.f32.mrb[43].mxu0  ;;  %v2625_v20 = vadd.f32 %v2619_v54, %v5287_v16  ;;  %v4293_v5 = vld [vmem:[#allocation22 + $0x28] sm:$0xff]   ;;  %v4295_v54 = vld [vmem:[#allocation22 + $0x30] sm:$0xff]   ;;  %v4297_v23 = vld [vmem:[#allocation22 + $0x38] sm:$0xff]  }
0x13d2   :  { %3775 = vmatpush3.bf16.msra.mxu0 %v4293_v5 }
0x13d3   :  { %2629 = vadd.xlane.f32.xlu0 %v2625_v20  ;;  %v2626_v36 = vadd.f32 %v2622_v51, %v5289_v14  ;;  %v4266_v14 = vld [vmem:[#allocation20 + $0x24] ss:$8 sps:$4 sm:$0xff]   ;;  %3776 = vmatprep.subr.bf16.mxu0 %v4294_v35  ;;  %v2684_v51 = vld [vmem:[%s5500_s0] sm:$0x3] }
0x13d4   :  { %2780 = vmatprep.subr.bf16.mxu1 %v4266_v14  ;;  %v2689_v50 = vrot.slane %v2684_v51, %v5159_v55 }
0x13d5   :  { %2631 = vadd.xlane.f32.xlu1 %v2626_v36  ;;  %2781 = vmatpush1.bf16.msra.mxu1 %v4264_v52 }
0x13d6   :  { %2782 = vmatprep.subr.bf16.mxu1 %v4269_v53  ;;  %3777 = vmatpush3.bf16.msra.mxu0 %v4295_v54 }
0x13d7   :  { %3778 = vmatprep.subr.bf16.mxu0 %v4296_v56 }
0x13d9   :  { %2783 = vmatpush1.bf16.msra.mxu1 %v4267_v57 }
0x13da   :  { %2784 = vmatprep.subr.bf16.mxu1 %v4272_v59  ;;  %3779 = vmatpush3.bf16.msra.mxu0 %v4297_v23  ;;  %v4298_v23 = vld [vmem:[#allocation8] sm:$0xff]  }
0x13db   :  { %4009 = vmatprep.subr.bf16.mxu0 %v4813_v4 }
0x13dd   :  { %2785 = vmatpush1.bf16.msra.mxu1 %v4270_v60 }
0x13de   :  { %2786 = vmatprep.subr.bf16.mxu1 %v4275_v30 }
0x13e1   :  { %2787 = vmatpush1.bf16.msra.mxu1 %v4273_v61 }
0x13e2   :  { %2788 = vmatprep.subr.bf16.mxu1 %v4278_v62 }
0x13e5   :  { %2789 = vmatpush1.bf16.msra.mxu1 %v4276_v63 }
0x13e6   :  { %2790 = vmatprep.subr.bf16.mxu1 %v4281_v0 }
0x13e9   :  { %2791 = vmatpush1.bf16.msra.mxu1 %v4279_v44 }
0x13ea   :  { %3989 = vmatprep.subr.bf16.mxu1 %v4813_v4 }
0x1460   :  { %v2630_v42 = vpop.xlane.xlu0 %2629 }
0x1461   :  { %v2633_v43 = vmul.f32 0.0078125, %v2630_v42 }
0x1462   :  { %v2632_v45 = vpop.xlane.xlu1 %2631 }
0x1463   :  { %v2635_v46 = vsub.f32 %v2625_v20, %v2633_v43  ;;  %v2634_v47 = vmul.f32 0.0078125, %v2632_v45  ;;  %v2693_v20 = vrot.slane %v2684_v51, %v5164_v58  ;;  %v4299_v51 = vld [vmem:[#allocation8 + $0x8] sm:$0xff]  }
0x1465   :  { %v2636_v48 = vsub.f32 %v2626_v36, %v2634_v47  ;;  %v2637_v49 = vmul.f32 %v2635_v46, %v2635_v46 }
0x1467   :  { %2639 = vadd.xlane.f32.xlu0 %v2637_v49  ;;  %v2638_v16 = vmul.f32 %v2636_v48, %v2636_v48 }
0x146b   :  { %2641 = vadd.xlane.f32.xlu0 %v2638_v16 }
0x14f4   :  { %v2640_v1 = vpop.xlane.xlu0 %2639 }
0x14f5   :  { %v2643_v2 = vmul.f32 0.0078125, %v2640_v1 }
0x14f7   :  { %v2645_v6 = vadd.f32 1e-12, %v2643_v2 }
0x14f8   :  { %v2642_v7 = vpop.xlane.xlu0 %2641 }
0x14f9   :  { %4406 = vrsqrt.f32 %v2645_v6  ;;  %v2644_v8 = vmul.f32 0.0078125, %v2642_v7 }
0x14fb   :  { %v2646_v9 = vadd.f32 1e-12, %v2644_v8 }
0x14fd   :  { %4408 = vrsqrt.f32 %v2646_v9 }
0x1503   :  { %v4407_v41 = vpop.eup %4406 }
0x1504   :  { %v2649_v10 = vmul.f32 %v4407_v41, %v2635_v46 }
0x1506   :  { %v2657_v15 = vmul.f32 %v3610_v11, %v2649_v10 }
0x1507   :  { %v4409_v12 = vpop.eup %4408 }
0x1508   :  { %v2650_v13 = vmul.f32 %v4409_v12, %v2636_v48  ;;  %v5415_v19 = vadd.f32 %v3611_v17, %v2657_v15 }
0x150a   :  { %v2658_v18 = vmul.f32 %v3610_v11, %v2650_v13 }
0x150c   :  { %v5417_v21 = vadd.f32 %v3611_v17, %v2658_v18 }
0x150e   :  { %v2683_v22 = vpack.c.bf16 %v5417_v21, %v5415_v19 }
0x1510   :  { %2809 = vmatmul.mubr.bf16.vlgmr.msra.gmra.mrb[52].mxu1 %v2683_v22 }
0x1511   :  { %4005 = vmatprep.mubr.msk.bf16.mxu1 %vm4815_vm0, %v4813_v4  ;;  %3990 = vmatpush3.bf16.msra.mxu1 %v4298_v23 }
0x1512   :  { %3991 = vmatprep.subr.bf16.mxu1 %v4813_v4 }
0x1515   :  { %3992 = vmatpush3.bf16.msra.mxu1 %v4299_v51 }
0x1516   :  { %3993 = vmatprep.subr.bf16.mxu1 %v4813_v4 }
0x15e3   :  { %v2810_v36 = vpop.f32.mrb[52].mxu1 }
0x15e4   :  { %v2811_v37 = vadd.f32 %v2810_v36, %v2689_v50  ;;  %v2812_v38 = vpop.f32.mrb[53].mxu1 }
0x15e5   :  { %v2813_v39 = vadd.f32 %v2812_v38, %v2693_v20  ;;  %v2814_v40 = vpop.f32.mrb[54].mxu1 }
0x15e6   :  { %v2823_v42 = vmul.f32 0.044715, %v2811_v37  ;;  %v2815_v43 = vadd.f32 %v2814_v40, %v2689_v50  ;;  %v2816_v45 = vpop.f32.mrb[55].mxu1  ;;  %v2819_v10 = vmul.f32 0.5, %v2811_v37 }
0x15e7   :  { %v2824_v46 = vmul.f32 0.044715, %v2813_v39  ;;  %v2817_v47 = vadd.f32 %v2816_v45, %v2693_v20  ;;  %v2820_v13 = vmul.f32 0.5, %v2813_v39  ;;  %v4303_v45 = vld [vmem:[#allocation8 + $0x28] sm:$0xff]  }
0x15e8   :  { %v2827_v48 = vmul.f32 %v2823_v42, %v2811_v37  ;;  %v2825_v49 = vmul.f32 0.044715, %v2815_v43  ;;  %v2821_v11 = vmul.f32 0.5, %v2815_v43  ;;  %v4301_v42 = vld [vmem:[#allocation8 + $0x18] sm:$0xff]  }
0x15e9   :  { %v2828_v16 = vmul.f32 %v2824_v46, %v2813_v39  ;;  %v2826_v14 = vmul.f32 0.044715, %v2817_v47  ;;  %v2822_v15 = vmul.f32 0.5, %v2817_v47  ;;  %v4304_v46 = vld [vmem:[#allocation8 + $0x30] sm:$0xff]  }
0x15ea   :  { %v2831_v52 = vmul.f32 %v2827_v48, %v2811_v37  ;;  %v2829_v53 = vmul.f32 %v2825_v49, %v2815_v43  ;;  %v4306_v48 = vld [vmem:[#allocation10] sm:$0xff]   ;;  %v4307_v49 = vld [vmem:[#allocation10 + $0x8] sm:$0xff]  }
0x15eb   :  { %v2832_v57 = vmul.f32 %v2828_v16, %v2813_v39  ;;  %v2830_v55 = vmul.f32 %v2826_v14, %v2817_v47  ;;  %v4308_v16 = vld [vmem:[#allocation10 + $0x10] sm:$0xff]   ;;  %v4309_v14 = vld [vmem:[#allocation10 + $0x18] sm:$0xff]  }
0x15ec   :  { %v2835_v59 = vadd.f32 %v2831_v52, %v2811_v37  ;;  %v2833_v58 = vmul.f32 %v2829_v53, %v2815_v43 }
0x15ed   :  { %v2834_v60 = vmul.f32 %v2830_v55, %v2817_v47  ;;  %v2836_v30 = vadd.f32 %v2832_v57, %v2813_v39 }
0x15ee   :  { %v2839_v61 = vmul.f32 0.7978846, %v2835_v59  ;;  %v2837_v62 = vadd.f32 %v2833_v58, %v2815_v43  ;;  %v4302_v43 = vld [vmem:[#allocation8 + $0x20] sm:$0xff]  }
0x15ef   :  { %v2838_v63 = vadd.f32 %v2834_v60, %v2817_v47  ;;  %v2840_v0 = vmul.f32 0.7978846, %v2836_v30  ;;  %v4305_v47 = vld [vmem:[#allocation8 + $0x38] sm:$0xff]  }
0x15f0   :  { %4410 = vtanh.f32 %v2839_v61  ;;  %v2841_v44 = vmul.f32 0.7978846, %v2837_v62  ;;  %v3645_v30 = vld [vmem:[%s4987_s6] ss:$0 sm:$0xff]  ;;  %s5502_s6 = sld [smem:[#allocation33_spill]] }
0x15f1   :  { %v2842_v1 = vmul.f32 0.7978846, %v2838_v63  ;;  %4412 = vtanh.f32 %v2840_v0 }
0x15f2   :  { %4414 = vtanh.f32 %v2841_v44  ;;  %v3646_v44 = vld [vmem:[%s4992_s4] ss:$0 sm:$0xff]  ;;  %s5503_s4 = sld [smem:[#allocation34_spill]] }
0x15f3   :  { %4416 = vtanh.f32 %v2842_v1 }
0x15fa   :  { %v4411_v2 = vpop.eup %4410 }
0x15fb   :  { %v4413_v6 = vpop.eup %4412  ;;  %v2847_v7 = vadd.f32 1.0, %v4411_v2 }
0x15fc   :  { %v4415_v8 = vpop.eup %4414  ;;  %v2848_v9 = vadd.f32 1.0, %v4413_v6 }
0x15fd   :  { %v4417_v41 = vpop.eup %4416  ;;  %v2849_v12 = vadd.f32 1.0, %v4415_v8  ;;  %v2851_v18 = vmul.f32 %v2847_v7, %v2819_v10  ;;  %v4310_v8 = vld [vmem:[#allocation10 + $0x20] sm:$0xff]   ;;  %v4313_v10 = vld [vmem:[#allocation10 + $0x38] sm:$0xff]  }
0x15fe   :  { %v2850_v17 = vadd.f32 1.0, %v4417_v41  ;;  %v2852_v24 = vmul.f32 %v2848_v9, %v2820_v13  ;;  %v4311_v9 = vld [vmem:[#allocation10 + $0x28] sm:$0xff]   ;;  %v4312_v41 = vld [vmem:[#allocation10 + $0x30] sm:$0xff]  }
0x15ff   :  { %v2853_v22 = vmul.f32 %v2849_v12, %v2821_v11  ;;  %v4314_v11 = vld [vmem:[#allocation11] sm:$0xff]   ;;  %v4315_v12 = vld [vmem:[#allocation11 + $0x8] sm:$0xff]   ;;  %v4316_v13 = vld [vmem:[#allocation11 + $0x10] sm:$0xff]  }
0x1600   :  { %v2854_v25 = vmul.f32 %v2850_v17, %v2822_v15  ;;  %v4317_v15 = vld [vmem:[#allocation11 + $0x18] sm:$0xff]   ;;  %v4318_v17 = vld [vmem:[#allocation11 + $0x20] sm:$0xff]  }
0x1601   :  { %v2887_v26 = vpack.c.bf16 %v2853_v22, %v2851_v18  ;;  %v4319_v18 = vld [vmem:[#allocation11 + $0x28] sm:$0xff]   ;;  %v3647_v22 = vld [vmem:[%s5501_s3] ss:$0 sm:$0xff] }
0x1602   :  { %v2888_v27 = vpack.c.bf16 %v2854_v25, %v2852_v24 }
0x1604   :  { %3024 = vmatprep.mubr.bf16.mxu0 %v2888_v27 }
0x1605   :  { %3025 = vmatmul.mubr.bf16.vlgmr.msra.gmra.mrb[44].mxu0 %v2887_v26 }
0x1606   :  { %4025 = vmatprep.mubr.msk.bf16.mxu0 %vm4815_vm0, %v4813_v4  ;;  %4010 = vmatpush3.bf16.msra.mxu0 %v4306_v48 }
0x1607   :  { %4011 = vmatprep.subr.bf16.mxu0 %v4813_v4 }
0x160a   :  { %4012 = vmatpush3.bf16.msra.mxu0 %v4307_v49 }
0x160b   :  { %4013 = vmatprep.subr.bf16.mxu0 %v4813_v4 }
0x160e   :  { %4014 = vmatpush3.bf16.msra.mxu0 %v4308_v16 }
0x160f   :  { %4015 = vmatprep.subr.bf16.mxu0 %v4813_v4 }
0x1612   :  { %4016 = vmatpush3.bf16.msra.mxu0 %v4309_v14 }
0x1613   :  { %4017 = vmatprep.subr.bf16.mxu0 %v4813_v4 }
0x1616   :  { %4018 = vmatpush3.bf16.msra.mxu0 %v4310_v8 }
0x1617   :  { %4019 = vmatprep.subr.bf16.mxu0 %v4813_v4 }
0x161a   :  { %4020 = vmatpush3.bf16.msra.mxu0 %v4311_v9 }
0x161b   :  { %4021 = vmatprep.subr.bf16.mxu0 %v4813_v4 }
0x161e   :  { %4022 = vmatpush3.bf16.msra.mxu0 %v4312_v41 }
0x161f   :  { %4023 = vmatprep.subr.bf16.mxu0 %v4813_v4 }
0x1622   :  { %4024 = vmatpush3.bf16.msra.mxu0 %v4313_v10 }
0x16d8   :  { %v3780_v28 = vpop.f32.mrb[44].mxu0 }
0x16d9   :  { %v3781_v31 = vpop.f32.mrb[45].mxu0 }
0x16da   :  { %v3782_v32 = vadd.f32 %v3781_v31, %v3780_v28  ;;  %v3783_v33 = vpop.f32.mrb[46].mxu0 }
0x16db   :  { %v3784_v3 = vpop.f32.mrb[47].mxu0 }
0x16dc   :  { %v3027_v34 = vadd.f32 %v3782_v32, %v3628_v29  ;;  %v3785_v5 = vadd.f32 %v3784_v3, %v3783_v33  ;;  %v4320_v3 = vld [vmem:[#allocation11 + $0x30] sm:$0xff]  }
0x16de   :  { %v3030_v35 = vadd.f32 %v3785_v5, %v3628_v29  ;;  %v3033_v54 = vadd.f32 %v3027_v34, %v5415_v19  ;;  %v4321_v34 = vld [vmem:[#allocation11 + $0x38] sm:$0xff]  }
0x16df   :  { %v3656_v5 = vld [vmem:[%s5502_s6] ss:$0 sm:$0xff] }
0x16e0   :  { %3037 = vadd.xlane.f32.xlu0 %v3033_v54  ;;  %v3034_v56 = vadd.f32 %v3030_v35, %v5417_v21  ;;  %v4300_v21 = vld [vmem:[#allocation8 + $0x10] sm:$0xff]  }
0x16e1   :  { %3994 = vmatpush3.bf16.msra.mxu1 %v4300_v21 }
0x16e2   :  { %3039 = vadd.xlane.f32.xlu1 %v3034_v56  ;;  %3995 = vmatprep.subr.bf16.mxu1 %v4813_v4 }
0x16e5   :  { %3996 = vmatpush3.bf16.msra.mxu1 %v4301_v42 }
0x16e6   :  { %3997 = vmatprep.subr.bf16.mxu1 %v4813_v4 }
0x16e9   :  { %3998 = vmatpush3.bf16.msra.mxu1 %v4302_v43 }
0x16ea   :  { %3999 = vmatprep.subr.bf16.mxu1 %v4813_v4 }
0x16ed   :  { %4000 = vmatpush3.bf16.msra.mxu1 %v4303_v45 }
0x16ee   :  { %4001 = vmatprep.subr.bf16.mxu1 %v4813_v4 }
0x16f1   :  { %4002 = vmatpush3.bf16.msra.mxu1 %v4304_v46 }
0x16f2   :  { %4003 = vmatprep.subr.bf16.mxu1 %v4813_v4 }
0x16f5   :  { %4004 = vmatpush3.bf16.msra.mxu1 %v4305_v47 }
0x16f6   :  { %4029 = vmatprep.subr.bf16.mxu1 %v4813_v4 }
0x176d   :  { %v3038_v50 = vpop.xlane.xlu0 %3037 }
0x176e   :  { %v3041_v20 = vmul.f32 0.0078125, %v3038_v50 }
0x176f   :  { %v3040_v36 = vpop.xlane.xlu1 %3039 }
0x1770   :  { %v3043_v37 = vsub.f32 %v3033_v54, %v3041_v20  ;;  %v3042_v38 = vmul.f32 0.0078125, %v3040_v36 }
0x1772   :  { %v3044_v39 = vsub.f32 %v3034_v56, %v3042_v38  ;;  %v3045_v40 = vmul.f32 %v3043_v37, %v3043_v37  ;;  %v3665_v38 = vld [vmem:[%s5503_s4] ss:$0 sm:$0xff] }
0x1774   :  { %3047 = vadd.xlane.f32.xlu0 %v3045_v40  ;;  %v3046_v19 = vmul.f32 %v3044_v39, %v3044_v39 }
0x1776   :  { %3049 = vadd.xlane.f32.xlu1 %v3046_v19 }
0x1801   :  { %v3048_v52 = vpop.xlane.xlu0 %3047 }
0x1802   :  { %v3051_v53 = vmul.f32 0.0078125, %v3048_v52 }
0x1803   :  { %v3050_v57 = vpop.xlane.xlu1 %3049 }
0x1804   :  { %v3053_v55 = vadd.f32 1e-12, %v3051_v53  ;;  %v3052_v59 = vmul.f32 0.0078125, %v3050_v57 }
0x1806   :  { %4418 = vrsqrt.f32 %v3053_v55  ;;  %v3054_v58 = vadd.f32 1e-12, %v3052_v59 }
0x1808   :  { %4420 = vrsqrt.f32 %v3054_v58 }
0x1810   :  { %v4419_v60 = vpop.eup %4418 }
0x1811   :  { %v3057_v61 = vmul.f32 %v4419_v60, %v3043_v37 }
0x1812   :  { %v4421_v62 = vpop.eup %4420 }
0x1813   :  { %v3058_v63 = vmul.f32 %v4421_v62, %v3044_v39  ;;  %v3065_v0 = vmul.f32 %v3645_v30, %v3057_v61 }
0x1815   :  { %v3066_v1 = vmul.f32 %v3645_v30, %v3058_v63  ;;  %v3073_v2 = vadd.f32 %v3646_v44, %v3065_v0 }
0x1817   :  { %v3074_v6 = vadd.f32 %v3646_v44, %v3066_v1 }
0x1819   :  { %v3091_v7 = vpack.c.bf16 %v3074_v6, %v3073_v2 }
0x181b   :  { %4006 = vmatmul.mubr.bf16.vlgmr.msra.gmra.mrb[56].mxu1 %v3091_v7 }
0x181c   :  { %4045 = vmatprep.mubr.msk.bf16.mxu1 %vm4815_vm0, %v4813_v4  ;;  %4030 = vmatpush3.bf16.msra.mxu1 %v4314_v11 }
0x181d   :  { %4031 = vmatprep.subr.bf16.mxu1 %v4813_v4 }
0x1820   :  { %4032 = vmatpush3.bf16.msra.mxu1 %v4315_v12 }
0x1821   :  { %4033 = vmatprep.subr.bf16.mxu1 %v4813_v4 }
0x1824   :  { %4034 = vmatpush3.bf16.msra.mxu1 %v4316_v13 }
0x1825   :  { %4035 = vmatprep.subr.bf16.mxu1 %v4813_v4 }
0x1828   :  { %4036 = vmatpush3.bf16.msra.mxu1 %v4317_v15 }
0x1829   :  { %4037 = vmatprep.subr.bf16.mxu1 %v4813_v4 }
0x182c   :  { %4038 = vmatpush3.bf16.msra.mxu1 %v4318_v17 }
0x182d   :  { %4039 = vmatprep.subr.bf16.mxu1 %v4813_v4 }
0x1830   :  { %4040 = vmatpush3.bf16.msra.mxu1 %v4319_v18 }
0x1831   :  { %4041 = vmatprep.subr.bf16.mxu1 %v4813_v4 }
0x1834   :  { %4042 = vmatpush3.bf16.msra.mxu1 %v4320_v3 }
0x1835   :  { %4043 = vmatprep.subr.bf16.mxu1 %v4813_v4 }
0x1838   :  { %4044 = vmatpush3.bf16.msra.mxu1 %v4321_v34 }
0x18ee   :  { %v3181_v24 = vpop.f32.mrb[56].mxu1 }
0x18ef   :  { %v3182_v25 = vadd.f32 %v3647_v22, %v3181_v24  ;;  %v4007_v26 = vpop.f32.mrb[57].mxu1 }
0x18f0   :  { %v3184_v27 = vpop.f32.mrb[58].mxu1 }
0x18f1   :  { %v3185_v28 = vadd.f32 %v3647_v22, %v3184_v27  ;;  %v4008_v29 = vpop.f32.mrb[59].mxu1  ;;  %4422 = vtanh.f32 %v3182_v25 }
0x18f3   :  { %4424 = vtanh.f32 %v3185_v28 }
0x18fb   :  { %v4423_v31 = vpop.eup %4422 }
0x18fd   :  { %v4425_v32 = vpop.eup %4424 }
0x18fe   :  { %v3206_v33 = vpack.c.bf16 %v4425_v32, %v4423_v31 }
0x1900   :  { %4026 = vmatmul.mubr.bf16.vlgmr.msra.gmra.mrb[48].mxu0 %v3206_v33 }
0x19d3   :  { %v3296_v35 = vpop.f32.mrb[48].mxu0 }
0x19d4   :  { %v3297_v54 = vadd.f32 %v3656_v5, %v3296_v35  ;;  %v4027_v56 = vpop.f32.mrb[49].mxu0 }
0x19d5   :  { %v3299_v23 = vpop.f32.mrb[50].mxu0 }
0x19d6   :  { %v3300_v51 = vadd.f32 %v3656_v5, %v3299_v23  ;;  %v4028_v50 = vpop.f32.mrb[51].mxu0  ;;  %v3303_v20 = vmax.f32 %v3297_v54, 0.0 }
0x19d8   :  { %v3304_v36 = vmax.f32 %v3300_v51, 0.0 }
0x19da   :  { %v3321_v37 = vpack.c.bf16 %v3304_v36, %v3303_v20 }
0x19dc   :  { %4046 = vmatmul.mubr.bf16.vlgmr.msra.gmra.mrb[60].mxu1 %v3321_v37 }
0x1aaf   :  { %v3411_v39 = vpop.f32.mrb[60].mxu1 }
0x1ab0   :  { %v3412_v40 = vadd.f32 %v3665_v38, %v3411_v39  ;;  %v4047_v19 = vpop.f32.mrb[61].mxu1 }
0x1ab1   :  { %v3414_v21 = vpop.f32.mrb[62].mxu1 }
0x1ab2   :  { %v3418_v42 = vsub.f32 0.0, %v3412_v40  ;;  %v3415_v4 = vadd.f32 %v3665_v38, %v3414_v21  ;;  %v4048_v43 = vpop.f32.mrb[63].mxu1 }
0x1ab4   :  { %v3420_v45 = vmul.f32 1.442695, %v3418_v42  ;;  %v3419_v46 = vsub.f32 0.0, %v3415_v4 }
0x1ab6   :  { %4426 = vpow2.f32 %v3420_v45  ;;  %v3422_v47 = vmul.f32 1.442695, %v3419_v46 }
0x1ab8   :  { %4428 = vpow2.f32 %v3422_v47 }
0x1ac0   :  { %v4427_v48 = vpop.eup %4426 }
0x1ac1   :  { %v3424_v49 = vadd.f32 1.0, %v4427_v48 }
0x1ac2   :  { %v4429_v16 = vpop.eup %4428 }
0x1ac3   :  { %4430 = vrcp.f32 %v3424_v49  ;;  %v3425_v14 = vadd.f32 1.0, %v4429_v16 }
0x1ac5   :  { %4432 = vrcp.f32 %v3425_v14 }
0x1acd   :  { %v4431_v52 = vpop.eup %4430 }
0x1ace   :  { %3430 = vst [vmem:[#allocation23] sm:$0xff] %v4431_v52 }
0x1acf   :  { %v4433_v53 = vpop.eup %4432 }
0x1ad0   :  { %3431 = vst [vmem:[#allocation23 + $0x8] sm:$0xff] %v4433_v53 }
0x1ad1   :  { %4733 = shalt.err (!%p4730_p10)
}
0x1ad2   :  { %s4734_s19 = scalar_lea.hbm %s4997_s24, 256 }
0x1ad3   :  { %p4735_p11 = scmp.ne.s32.totalorder %s4997_s24, %s4734_s19  ;;  %p4738_p12 = scmp.lt.u32.totalorder %s4734_s19, %s4997_s24 }
0x1ad5   :  { %p4740_p13 = pnand %p4738_p12, %p4735_p11 }
0x1ad7   :  { %4743 = shalt.err (!%p4740_p13)
}
0x1ad8   :  { %3443 = dma.vmem_to_hbm [thread:$0]  %s3438_s22, 256, %s4997_s24, [#allocation4], %s4796_s26, %s4796_s26, %s4797_s28  }
0x1ad9   :  { %4758 = dma.done.wait [#allocation4], 256  }
0x1ada   :  { %4759 = vsyncadd [#allocation4], 4294967040 }
0x1adb   :  { %3447 = vsyncpa [#allocation3], 1 }
0x1adc   :  { %3448 = vsyncpa [#allocation6], 1 }
0x1add   :  { %3449 = vsyncpa [#allocation9], 1 }
0x1ade   :  { %3450 = vsyncpa [#allocation12], 1 }
0x1adf   :  { %3451 = vsyncpa [#allocation15], 1 }
0x1ae0   :  { %3452 = vsyncpa [#allocation18], 1 }
0x1ae1   :  { %3453 = vsyncpa [#allocation21], 1 }
0x1ae2   :  { %3454 = vsyncpa [#allocation4], 1 }

</bundles_post_ra>
